<compile_context>
chip_gen: v7x
topology: tpu7x:2x2x1
jax: 0.10.0
libtpu: 0.0.40
codegen_flags: <defaults>
</compile_context>

<pallas_src>
import functools
import math

import jax
import jax.numpy as jnp
from jax import lax
from jax.experimental import pallas as pl
from jax.experimental.pallas import tpu as pltpu


def _pair(v):
    return (v, v) if isinstance(v, int) else tuple(v)


def _round_up(x, m):
    return (x + m - 1) // m * m


# ---------------------------------------------------------------------------
# Fused Conv2d + BatchNorm(eval) + ReLU kernel: one MXU matmul per output tile.
# ---------------------------------------------------------------------------
def _conv_bn_relu_kernel(x_ref, w_ref, sc_ref, sh_ref, o_ref, *,
                         toh, ow, kh, kw, s_h, s_w, d_h, d_w, relu):
    obi = pl.program_id(1)                 # output-row tile index
    row_base = obi * toh
    cin = x_ref.shape[-1]

    # Build the (toh*ow, kh*kw*cin) patch.  Every tap is a unit-stride window
    # of the phase-decomposed slab; phase / row / column offsets below are all
    # static Python ints (the tap loops are unrolled), only the tile row base
    # is dynamic.
    cols = []
    for ki in range(kh):
        r = ki * d_h
        arow, prow = r // s_h, r % s_h
        for kj in range(kw):
            c = kj * d_w
            acol, pcol = c // s_w, c % s_w
            ph = prow * s_w + pcol                               # static
            win = x_ref[ph, pl.ds(row_base + arow, toh), pl.ds(acol, ow), :]
            cols.append(win.reshape(toh * ow, cin))              # (M, cin)
    patch = cols[0] if len(cols) == 1 else jnp.concatenate(cols, axis=-1)

    # Single MXU pass with K = kh*kw*cin, f32 accumulation; fused folded-BN
    # affine (+ conv bias) and ReLU; lane-dense bf16 store.
    acc = jnp.dot(patch, w_ref[...], preferred_element_type=jnp.float32)
    y = acc * sc_ref[...] + sh_ref[...]
    if relu:
        y = jnp.maximum(y, 0.0)
    o_ref[...] = y.astype(o_ref.dtype)


# ---------------------------------------------------------------------------
# Parameter construction (weights packed / padded once at init)
# ---------------------------------------------------------------------------
def init_basic_conv(key, in_planes, out_planes, kernel_size, stride=1, padding=0,
                    dilation=1, groups=1, relu=True, bn=True, bias=False):
    # TODO(synk): groups > 1 (grouped convolution) is not implemented in the fused kernel.
    assert groups == 1, "groups > 1 not supported"
    kh, kw = _pair(kernel_size)
    k_w, k_b, k_g, k_be, k_m, k_v = jax.random.split(key, 6)

    fan_in = in_planes * kh * kw
    bound = 1.0 / math.sqrt(fan_in)
    w = jax.random.uniform(k_w, (out_planes, in_planes, kh, kw), jnp.float32,
                           -bound, bound)
    b = (jax.random.uniform(k_b, (out_planes,), jnp.float32, -bound, bound)
         if bias else jnp.zeros((out_planes,), jnp.float32))

    if bn:
        # Eval-mode BatchNorm with synthetic running stats (inference semantics).
        gamma = jax.random.uniform(k_g, (out_planes,), jnp.float32, 0.8, 1.2)
        beta = 0.1 * jax.random.normal(k_be, (out_planes,), jnp.float32)
        mean = 0.1 * jax.random.normal(k_m, (out_planes,), jnp.float32)
        var = jax.random.uniform(k_v, (out_planes,), jnp.float32, 0.5, 1.5)
        scale = gamma / jnp.sqrt(var + 1e-5)
        shift = (b - mean) * scale + beta
    else:
        scale = jnp.ones((out_planes,), jnp.float32)
        shift = b

    cout_p = _round_up(out_planes, 128)        # lane-dense output / weight columns
    # (Cout, Cin, kh, kw) -> (kh*kw*Cin, Cout_p) bf16, packed once at init.
    # Row order (ki, kj, cin) matches the in-kernel patch concatenation order.
    w_packed = jnp.transpose(w, (2, 3, 1, 0)).reshape(kh * kw * in_planes, out_planes)
    w_packed = jnp.pad(w_packed, ((0, 0), (0, cout_p - out_planes))).astype(jnp.bfloat16)
    scale_p = jnp.pad(scale, (0, cout_p - out_planes)).reshape(1, cout_p)
    shift_p = jnp.pad(shift, (0, cout_p - out_planes)).reshape(1, cout_p)

    params = dict(w=w_packed, scale=scale_p, shift=shift_p, w_raw=w)
    cfg = dict(cin=in_planes, cout=out_planes, cout_p=cout_p, kh=kh, kw=kw,
               stride=_pair(stride), padding=_pair(padding),
               dilation=_pair(dilation), relu=relu)
    return params, cfg


# ---------------------------------------------------------------------------
# Generation-aware VMEM budget
# ---------------------------------------------------------------------------
def _vmem_budget_bytes():
    # ~60% of physical VMEM, capped at 96 MiB:
    #   v5e/v6e (128 MiB physical) -> ~77 MiB;  v7x (64 MiB physical) -> ~38 MiB.
    try:
        cap = pltpu.get_tpu_info().vmem_capacity_bytes
    except Exception:
        cap = 64 * 1024 * 1024
    return min(int(cap * 0.6), 96 * 1024 * 1024)


# ---------------------------------------------------------------------------
# Forward pass (NCHW in / NCHW out, like the PyTorch module)
# ---------------------------------------------------------------------------
def basic_conv_forward(params, cfg, x_nchw):
    kh, kw = cfg["kh"], cfg["kw"]
    s_h, s_w = cfg["stride"]
    p_h, p_w = cfg["padding"]
    d_h, d_w = cfg["dilation"]
    cin, cout, cout_p = cfg["cin"], cfg["cout"], cfg["cout_p"]
    KK = kh * kw * cin

    x = jnp.transpose(x_nchw, (0, 2, 3, 1))                # NCHW -> NHWC
    n, h, w_in, cin_x = x.shape
    assert cin_x == cin
    hp, wp = h + 2 * p_h, w_in + 2 * p_w
    oh = (hp - d_h * (kh - 1) - 1) // s_h + 1
    ow = (wp - d_w * (kw - 1) - 1) // s_w + 1
    assert oh > 0 and ow > 0

    n_phases = s_h * s_w
    hq = -(-hp // s_h)
    wq = -(-wp // s_w)
    arow_max = ((kh - 1) * d_h) // s_h
    acol_max = ((kw - 1) * d_w) // s_w
    wq_p = max(wq, acol_max + ow)          # guarantees in-bounds column windows

    vmem_budget = _vmem_budget_bytes()

    def vmem_estimate(toh):
        # Conservative per-step estimate (double-buffered operands, matmul
        # intermediates), using bf16 (16,128) / f32 (8,128) VMEM tiling.
        ob = -(-oh // toh)
        oh_p = ob * toh
        hq_p = max(hq, arow_max + oh_p)
        m = toh * ow
        x_b = 2 * n_phases * hq_p * _round_up(wq_p, 16) * _round_up(cin, 128) * 2
        w_b = _round_up(KK, 16) * cout_p * 2
        out_b = 2 * _round_up(m, 16) * cout_p * 2
        patch_b = _round_up(m, 16) * _round_up(KK, 128) * 2
        acc_b = _round_up(m, 8) * cout_p * 4
        return x_b + w_b + out_b + patch_b + acc_b

    # Output-row tile: make toh*ow a multiple of 8 sublanes, target M ~ 2048
    # (amortize per-step overhead, fill the MXU M dim), shrink until the VMEM
    # estimate fits the generation budget.
    step = 8 // math.gcd(ow, 8)
    toh = max(step, min(_round_up(oh, step),
                        _round_up(max(1, 2048 // max(ow, 1)), step)))
    while toh > step and vmem_estimate(toh) > vmem_budget:
        nxt = max(step, (toh // 2 // step) * step)
        if nxt == toh:
            break
        toh = nxt
    # TODO(synk): for very large feature maps the whole per-batch phase slab is
    # still VMEM-resident; tile it over output rows with a row halo (manual
    # DMA) if the slab alone exceeds the per-generation budget.

    ob = -(-oh // toh)
    oh_p = ob * toh
    hq_p = max(hq, arow_max + oh_p)
    m_tile = toh * ow
    # In-bounds guarantees for every in-kernel window slice.
    assert hq_p >= arow_max + oh_p and wq_p >= acol_max + ow

    # Input slab: padded, (for stride>1) sub-pixel phase-decomposed, bf16.
    # Layout: (phases, N, hq_p, wq_p, cin).
    if n_phases == 1:
        # Common stride-1 case: one pad + cast, no phase gather, static phase 0.
        x_ph = jnp.pad(x, ((0, 0), (p_h, hq_p - h - p_h),
                           (p_w, wq_p - w_in - p_w), (0, 0)))[None]
    else:
        x_pad = jnp.pad(x, ((0, 0), (p_h, p_h), (p_w, p_w), (0, 0)))
        slabs = []
        for pi in range(s_h):
            for pj in range(s_w):
                s = x_pad[:, pi::s_h, pj::s_w, :]
                s = jnp.pad(s, ((0, 0), (0, hq_p - s.shape[1]),
                                (0, wq_p - s.shape[2]), (0, 0)))
                slabs.append(s)
        x_ph = jnp.stack(slabs, axis=0)
    x_ph = x_ph.astype(jnp.bfloat16)

    kernel = functools.partial(_conv_bn_relu_kernel, toh=toh, ow=ow, kh=kh, kw=kw,
                               s_h=s_h, s_w=s_w, d_h=d_h, d_w=d_w, relu=cfg["relu"])

    grid_spec = pltpu.PrefetchScalarGridSpec(
        num_scalar_prefetch=0,
        grid=(n, ob),
        in_specs=[
            # Whole phase slab of batch element ni (block index constant across
            # obi -> DMA'd once per batch element, reused by every row tile).
            pl.BlockSpec((n_phases, None, hq_p, wq_p, cin),
                         lambda ni, obi: (0, ni, 0, 0, 0)),
            # Full packed weight matrix (kh*kw*cin, cout_p) — constant index.
            pl.BlockSpec((KK, cout_p), lambda ni, obi: (0, 0)),
            pl.BlockSpec((1, cout_p), lambda ni, obi: (0, 0)),
            pl.BlockSpec((1, cout_p), lambda ni, obi: (0, 0)),
        ],
        out_specs=pl.BlockSpec((None, None, m_tile, cout_p),
                               lambda ni, obi: (ni, obi, 0, 0)),
    )

    out = pl.pallas_call(
        kernel,
        out_shape=jax.ShapeDtypeStruct((n, ob, m_tile, cout_p), jnp.bfloat16),
        grid_spec=grid_spec,
        compiler_params=pltpu.CompilerParams(
            dimension_semantics=("parallel", "parallel"),
            vmem_limit_bytes=vmem_budget),
    )(x_ph, params["w"], params["scale"], params["shift"])

    out = out.reshape(n, oh_p, ow, cout_p)[:, :oh, :, :cout]
    # NHWC -> NCHW f32, matching the PyTorch module's output layout/dtype.
    return jnp.transpose(out, (0, 3, 1, 2)).astype(jnp.float32)


# ---------------------------------------------------------------------------
# Pure-JAX reference (for correctness check)
# ---------------------------------------------------------------------------
def reference_forward(params, cfg, x_nchw):
    p_h, p_w = cfg["padding"]
    y = lax.conv_general_dilated(
        x_nchw, params["w_raw"],
        window_strides=cfg["stride"],
        padding=((p_h, p_h), (p_w, p_w)),
        rhs_dilation=cfg["dilation"],
        dimension_numbers=("NCHW", "OIHW", "NCHW"))
    sc = params["scale"][0, :cfg["cout"]]
    sh = params["shift"][0, :cfg["cout"]]
    y = y * sc[None, :, None, None] + sh[None, :, None, None]
    if cfg["relu"]:
        y = jnp.maximum(y, 0.0)
    return y


if __name__ == "__main__":
    root = jax.random.PRNGKey(0)
    k_a, k_b, kx_a, kx_b = jax.random.split(root, 4)

    # Config A: BasicConv(4, 64, kernel_size=3, stride=1, padding=1)
    params_a, cfg_a = init_basic_conv(k_a, 4, 64, 3, stride=1, padding=1)
    x_a = jax.random.normal(kx_a, (2, 4, 16, 16), jnp.float32)

    # Config B: BasicConv(16, 32, kernel_size=3, stride=2, padding=2, dilation=2)
    params_b, cfg_b = init_basic_conv(k_b, 16, 32, 3, stride=2, padding=2, dilation=2)
    x_b = jax.random.normal(kx_b, (2, 16, 16, 16), jnp.float32)

    fwd_a = jax.jit(functools.partial(basic_conv_forward, params_a, cfg_a))
    fwd_b = jax.jit(functools.partial(basic_conv_forward, params_b, cfg_b))

    out_a = jax.block_until_ready(fwd_a(x_a))
    out_b = jax.block_until_ready(fwd_b(x_b))

    ref_a = reference_forward(params_a, cfg_a, x_a)
    ref_b = reference_forward(params_b, cfg_b, x_b)

    assert out_a.shape == (2, 64, 16, 16), out_a.shape
    assert out_b.shape == (2, 32, 8, 8), out_b.shape
    assert bool(jnp.all(jnp.isfinite(out_a))) and bool(jnp.all(jnp.isfinite(out_b)))
    assert bool(jnp.allclose(out_a, ref_a, atol=5e-2, rtol=5e-2)), \
        float(jnp.max(jnp.abs(out_a - ref_a)))
    assert bool(jnp.allclose(out_b, ref_b, atol=5e-2, rtol=5e-2)), \
        float(jnp.max(jnp.abs(out_b - ref_b)))
    print("KERNEL_OK")
</pallas_src>

<mosaic_0001>
module attributes {stable_mosaic.version = 11 : i64} {
  func.func @_conv_bn_relu_kernel(%arg0: i32, %arg1: i32, %arg2: memref<1x1x18x18x4xbf16, #tpu.memory_space<vmem>>, %arg3: memref<36x128xbf16, #tpu.memory_space<vmem>>, %arg4: memref<1x128xf32, #tpu.memory_space<vmem>>, %arg5: memref<1x128xf32, #tpu.memory_space<vmem>>, %arg6: memref<1x1x256x128xbf16, #tpu.memory_space<vmem>>) attributes {dimension_semantics = [#tpu.dimension_semantics<parallel>, #tpu.dimension_semantics<parallel>], iteration_bounds = array<i64: 2, 1>, scalar_prefetch = 0 : i64, scratch_operands = 0 : i64, tpu.core_type = #tpu.core_type<tc>, window_params = [{transform_indices = @transform_0, window_bounds = array<i64: 1, 1, 18, 18, 4>}, {pipeline_mode = #tpu.pipeline_mode<synchronous>, transform_indices = @transform_1, window_bounds = array<i64: 36, 128>}, {pipeline_mode = #tpu.pipeline_mode<synchronous>, transform_indices = @transform_2, window_bounds = array<i64: 1, 128>}, {pipeline_mode = #tpu.pipeline_mode<synchronous>, transform_indices = @transform_3, window_bounds = array<i64: 1, 128>}, {transform_indices = @transform_4, window_bounds = array<i64: 1, 1, 256, 128>}]} {
    %c16_i32 = arith.constant 16 : i32
    %0 = arith.muli %arg1, %c16_i32 : i32
    %c0_i32 = arith.constant 0 : i32
    %1 = arith.addi %0, %c0_i32 : i32
    %c0 = arith.constant 0 : index
    %c0_0 = arith.constant 0 : index
    %2 = arith.index_cast %1 : i32 to index
    %c0_1 = arith.constant 0 : index
    %c0_2 = arith.constant 0 : index
    %3 = vector.load %arg2[%c0, %c0_0, %2, %c0_1, %c0_2] : memref<1x1x18x18x4xbf16, #tpu.memory_space<vmem>>, vector<1x1x16x16x4xbf16>
    %4 = vector.shape_cast %3 : vector<1x1x16x16x4xbf16> to vector<16x16x4xbf16>
    %5 = vector.shape_cast %4 : vector<16x16x4xbf16> to vector<256x4xbf16>
    %c0_i32_3 = arith.constant 0 : i32
    %6 = arith.addi %0, %c0_i32_3 : i32
    %c0_4 = arith.constant 0 : index
    %c0_5 = arith.constant 0 : index
    %7 = arith.index_cast %6 : i32 to index
    %c1 = arith.constant 1 : index
    %c0_6 = arith.constant 0 : index
    %8 = vector.load %arg2[%c0_4, %c0_5, %7, %c1, %c0_6] : memref<1x1x18x18x4xbf16, #tpu.memory_space<vmem>>, vector<1x1x16x16x4xbf16>
    %9 = vector.shape_cast %8 : vector<1x1x16x16x4xbf16> to vector<16x16x4xbf16>
    %10 = vector.shape_cast %9 : vector<16x16x4xbf16> to vector<256x4xbf16>
    %c0_i32_7 = arith.constant 0 : i32
    %11 = arith.addi %0, %c0_i32_7 : i32
    %c0_8 = arith.constant 0 : index
    %c0_9 = arith.constant 0 : index
    %12 = arith.index_cast %11 : i32 to index
    %c2 = arith.constant 2 : index
    %c0_10 = arith.constant 0 : index
    %13 = vector.load %arg2[%c0_8, %c0_9, %12, %c2, %c0_10] : memref<1x1x18x18x4xbf16, #tpu.memory_space<vmem>>, vector<1x1x16x16x4xbf16>
    %14 = vector.shape_cast %13 : vector<1x1x16x16x4xbf16> to vector<16x16x4xbf16>
    %15 = vector.shape_cast %14 : vector<16x16x4xbf16> to vector<256x4xbf16>
    %c1_i32 = arith.constant 1 : i32
    %16 = arith.addi %0, %c1_i32 : i32
    %c0_11 = arith.constant 0 : index
    %c0_12 = arith.constant 0 : index
    %17 = arith.index_cast %16 : i32 to index
    %c0_13 = arith.constant 0 : index
    %c0_14 = arith.constant 0 : index
    %18 = vector.load %arg2[%c0_11, %c0_12, %17, %c0_13, %c0_14] : memref<1x1x18x18x4xbf16, #tpu.memory_space<vmem>>, vector<1x1x16x16x4xbf16>
    %19 = vector.shape_cast %18 : vector<1x1x16x16x4xbf16> to vector<16x16x4xbf16>
    %20 = vector.shape_cast %19 : vector<16x16x4xbf16> to vector<256x4xbf16>
    %c1_i32_15 = arith.constant 1 : i32
    %21 = arith.addi %0, %c1_i32_15 : i32
    %c0_16 = arith.constant 0 : index
    %c0_17 = arith.constant 0 : index
    %22 = arith.index_cast %21 : i32 to index
    %c1_18 = arith.constant 1 : index
    %c0_19 = arith.constant 0 : index
    %23 = vector.load %arg2[%c0_16, %c0_17, %22, %c1_18, %c0_19] : memref<1x1x18x18x4xbf16, #tpu.memory_space<vmem>>, vector<1x1x16x16x4xbf16>
    %24 = vector.shape_cast %23 : vector<1x1x16x16x4xbf16> to vector<16x16x4xbf16>
    %25 = vector.shape_cast %24 : vector<16x16x4xbf16> to vector<256x4xbf16>
    %c1_i32_20 = arith.constant 1 : i32
    %26 = arith.addi %0, %c1_i32_20 : i32
    %c0_21 = arith.constant 0 : index
    %c0_22 = arith.constant 0 : index
    %27 = arith.index_cast %26 : i32 to index
    %c2_23 = arith.constant 2 : index
    %c0_24 = arith.constant 0 : index
    %28 = vector.load %arg2[%c0_21, %c0_22, %27, %c2_23, %c0_24] : memref<1x1x18x18x4xbf16, #tpu.memory_space<vmem>>, vector<1x1x16x16x4xbf16>
    %29 = vector.shape_cast %28 : vector<1x1x16x16x4xbf16> to vector<16x16x4xbf16>
    %30 = vector.shape_cast %29 : vector<16x16x4xbf16> to vector<256x4xbf16>
    %c2_i32 = arith.constant 2 : i32
    %31 = arith.addi %0, %c2_i32 : i32
    %c0_25 = arith.constant 0 : index
    %c0_26 = arith.constant 0 : index
    %32 = arith.index_cast %31 : i32 to index
    %c0_27 = arith.constant 0 : index
    %c0_28 = arith.constant 0 : index
    %33 = vector.load %arg2[%c0_25, %c0_26, %32, %c0_27, %c0_28] : memref<1x1x18x18x4xbf16, #tpu.memory_space<vmem>>, vector<1x1x16x16x4xbf16>
    %34 = vector.shape_cast %33 : vector<1x1x16x16x4xbf16> to vector<16x16x4xbf16>
    %35 = vector.shape_cast %34 : vector<16x16x4xbf16> to vector<256x4xbf16>
    %c2_i32_29 = arith.constant 2 : i32
    %36 = arith.addi %0, %c2_i32_29 : i32
    %c0_30 = arith.constant 0 : index
    %c0_31 = arith.constant 0 : index
    %37 = arith.index_cast %36 : i32 to index
    %c1_32 = arith.constant 1 : index
    %c0_33 = arith.constant 0 : index
    %38 = vector.load %arg2[%c0_30, %c0_31, %37, %c1_32, %c0_33] : memref<1x1x18x18x4xbf16, #tpu.memory_space<vmem>>, vector<1x1x16x16x4xbf16>
    %39 = vector.shape_cast %38 : vector<1x1x16x16x4xbf16> to vector<16x16x4xbf16>
    %40 = vector.shape_cast %39 : vector<16x16x4xbf16> to vector<256x4xbf16>
    %c2_i32_34 = arith.constant 2 : i32
    %41 = arith.addi %0, %c2_i32_34 : i32
    %c0_35 = arith.constant 0 : index
    %c0_36 = arith.constant 0 : index
    %42 = arith.index_cast %41 : i32 to index
    %c2_37 = arith.constant 2 : index
    %c0_38 = arith.constant 0 : index
    %43 = vector.load %arg2[%c0_35, %c0_36, %42, %c2_37, %c0_38] : memref<1x1x18x18x4xbf16, #tpu.memory_space<vmem>>, vector<1x1x16x16x4xbf16>
    %44 = vector.shape_cast %43 : vector<1x1x16x16x4xbf16> to vector<16x16x4xbf16>
    %45 = vector.shape_cast %44 : vector<16x16x4xbf16> to vector<256x4xbf16>
    %46 = tpu.concatenate %5, %10, %15, %20, %25, %30, %35, %40, %45 in 1 : vector<256x4xbf16>, vector<256x4xbf16>, vector<256x4xbf16>, vector<256x4xbf16>, vector<256x4xbf16>, vector<256x4xbf16>, vector<256x4xbf16>, vector<256x4xbf16>, vector<256x4xbf16> -> vector<256x36xbf16>
    %c0_39 = arith.constant 0 : index
    %c0_40 = arith.constant 0 : index
    %47 = vector.load %arg3[%c0_39, %c0_40] : memref<36x128xbf16, #tpu.memory_space<vmem>>, vector<36x128xbf16>
    %cst = arith.constant dense<0.000000e+00> : vector<256x128xf32>
    %48 = tpu.matmul %46, %47, %cst {dimension_numbers = #tpu.dot_dimension_numbers<[1], [0], [0], [1], [0, 0, 1, 1], [], []>} : vector<256x36xbf16>, vector<36x128xbf16>, vector<256x128xf32> -> vector<256x128xf32>
    %c0_41 = arith.constant 0 : index
    %c0_42 = arith.constant 0 : index
    %49 = vector.load %arg4[%c0_41, %c0_42] : memref<1x128xf32, #tpu.memory_space<vmem>>, vector<1x128xf32>
    %50 = vector.broadcast %49 : vector<1x128xf32> to vector<256x128xf32>
    %51 = arith.mulf %48, %50 : vector<256x128xf32>
    %c0_43 = arith.constant 0 : index
    %c0_44 = arith.constant 0 : index
    %52 = vector.load %arg5[%c0_43, %c0_44] : memref<1x128xf32, #tpu.memory_space<vmem>>, vector<1x128xf32>
    %53 = vector.broadcast %52 : vector<1x128xf32> to vector<256x128xf32>
    %54 = arith.addf %51, %53 : vector<256x128xf32>
    %cst_45 = arith.constant 0.000000e+00 : f32
    %55 = vector.broadcast %cst_45 : f32 to vector<256x128xf32>
    %56 = arith.maximumf %54, %55 : vector<256x128xf32>
    %57 = arith.truncf %56 : vector<256x128xf32> to vector<256x128xbf16>
    %c0_46 = arith.constant 0 : index
    %c0_47 = arith.constant 0 : index
    %c0_48 = arith.constant 0 : index
    %c0_49 = arith.constant 0 : index
    %58 = vector.load %arg6[%c0_46, %c0_47, %c0_48, %c0_49] : memref<1x1x256x128xbf16, #tpu.memory_space<vmem>>, vector<1x1x256x128xbf16>
    %59 = vector.shape_cast %58 : vector<1x1x256x128xbf16> to vector<256x128xbf16>
    %60 = vector.shape_cast %57 : vector<256x128xbf16> to vector<1x1x256x128xbf16>
    tpu.vector_store %arg6[%c0_46, %c0_47, %c0_48, %c0_49], %60 {strides = array<i32>} : memref<1x1x256x128xbf16, #tpu.memory_space<vmem>>, vector<1x1x256x128xbf16>,
    return
  }
  func.func @transform_0(%arg0: i32, %arg1: i32) -> (i32, i32, i32, i32, i32) {
    %c0_i32 = arith.constant 0 : i32
    %c0_i32_0 = arith.constant 0 : i32
    %c0_i32_1 = arith.constant 0 : i32
    %c0_i32_2 = arith.constant 0 : i32
    %c0_i32_3 = arith.constant 0 : i32
    return %c0_i32, %arg0, %c0_i32_0, %c0_i32_1, %c0_i32_2 : i32, i32, i32, i32, i32
  }
  func.func @transform_1(%arg0: i32, %arg1: i32) -> (i32, i32) {
    %c0_i32 = arith.constant 0 : i32
    %c0_i32_0 = arith.constant 0 : i32
    %c0_i32_1 = arith.constant 0 : i32
    return %c0_i32, %c0_i32_0 : i32, i32
  }
  func.func @transform_2(%arg0: i32, %arg1: i32) -> (i32, i32) {
    %c0_i32 = arith.constant 0 : i32
    %c0_i32_0 = arith.constant 0 : i32
    %c0_i32_1 = arith.constant 0 : i32
    return %c0_i32, %c0_i32_0 : i32, i32
  }
  func.func @transform_3(%arg0: i32, %arg1: i32) -> (i32, i32) {
    %c0_i32 = arith.constant 0 : i32
    %c0_i32_0 = arith.constant 0 : i32
    %c0_i32_1 = arith.constant 0 : i32
    return %c0_i32, %c0_i32_0 : i32, i32
  }
  func.func @transform_4(%arg0: i32, %arg1: i32) -> (i32, i32, i32, i32) {
    %c0_i32 = arith.constant 0 : i32
    %c0_i32_0 = arith.constant 0 : i32
    %c0_i32_1 = arith.constant 0 : i32
    return %arg0, %arg1, %c0_i32, %c0_i32_0 : i32, i32, i32, i32
  }
}

</mosaic_0001>

<bundles_post_ra>
// kernel: basic_conv_forward.1
= control target key start
LH: loop header
LB: loop body
LE: loop exit
PB: predicated region body
PF: predicated region fallthrough
CT: control target
= control target key end

     0   :  { %s4405_s15 = smov 0   ;;  %s4407_s16 = smov 0   ;;  %s6339_s0 = inlined_call_operand.vmem [shape: bf16[1,2,18,18,4], index: 0, kind: input, shape index: {}]   ;;  %s6340_s1 = inlined_call_operand.vmem [shape: bf16[36,128], index: 1, kind: input, shape index: {}]   ;;  %s6341_s2 = inlined_call_operand.vmem [shape: f32[1,128], index: 2, kind: input, shape index: {}]   ;;  %s6342_s3 = inlined_call_operand.vmem [shape: f32[1,128], index: 3, kind: input, shape index: {}]   ;;  %s6343_s4 = inlined_call_operand.vmem [shape: bf16[2,1,256,128], index: 4, kind: output, shape index: {}]  }
   0x1   :  { %s4409_s17 = smov 0  }
   0x2 LB: > { %s26_s18 = sadd.s32 1, %s4366_s16  ;;  %p3664_p0 = scmp.ge.s32.totalorder %s4370_s17, 1  ;;  %s4370_s17 = sphi %s4409_s17, %s14_s17   ;;  %s4366_s16 = sphi %s4407_s16, %s6349_s16   ;;  %s4362_s15 = sphi %s4405_s15, %s6348_s15  }
   0x3   : > { %p28_p1 = scmp.ge.s32.totalorder %s26_s18, 2  ;;  %p176_p2 = scmp.lt.s32.totalorder %s4370_s17, 3 }
   0x5   : > { %s6351_s18 = smov (%p28_p1, %s26_s18), 0  ;;  %p177_p3 = pnand %p3664_p0, %p176_p2 }
   0x6   : > { %p206_p4 = scmp.lt.s32.totalorder (!%p177_p3), %s4362_s15, 1  ;;  %vm724_vm0 = vcmask (!%p177_p3), 1042432   ;;  %vm725_vm1 = vcmask (!%p177_p3), 1046532   ;;  %s4372_s23 = smov (!%p177_p3), 12   ;;  %vm273_vm3 = vsmask.f32 (!%p177_p3), 3328 }
   0x7   : > { %180 = sbr.rel (%p177_p3) target bundleno = 681 (0x2a9), region = 36  ;;  %vm4460_vm2 = vmor (!%p177_p3), %vm724_vm0, %vm725_vm1  ;;  %vm274_vm4 = vsmask.f32 (!%p177_p3), 7440  ;;  %s4373_s24 = smov (!%p177_p3), 8   ;;  %vm2799_vm6 = vcmask (!%p177_p3), 31744   ;;  %vm2848_vm7 = vcmask (!%p177_p3), 64512  }
   0x8   : > { %vm4518_vm5 = vmor (!%p177_p3), %vm273_vm3, %vm274_vm4  ;;  %s4374_s25 = smov (!%p177_p3), 4   ;;  %s4375_s26 = smov (!%p177_p3), 16   ;;  %vm2881_vm8 = vcmask (!%p177_p3), 97280   ;;  %vm2914_vm9 = vcmask (!%p177_p3), 130048   ;;  %vm2947_vm10 = vcmask (!%p177_p3), 162816   ;;  %vm2980_vm11 = vcmask (!%p177_p3), 195584  }
   0x9   : > { %s4376_s27 = smov (!%p177_p3), 20   ;;  %s4377_s28 = smov (!%p177_p3), 24   ;;  %vm3013_vm12 = vcmask (!%p177_p3), 228352   ;;  %vm3046_vm13 = vcmask (!%p177_p3), 261120   ;;  %vm3099_vm14 = vcmask (!%p177_p3), 293888   ;;  %vm3132_vm15 = vcmask (!%p177_p3), 1041408  }
   0xa   : > { %s4378_s29 = smov (!%p177_p3), 28   ;;  %s4379_s30 = smov (!%p177_p3), 32  }
   0xe   : > { %s6353_s15 = smov (!%p206_p4, %s4362_s15), 1 }
   0xf   : > { %s4236_s19 = smul.u32 216, %s6353_s15 }
  0x11   : > { %s4429_s22 = scalar_lea.vmem %s6339_s0, %s4236_s19  ;;  %s4043_s19 = sshll.u32 %s6353_s15, 7 }
  0x12   : > { %v3700_v0 = vld [vmem:[%s4429_s22 + $0x6c] sm:$0xf]  ;;  %v4433_v1 = vld [vmem:[%s4429_s22 + $0x70] sm:$0xf]  ;;  %v4446_v12 = vld [vmem:[%s4429_s22 + $0x64] sm:$0xf]  ;;  %s6264_s21 = scalar_lea.vmem %s6343_s4, %s4043_s19 }
  0x13   : > { %v3684_v2 = vld [vmem:[%s4429_s22 + $0xc] sm:$0xf]  ;;  %v1093_v3 = vshll.u32 %v4433_v1, 16  ;;  %v1097_v4 = vshrl.u32 %v4433_v1, 16  ;;  %v3900_v5 = vcombine.low %v3700_v0, %v4433_v1  ;;  %v1084_v6 = vshrl.u32 %v3700_v0, 16 }
  0x14   : > { %v4440_v7 = vld [vmem:[%s4429_s22 + $0x10] sm:$0xf]  ;;  %v1087_v8 = vshll.u32 %v3700_v0, 16  ;;  %v892_v15 = vshrl.u32 %v3684_v2, 16  ;;  %v895_v16 = vshll.u32 %v3684_v2, 16  ;;  %v785_v22 = vrot.slane %v4446_v12, 5 }
  0x15   : > { %v901_v9 = vshll.u32 %v4440_v7, 16  ;;  %v905_v10 = vshrl.u32 %v4440_v7, 16  ;;  %v3892_v11 = vcombine.low %v3684_v2, %v4440_v7  ;;  %v4448_v13 = vrot.slane %v1097_v4, 4  ;;  %2367 = vrot.lane.b32.xlu1 %v3900_v5, %s4372_s23  ;;  %v4452_v17 = vld [vmem:[%s4429_s22 + $0x68] sm:$0x1] }
  0x16   : > { %v1086_v14 = vrot.slane %v1084_v6, 4  ;;  %v1089_v18 = vrot.slane %v1087_v8, 5  ;;  %v668_v20 = vld [vmem:[%s4429_s22 + $0x60] sm:$0xe]  ;;  %v788_v23 = vrot.slane %v4452_v17, 5  ;;  %v894_v24 = vrot.slane %v892_v15, 4 }
  0x17   : > { %v4454_v19 = vrot.slane %v905_v10, 4  ;;  %2351 = vrot.lane.b32.xlu0 %v3892_v11, %s4372_s23  ;;  %v897_v25 = vrot.slane %v895_v16, 5  ;;  %v3676_v26 = vrot.slane %v668_v20, 9  ;;  %v4467_v27 = vld [vmem:[%s4429_s22 + $0x4] sm:$0xf]  ;;  %v478_v28 = vshll.u32 %v4446_v12, 16 }
  0x18   : > { %v1090_v29 = vor.u32 %v1089_v18, %v1086_v14  ;;  %v787_v30 = vrot.slane %v785_v22, 4  ;;  %v4471_v31 = vld [vmem:[%s4429_s22 + $0x8] sm:$0x1]  ;;  %v660_v32 = vld [vmem:[%s4429_s22] sm:$0xe]  ;;  %v729_v33 = vrot.slane %v4467_v27, 5 }
  0x19   : > { %v898_v34 = vor.u32 %v897_v25, %v894_v24  ;;  %v786_v35 = vsel %vm4460_vm2, %v3676_v26, %v785_v22  ;;  %v3668_v36 = vrot.slane %v660_v32, 9  ;;  %v732_v37 = vrot.slane %v4471_v31, 5  ;;  %v4479_v38 = vld [vmem:[%s4429_s22 + $0x70] sm:$0xf]  ;;  %v4482_v39 = vld [vmem:[%s4429_s22 + $0x74] sm:$0x1] }
  0x1a   : > { %v4484_v40 = vrot.slane %v1090_v29, 4  ;;  %v789_v41 = vsel %vm4460_vm2, %v787_v30, %v788_v23  ;;  %v731_v42 = vrot.slane %v729_v33, 4  ;;  %v669_v43 = vld [vmem:[%s4429_s22 + $0x6c] sm:$0xe]  ;;  %v792_v44 = vrot.slane %v4479_v38, 5 }
  0x1b   : > { %v4490_v45 = vrot.slane %v898_v34, 4  ;;  %v3884_v46 = vcombine.low %v786_v35, %v789_v41  ;;  %v730_v47 = vsel %vm4460_vm2, %v3668_v36, %v729_v33  ;;  %v3677_v48 = vrot.slane %v669_v43, 9  ;;  %v228_v49 = vld [vmem:[%s4429_s22 + $0x10] sm:$0xf]  ;;  %v258_v50 = vld [vmem:[%s4429_s22 + $0x14] sm:$0x1] }
  0x1c   : > { %v733_v51 = vsel %vm4460_vm2, %v731_v42, %v732_v37  ;;  %v794_v52 = vrot.slane %v792_v44, 4  ;;  %v795_v53 = vrot.slane %v4482_v39, 5  ;;  %v661_v54 = vld [vmem:[%s4429_s22 + $0xc] sm:$0xe]  ;;  %v736_v55 = vrot.slane %v228_v49, 5 }
  0x1d   : > { %2271 = vrot.lane.b32.xlu1 %v3884_v46, %s4373_s24  ;;  %v3876_v56 = vcombine.low %v730_v47, %v733_v51  ;;  %v793_v57 = vsel %vm4460_vm2, %v3677_v48, %v792_v44  ;;  %v3669_v58 = vrot.slane %v661_v54, 9  ;;  %v739_v59 = vrot.slane %v258_v50, 5  ;;  %v227_v60 = vld [vmem:[%s4429_s22 + $0xc] sm:$0xf]  ;;  %v225_v2 = vld [vmem:[%s4429_s22] sm:$0xf] }
  0x1e   : > { %v796_v61 = vsel %vm4460_vm2, %v794_v52, %v795_v53  ;;  %v738_v62 = vrot.slane %v736_v55, 4  ;;  %v301_v63 = vshrl.u32 %v227_v60, 16  ;;  %v304_v0 = vshll.u32 %v227_v60, 16  ;;  %v243_v23 = vld [vmem:[%s4429_s22 + $0x6c] sm:$0xf] }
  0x1f   : > { %2255 = vrot.lane.b32.xlu0 %v3876_v56, %s4373_s24  ;;  %v3885_v4 = vcombine.low %v793_v57, %v796_v61  ;;  %v737_v5 = vsel %vm4460_vm2, %v3669_v58, %v736_v55  ;;  %v310_v6 = vshll.u32 %v228_v49, 16  ;;  %v314_v8 = vshrl.u32 %v228_v49, 16  ;;  %v241_v52 = vld [vmem:[%s4429_s22 + $0x60] sm:$0xf] }
  0x20   : > { %v740_v10 = vsel %vm4460_vm2, %v738_v62, %v739_v59  ;;  %v303_v11 = vrot.slane %v301_v63, 4  ;;  %v306_v14 = vrot.slane %v304_v0, 5  ;;  %v320_v15 = vshll.u32 %v258_v50, 16 }
  0x21   : > { %2273 = vrot.lane.b32.xlu1 %v3885_v4, %s4373_s24  ;;  %v3877_v16 = vcombine.low %v737_v5, %v740_v10  ;;  %v312_v18 = vrot.slane %v310_v6, 5  ;;  %v316_v20 = vrot.slane %v314_v8, 4  ;;  %v277_v22 = vshrl.u32 %v225_v2, 16  ;;  %v3702_v4 = vld [vmem:[%s4429_s22 + $0x78] sm:$0xf] }
  0x22   : > { %v307_v24 = vor.u32 %v306_v14, %v303_v11  ;;  %v322_v25 = vrot.slane %v320_v15, 5  ;;  %v280_v26 = vshll.u32 %v225_v2, 16  ;;  %v286_v29 = vshll.u32 %v4467_v27, 16  ;;  %v4541_v10 = vld [vmem:[%s4429_s22 + $0x7c] sm:$0xf] }
  0x23   : > { %2257 = vrot.lane.b32.xlu0 %v3877_v16, %s4373_s24  ;;  %v317_v32 = vor.u32 %v316_v20, %v312_v18  ;;  %v279_v33 = vrot.slane %v277_v22, 4  ;;  %v290_v34 = vshrl.u32 %v4467_v27, 16  ;;  %v296_v35 = vshll.u32 %v4471_v31, 16 }
  0x24   : > { %v308_v36 = vrot.slane %v307_v24, 4  ;;  %v282_v37 = vrot.slane %v280_v26, 5  ;;  %v288_v41 = vrot.slane %v286_v29, 5  ;;  %v493_v42 = vshrl.u32 %v243_v23, 16 }
  0x25   : > { %v318_v43 = vrot.slane %v317_v32, 4  ;;  %v292_v44 = vrot.slane %v290_v34, 4  ;;  %v298_v46 = vrot.slane %v296_v35, 5  ;;  %v496_v47 = vshll.u32 %v243_v23, 16  ;;  %v4548_v23 = vld [vmem:[%s4429_s22 + $0x18] sm:$0xf] }
  0x26   : > { %v313_v48 = vsel %vm4518_vm5, %v308_v36, %v312_v18  ;;  %v283_v49 = vor.u32 %v282_v37, %v279_v33  ;;  %v495_v50 = vrot.slane %v493_v42, 4  ;;  %v502_v51 = vshll.u32 %v4479_v38, 16  ;;  %v4559_v35 = vld [vmem:[%s4429_s22 + $0x74] sm:$0x1] }
  0x27   : > { %v323_v27 = vsel %vm4518_vm5, %v318_v43, %v322_v25  ;;  %v293_v31 = vor.u32 %v292_v44, %v288_v41  ;;  %v498_v53 = vrot.slane %v496_v47, 5  ;;  %v506_v54 = vshrl.u32 %v4479_v38, 16 }
  0x28   : > { %v3861_v55 = vcombine.low %v313_v48, %v323_v27  ;;  %v284_v56 = vrot.slane %v283_v49, 4  ;;  %v504_v57 = vrot.slane %v502_v51, 5  ;;  %v512_v58 = vshll.u32 %v4482_v39, 16  ;;  %v4569_v48 = vld [vmem:[%s4429_s22 + $0x14] sm:$0x1] }
  0x29   : > { %v294_v59 = vrot.slane %v293_v31, 4  ;;  %v499_v60 = vor.u32 %v498_v53, %v495_v50  ;;  %v508_v61 = vrot.slane %v506_v54, 4  ;;  %v469_v62 = vshrl.u32 %v241_v52, 16 }
  0x2a   : > { %2177 = vrot.lane.b32.xlu1 %v3861_v55, %s4374_s25  ;;  %v289_v63 = vsel %vm4518_vm5, %v284_v56, %v288_v41  ;;  %v514_v0 = vrot.slane %v512_v58, 5  ;;  %v472_v2 = vshll.u32 %v241_v52, 16  ;;  %v480_v38 = vrot.slane %v478_v28, 5 }
  0x2b   : > { %v299_v39 = vsel %vm4518_vm5, %v294_v59, %v298_v46  ;;  %v500_v5 = vrot.slane %v499_v60, 4  ;;  %v509_v6 = vor.u32 %v508_v61, %v504_v57  ;;  %v471_v8 = vrot.slane %v469_v62, 4 }
  0x2c   : > { %v3860_v11 = vcombine.low %v289_v63, %v299_v39  ;;  %v474_v14 = vrot.slane %v472_v2, 5  ;;  %v482_v15 = vshrl.u32 %v4446_v12, 16  ;;  %v488_v16 = vshll.u32 %v4452_v17, 16  ;;  %v4553_v12 = vld [vmem:[%s4429_s22 + $0x1c] sm:$0xf] }
  0x2d   : > { %v505_v28 = vsel %vm4518_vm5, %v500_v5, %v504_v57  ;;  %v510_v18 = vrot.slane %v509_v6, 4  ;;  %v1108_v20 = vshrl.u32 %v3702_v4, 16  ;;  %v1111_v22 = vshll.u32 %v3702_v4, 16  ;;  %v4585_v57 = vld [vmem:[%s4429_s22 + $0x80] sm:$0x1] }
  0x2e   : > { %2175 = vrot.lane.b32.xlu0 %v3860_v11, %s4374_s25  ;;  %v475_v24 = vor.u32 %v474_v14, %v471_v8  ;;  %v484_v25 = vrot.slane %v482_v15, 4  ;;  %v490_v26 = vrot.slane %v488_v16, 5  ;;  %v1121_v29 = vshrl.u32 %v4541_v10, 16  ;;  %v3740_v8 = vld [vmem:[%s4429_s22 + $0x6c] sm:$0xe] }
  0x2f   : > { %v515_v17 = vsel %vm4518_vm5, %v510_v18, %v514_v0  ;;  %v1110_v32 = vrot.slane %v1108_v20, 4  ;;  %v1113_v33 = vrot.slane %v1111_v22, 5  ;;  %v3901_v34 = vcombine.low %v3702_v4, %v4541_v10  ;;  %v4594_v0 = vld [vmem:[%s4429_s22 + $0x20] sm:$0x1] }
  0x30   : > { %v3869_v36 = vcombine.low %v505_v28, %v515_v17  ;;  %v476_v37 = vrot.slane %v475_v24, 4  ;;  %v485_v41 = vor.u32 %v484_v25, %v480_v38  ;;  %v916_v42 = vshrl.u32 %v4548_v23, 16  ;;  %v3732_v28 = vld [vmem:[%s4429_s22 + $0xc] sm:$0xe]  ;;  %v3741_v17 = vld [vmem:[%s4429_s22 + $0x78] sm:$0xe] }
  0x31   : > { %v919_v43 = vshll.u32 %v4548_v23, 16  ;;  %v929_v44 = vshrl.u32 %v4553_v12, 16  ;;  %v3893_v46 = vcombine.low %v4548_v23, %v4553_v12  ;;  %v1095_v47 = vrot.slane %v1093_v3, 5 }
  0x32   : > { %2193 = vrot.lane.b32.xlu1 %v3869_v36, %s4374_s25  ;;  %v481_v49 = vsel %vm4518_vm5, %v476_v37, %v480_v38  ;;  %v486_v50 = vrot.slane %v485_v41, 4  ;;  %v918_v51 = vrot.slane %v916_v42, 4  ;;  %v1103_v52 = vshll.u32 %v4559_v35, 16 }
  0x33   : > { %v921_v27 = vrot.slane %v919_v43, 5  ;;  %v1096_v31 = vsel %vm4518_vm5, %v4484_v40, %v1095_v47  ;;  %v1100_v53 = vor.u32 %v4448_v13, %v1095_v47  ;;  %v903_v3 = vrot.slane %v901_v9, 5  ;;  %v3733_v47 = vld [vmem:[%s4429_s22 + $0x18] sm:$0xe] }
  0x34   : > { %v491_v54 = vsel %vm4518_vm5, %v486_v50, %v490_v26  ;;  %v1105_v55 = vrot.slane %v1103_v52, 5  ;;  %v911_v56 = vshll.u32 %v4569_v48, 16  ;;  %v1114_v58 = vor.u32 %v1113_v33, %v1110_v32 }
  0x35   : > { %v3868_v59 = vcombine.low %v481_v49, %v491_v54  ;;  %v1101_v60 = vrot.slane %v1100_v53, 4  ;;  %v904_v40 = vsel %vm4518_vm5, %v4490_v45, %v903_v3  ;;  %v908_v13 = vor.u32 %v4454_v19, %v903_v3  ;;  %v4636_v53 = vld [vmem:[%s4429_s22 + $0x7c] sm:$0xf] }
  0x36   : > { %2369 = vrot.lane.b32.xlu1 %v3901_v34, %s4372_s23  ;;  %v913_v9 = vrot.slane %v911_v56, 5  ;;  %v1115_v61 = vrot.slane %v1114_v58, 4  ;;  %v1117_v62 = vshll.u32 %v4541_v10, 16  ;;  %v1123_v63 = vrot.slane %v1121_v29, 4  ;;  %v4643_v58 = vld [vmem:[%s4429_s22 + $0x18] sm:$0xf] }
  0x37   : > { %2191 = vrot.lane.b32.xlu0 %v3868_v59, %s4374_s25  ;;  %v1106_v2 = vsel %vm4518_vm5, %v1101_v60, %v1105_v55  ;;  %v909_v38 = vrot.slane %v908_v13, 4  ;;  %v1127_v45 = vshll.u32 %v4585_v57, 16  ;;  %v922_v19 = vor.u32 %v921_v27, %v918_v51  ;;  %v4629_v51 = vld [vmem:[%s4429_s22 + $0x78] sm:$0xf] }
  0x38   : > { %v3916_v4 = vcombine.low %v1096_v31, %v1106_v2  ;;  %v1119_v39 = vrot.slane %v1117_v62, 5  ;;  %v925_v5 = vshll.u32 %v4553_v12, 16  ;;  %v931_v6 = vrot.slane %v929_v44, 4 }
  0x39   : > { %v914_v11 = vsel %vm4518_vm5, %v909_v38, %v913_v9  ;;  %v1129_v14 = vrot.slane %v1127_v45, 5  ;;  %v923_v15 = vrot.slane %v922_v19, 4  ;;  %v935_v16 = vshll.u32 %v4594_v0, 16  ;;  %v4649_v9 = vld [vmem:[%s4429_s22 + $0x1c] sm:$0xf] }
  0x3a   : > { %2447 = vrot.lane.b32.xlu1 %v3916_v4, %s4375_s26  ;;  %v3908_v18 = vcombine.low %v904_v40, %v914_v11  ;;  %v1120_v20 = vsel %vm4518_vm5, %v1115_v61, %v1119_v39  ;;  %v1124_v22 = vor.u32 %v1123_v63, %v1119_v39  ;;  %v927_v23 = vrot.slane %v925_v5, 5  ;;  %v4664_v19 = vld [vmem:[%s4429_s22 + $0x88] sm:$0xf] }
  0x3b   : > { %2353 = vrot.lane.b32.xlu0 %v3893_v46, %s4372_s23  ;;  %v937_v24 = vrot.slane %v935_v16, 5  ;;  %v3756_v25 = vrot.slane %v3740_v8, 9  ;;  %v1397_v26 = vrot.slane %v4433_v1, 5  ;;  %v1400_v29 = vrot.slane %v4559_v35, 5  ;;  %v4671_v8 = vld [vmem:[%s4429_s22 + $0x24] sm:$0xf] }
  0x3c   : > { %v1125_v32 = vrot.slane %v1124_v22, 4  ;;  %v928_v33 = vsel %vm4518_vm5, %v923_v15, %v927_v23  ;;  %v932_v34 = vor.u32 %v931_v6, %v927_v23  ;;  %v3748_v36 = vrot.slane %v3732_v28, 9  ;;  %v4680_v28 = vld [vmem:[%s4429_s22 + $0x28] sm:$0xf] }
  0x3d   : > { %v1398_v37 = vsel %vm4460_vm2, %v3756_v25, %v1397_v26  ;;  %v1399_v41 = vrot.slane %v1397_v26, 4  ;;  %v1341_v42 = vrot.slane %v4440_v7, 5  ;;  %v1344_v43 = vrot.slane %v4569_v48, 5 }
  0x3e   : > { %v1130_v1 = vsel %vm4518_vm5, %v1125_v32, %v1129_v14  ;;  %v933_v35 = vrot.slane %v932_v34, 4  ;;  %v3757_v44 = vrot.slane %v3741_v17, 9  ;;  %v1404_v46 = vrot.slane %v4541_v10, 5 }
  0x3f   : > { %2431 = vrot.lane.b32.xlu0 %v3908_v18, %s4375_s26  ;;  %v3917_v49 = vcombine.low %v1120_v20, %v1130_v1  ;;  %v1401_v50 = vsel %vm4460_vm2, %v1399_v41, %v1400_v29  ;;  %v1342_v7 = vsel %vm4460_vm2, %v3748_v36, %v1341_v42  ;;  %v1343_v48 = vrot.slane %v1341_v42, 4 }
  0x40   : > { %v938_v52 = vsel %vm4518_vm5, %v933_v35, %v937_v24  ;;  %v3932_v27 = vcombine.low %v1398_v37, %v1401_v50  ;;  %v1405_v10 = vsel %vm4460_vm2, %v3757_v44, %v1404_v46  ;;  %v1406_v31 = vrot.slane %v1404_v46, 4  ;;  %v4685_v24 = vld [vmem:[%s4429_s22 + $0x80] sm:$0x1] }
  0x41   : > { %2449 = vrot.lane.b32.xlu1 %v3917_v49, %s4375_s26  ;;  %v3909_v3 = vcombine.low %v928_v33, %v938_v52  ;;  %v1345_v54 = vsel %vm4460_vm2, %v1343_v48, %v1344_v43  ;;  %v1407_v55 = vrot.slane %v4585_v57, 5  ;;  %v3749_v56 = vrot.slane %v3733_v47, 9  ;;  %v4696_v37 = vld [vmem:[%s4429_s22 + $0x20] sm:$0x1] }
  0x42   : > { %v3924_v59 = vcombine.low %v1342_v7, %v1345_v54  ;;  %v1348_v60 = vrot.slane %v4553_v12, 5  ;;  %v1351_v40 = vrot.slane %v4594_v0, 5  ;;  %v1696_v13 = vshrl.u32 %v4629_v51, 16  ;;  %v4659_v12 = vld [vmem:[%s4429_s22 + $0x84] sm:$0xf] }
  0x43   : > { %2433 = vrot.lane.b32.xlu0 %v3909_v3, %s4375_s26  ;;  %v1408_v61 = vsel %vm4460_vm2, %v1406_v31, %v1407_v55  ;;  %v1699_v57 = vshll.u32 %v4629_v51, 16  ;;  %v1709_v62 = vshrl.u32 %v4636_v53, 16  ;;  %v3948_v63 = vcombine.low %v4629_v51, %v4636_v53 }
  0x44   : > { %v3933_v0 = vcombine.low %v1405_v10, %v1408_v61  ;;  %v1349_v2 = vsel %vm4460_vm2, %v3749_v56, %v1348_v60  ;;  %v1350_v38 = vrot.slane %v1348_v60, 4  ;;  %v1698_v45 = vrot.slane %v1696_v13, 4 }
  0x45   : > { %2527 = vrot.lane.b32.xlu1 %v3932_v27, %s4376_s27  ;;  %v1701_v4 = vrot.slane %v1699_v57, 5  ;;  %v1504_v39 = vshrl.u32 %v4643_v58, 16  ;;  %v1507_v5 = vshll.u32 %v4643_v58, 16  ;;  %v1517_v6 = vshrl.u32 %v4649_v9, 16  ;;  %v4705_v27 = vld [vmem:[%s4429_s22 + $0x8c] sm:$0x1] }
  0x46   : > { %v1352_v11 = vsel %vm4460_vm2, %v1350_v38, %v1351_v40  ;;  %v3940_v14 = vcombine.low %v4643_v58, %v4649_v9  ;;  %v1720_v15 = vshrl.u32 %v4659_v12, 16  ;;  %v1723_v16 = vshll.u32 %v4659_v12, 16  ;;  %v4715_v57 = vld [vmem:[%s4429_s22 + $0x2c] sm:$0x1] }
  0x47   : > { %2511 = vrot.lane.b32.xlu0 %v3924_v59, %s4376_s27  ;;  %v3925_v18 = vcombine.low %v1349_v2, %v1352_v11  ;;  %v1506_v20 = vrot.slane %v1504_v39, 4  ;;  %v1509_v22 = vrot.slane %v1507_v5, 5  ;;  %v1733_v23 = vshrl.u32 %v4664_v19, 16 }
  0x48   : > { %v1722_v25 = vrot.slane %v1720_v15, 4  ;;  %v1725_v26 = vrot.slane %v1723_v16, 5  ;;  %v3949_v29 = vcombine.low %v4659_v12, %v4664_v19  ;;  %v1528_v17 = vshrl.u32 %v4671_v8, 16  ;;  %v3812_v16 = vld [vmem:[%s4429_s22 + $0x18] sm:$0xe] }
  0x49   : > { %2529 = vrot.lane.b32.xlu1 %v3933_v0, %s4376_s27  ;;  %v1531_v32 = vshll.u32 %v4671_v8, 16  ;;  %v1541_v33 = vshrl.u32 %v4680_v28, 16  ;;  %v3941_v34 = vcombine.low %v4671_v8, %v4680_v28  ;;  %v1702_v36 = vor.u32 %v1701_v4, %v1698_v45  ;;  %v3820_v45 = vld [vmem:[%s4429_s22 + $0x78] sm:$0xe] }
  0x4a   : > { %v1530_v41 = vrot.slane %v1528_v17, 4  ;;  %v1705_v42 = vshll.u32 %v4636_v53, 16  ;;  %v1711_v43 = vrot.slane %v1709_v62, 4  ;;  %v1715_v1 = vshll.u32 %v4685_v24, 16 }
  0x4b   : > { %2513 = vrot.lane.b32.xlu0 %v3925_v18, %s4376_s27  ;;  %v1533_v35 = vrot.slane %v1531_v32, 5  ;;  %v1703_v44 = vrot.slane %v1702_v36, 4  ;;  %v1510_v46 = vor.u32 %v1509_v22, %v1506_v20  ;;  %v1513_v47 = vshll.u32 %v4649_v9, 16 }
  0x4c   : > { %v1707_v49 = vrot.slane %v1705_v42, 5  ;;  %v1717_v50 = vrot.slane %v1715_v1, 5  ;;  %v1519_v7 = vrot.slane %v1517_v6, 4  ;;  %v1523_v48 = vshll.u32 %v4696_v37, 16  ;;  %v4739_v42 = vld [vmem:[%s4429_s22 + $0x7c] sm:$0xf] }
  0x4d   : > { %2623 = vrot.lane.b32.xlu1 %v3948_v63, %s4377_s28  ;;  %v1511_v51 = vrot.slane %v1510_v46, 4  ;;  %v1515_v52 = vrot.slane %v1513_v47, 5  ;;  %v1726_v10 = vor.u32 %v1725_v26, %v1722_v25  ;;  %v1729_v31 = vshll.u32 %v4664_v19, 16  ;;  %v245_v25 = vld [vmem:[%s4429_s22 + $0x78] sm:$0xf] }
  0x4e   : > { %v1708_v3 = vsel %vm4518_vm5, %v1703_v44, %v1707_v49  ;;  %v1712_v54 = vor.u32 %v1711_v43, %v1707_v49  ;;  %v1525_v55 = vrot.slane %v1523_v48, 5  ;;  %v1735_v56 = vrot.slane %v1733_v23, 4  ;;  %v4750_v46 = vld [vmem:[%s4429_s22 + $0x80] sm:$0x1]  ;;  %v229_v49 = vld [vmem:[%s4429_s22 + $0x18] sm:$0xf] }
  0x4f   : > { %2607 = vrot.lane.b32.xlu0 %v3940_v14, %s4377_s28  ;;  %v1516_v58 = vsel %vm4518_vm5, %v1511_v51, %v1515_v52  ;;  %v1520_v59 = vor.u32 %v1519_v7, %v1515_v52  ;;  %v1727_v60 = vrot.slane %v1726_v10, 4  ;;  %v1731_v40 = vrot.slane %v1729_v31, 5  ;;  %v4758_v51 = vld [vmem:[%s4429_s22 + $0x1c] sm:$0xf] }
  0x50   : > { %v1713_v13 = vrot.slane %v1712_v54, 4  ;;  %v1739_v61 = vshll.u32 %v4705_v27, 16  ;;  %v1534_v62 = vor.u32 %v1533_v35, %v1530_v41  ;;  %v1537_v63 = vshll.u32 %v4680_v28, 16  ;;  %v4764_v54 = vld [vmem:[%s4429_s22 + $0x20] sm:$0x1] }
  0x51   : > { %2625 = vrot.lane.b32.xlu1 %v3949_v29, %s4377_s28  ;;  %v1521_v12 = vrot.slane %v1520_v59, 4  ;;  %v1732_v0 = vsel %vm4518_vm5, %v1727_v60, %v1731_v40  ;;  %v1736_v2 = vor.u32 %v1735_v56, %v1731_v40  ;;  %v1543_v38 = vrot.slane %v1541_v33, 4 }
  0x52   : > { %v1718_v4 = vsel %vm4518_vm5, %v1713_v13, %v1717_v50  ;;  %v1741_v39 = vrot.slane %v1739_v61, 5  ;;  %v1535_v5 = vrot.slane %v1534_v62, 4  ;;  %v1539_v6 = vrot.slane %v1537_v63, 5  ;;  %v3821_v62 = vld [vmem:[%s4429_s22 + $0x84] sm:$0xe] }
  0x53   : > { %2609 = vrot.lane.b32.xlu0 %v3941_v34, %s4377_s28  ;;  %v3964_v8 = vcombine.low %v1708_v3, %v1718_v4  ;;  %v1526_v11 = vsel %vm4518_vm5, %v1521_v12, %v1525_v55  ;;  %v1737_v14 = vrot.slane %v1736_v2, 4  ;;  %v1547_v15 = vshll.u32 %v4715_v57, 16 }
  0x54   : > { %v3956_v18 = vcombine.low %v1516_v58, %v1526_v11  ;;  %v1540_v20 = vsel %vm4518_vm5, %v1535_v5, %v1539_v6  ;;  %v1544_v22 = vor.u32 %v1543_v38, %v1539_v6  ;;  %v3836_v23 = vrot.slane %v3820_v45, 9  ;;  %v3813_v5 = vld [vmem:[%s4429_s22 + $0x24] sm:$0xe] }
  0x55   : > { %2703 = vrot.lane.b32.xlu1 %v3964_v8, %s4378_s29  ;;  %v1742_v26 = vsel %vm4518_vm5, %v1737_v14, %v1741_v39  ;;  %v1549_v29 = vrot.slane %v1547_v15, 5  ;;  %v2009_v17 = vrot.slane %v4636_v53, 5  ;;  %v2012_v32 = vrot.slane %v4685_v24, 5 }
  0x56   : > { %v3965_v33 = vcombine.low %v1732_v0, %v1742_v26  ;;  %v1545_v34 = vrot.slane %v1544_v22, 4  ;;  %v3828_v36 = vrot.slane %v3812_v16, 9  ;;  %v1953_v41 = vrot.slane %v4649_v9, 5  ;;  %v247_v22 = vld [vmem:[%s4429_s22 + $0x84] sm:$0xf] }
  0x57   : > { %2687 = vrot.lane.b32.xlu0 %v3956_v18, %s4378_s29  ;;  %v2010_v43 = vsel %vm4460_vm2, %v3836_v23, %v2009_v17  ;;  %v2011_v1 = vrot.slane %v2009_v17, 4  ;;  %v1956_v35 = vrot.slane %v4696_v37, 5  ;;  %v517_v53 = vshrl.u32 %v245_v25, 16 }
  0x58   : > { %v1550_v24 = vsel %vm4518_vm5, %v1545_v34, %v1549_v29  ;;  %v1954_v44 = vsel %vm4460_vm2, %v3828_v36, %v1953_v41  ;;  %v1955_v9 = vrot.slane %v1953_v41, 4  ;;  %v520_v47 = vshll.u32 %v245_v25, 16  ;;  %v4787_v34 = vld [vmem:[%s4429_s22 + $0x88] sm:$0xf] }
  0x59   : > { %2705 = vrot.lane.b32.xlu1 %v3965_v33, %s4378_s29  ;;  %v3957_v50 = vcombine.low %v1540_v20, %v1550_v24  ;;  %v2013_v7 = vsel %vm4460_vm2, %v2011_v1, %v2012_v32  ;;  %v519_v37 = vrot.slane %v517_v53, 4  ;;  %v526_v48 = vshll.u32 %v4739_v42, 16  ;;  %v231_v24 = vld [vmem:[%s4429_s22 + $0x24] sm:$0xf] }
  0x5a   : > { %v3980_v52 = vcombine.low %v2010_v43, %v2013_v7  ;;  %v1957_v10 = vsel %vm4460_vm2, %v1955_v9, %v1956_v35  ;;  %v522_v31 = vrot.slane %v520_v47, 5  ;;  %v530_v3 = vshrl.u32 %v4739_v42, 16  ;;  %v4792_v43 = vld [vmem:[%s4429_s22 + $0x8c] sm:$0x1] }
  0x5b   : > { %2689 = vrot.lane.b32.xlu0 %v3957_v50, %s4378_s29  ;;  %v3972_v55 = vcombine.low %v1954_v44, %v1957_v10  ;;  %v528_v56 = vrot.slane %v526_v48, 5  ;;  %v536_v58 = vshll.u32 %v4750_v46, 16  ;;  %v325_v59 = vshrl.u32 %v229_v49, 16  ;;  %v4804_v50 = vld [vmem:[%s4429_s22 + $0x28] sm:$0xf] }
  0x5c   : > { %v523_v60 = vor.u32 %v522_v31, %v519_v37  ;;  %v532_v40 = vrot.slane %v530_v3, 4  ;;  %v328_v13 = vshll.u32 %v229_v49, 16  ;;  %v334_v61 = vshll.u32 %v4758_v51, 16  ;;  %v4811_v10 = vld [vmem:[%s4429_s22 + $0x2c] sm:$0x1] }
  0x5d   : > { %2783 = vrot.lane.b32.xlu1 %v3980_v52, %s4379_s30  ;;  %v538_v63 = vrot.slane %v536_v58, 5  ;;  %v327_v12 = vrot.slane %v325_v59, 4  ;;  %v338_v0 = vshrl.u32 %v4758_v51, 16  ;;  %v344_v2 = vshll.u32 %v4764_v54, 16  ;;  %v670_v58 = vld [vmem:[%s4429_s22 + $0x78] sm:$0xe] }
  0x5e   : > { %v524_v38 = vrot.slane %v523_v60, 4  ;;  %v533_v45 = vor.u32 %v532_v40, %v528_v56  ;;  %v330_v4 = vrot.slane %v328_v13, 5  ;;  %v336_v39 = vrot.slane %v334_v61, 5  ;;  %v4293_v59 = vld [vmem:[%s6340_s1] sm:$0xff]  }
  0x5f   : > { %2767 = vrot.lane.b32.xlu0 %v3972_v55, %s4379_s30  ;;  %v340_v6 = vrot.slane %v338_v0, 4  ;;  %v346_v8 = vrot.slane %v344_v2, 5  ;;  %v3837_v11 = vrot.slane %v3821_v62, 9  ;;  %v2016_v14 = vrot.slane %v4664_v19, 5  ;;  %v662_v2 = vld [vmem:[%s4429_s22 + $0x18] sm:$0xe]  ;;  %4190 = vmatprep.subr.bf16.mxu0 %v4293_v59 }
  0x60   : > { %v529_v15 = vsel %vm4518_vm5, %v524_v38, %v528_v56  ;;  %v534_v16 = vrot.slane %v533_v45, 4  ;;  %v331_v18 = vor.u32 %v330_v4, %v327_v12  ;;  %v2019_v20 = vrot.slane %v4705_v27, 5  ;;  %4228 = vmatprep.subr.bf16.mxu1 %v4293_v59  ;;  %4191 = vmatpush3.bf16.msra.mxu0 %v4293_v59 }
  0x61   : > { %v341_v23 = vor.u32 %v340_v6, %v336_v39  ;;  %v2017_v25 = vsel %vm4460_vm2, %v3837_v11, %v2016_v14  ;;  %v2018_v26 = vrot.slane %v2016_v14, 4  ;;  %v3829_v29 = vrot.slane %v3813_v5, 9  ;;  %v4296_v5 = vld [vmem:[%s6340_s1 + $0x8] sm:$0xff]   ;;  %4231 = vmatpush3.bf16.msra.mxu1 %v4293_v59 }
  0x62   : > { %v539_v17 = vsel %vm4518_vm5, %v534_v16, %v538_v63  ;;  %v332_v19 = vrot.slane %v331_v18, 4  ;;  %v1960_v32 = vrot.slane %v4680_v28, 5  ;;  %v1963_v33 = vrot.slane %v4715_v57, 5  ;;  %4192 = vmatprep.subr.bf16.mxu0 %v4296_v5  ;;  %4229 = vmatprep.subr.bf16.mxu1 %v4296_v5 }
  0x63   : > { %v3870_v27 = vcombine.low %v529_v15, %v539_v17  ;;  %v342_v36 = vrot.slane %v341_v23, 4  ;;  %v2020_v41 = vsel %vm4460_vm2, %v2018_v26, %v2019_v20  ;;  %v541_v1 = vshrl.u32 %v247_v22, 16 }
  0x64   : > { %v337_v35 = vsel %vm4518_vm5, %v332_v19, %v336_v39  ;;  %v3981_v53 = vcombine.low %v2017_v25, %v2020_v41  ;;  %v1961_v28 = vsel %vm4460_vm2, %v3829_v29, %v1960_v32  ;;  %v1962_v57 = vrot.slane %v1960_v32, 4  ;;  %v663_v32 = vld [vmem:[%s4429_s22 + $0x24] sm:$0xe]  ;;  %4193 = vmatpush3.bf16.msra.mxu0 %v4296_v5 }
  0x65   : > { %2195 = vrot.lane.b32.xlu1 %v3870_v27, %s4374_s25  ;;  %v347_v44 = vsel %vm4518_vm5, %v342_v36, %v346_v8  ;;  %v543_v9 = vrot.slane %v541_v1, 4  ;;  %v544_v47 = vshll.u32 %v247_v22, 16  ;;  %v550_v49 = vshll.u32 %v4787_v34, 16  ;;  %v671_v22 = vld [vmem:[%s4429_s22 + $0x84] sm:$0xe]  ;;  %4232 = vmatpush3.bf16.msra.mxu1 %v4296_v5 }
  0x66   : > { %v3862_v7 = vcombine.low %v337_v35, %v347_v44  ;;  %v1964_v37 = vsel %vm4460_vm2, %v1962_v57, %v1963_v33  ;;  %v554_v48 = vshrl.u32 %v4787_v34, 16  ;;  %v560_v52 = vshll.u32 %v4792_v43, 16 }
  0x67   : > { %v3973_v31 = vcombine.low %v1961_v28, %v1964_v37  ;;  %v546_v3 = vrot.slane %v544_v47, 5  ;;  %v552_v55 = vrot.slane %v550_v49, 5  ;;  %v349_v56 = vshrl.u32 %v231_v24, 16 }
  0x68   : > { %2179 = vrot.lane.b32.xlu0 %v3862_v7, %s4374_s25  ;;  %v556_v60 = vrot.slane %v554_v48, 4  ;;  %v562_v40 = vrot.slane %v560_v52, 5  ;;  %v352_v13 = vshll.u32 %v231_v24, 16  ;;  %v358_v61 = vshll.u32 %v4804_v50, 16  ;;  %v4861_v48 = vld [vmem:[%s4429_s22 + $0x24] sm:$0xf] }
  0x69   : > { %2785 = vrot.lane.b32.xlu1 %v3981_v53, %s4379_s30  ;;  %v547_v62 = vor.u32 %v546_v3, %v543_v9  ;;  %v351_v63 = vrot.slane %v349_v56, 4  ;;  %v362_v12 = vshrl.u32 %v4804_v50, 16  ;;  %v368_v0 = vshll.u32 %v4811_v10, 16  ;;  %v4854_v9 = vld [vmem:[%s4429_s22 + $0x88] sm:$0xf] }
  0x6a   : > { %v557_v38 = vor.u32 %v556_v60, %v552_v55  ;;  %v354_v45 = vrot.slane %v352_v13, 5  ;;  %v360_v4 = vrot.slane %v358_v61, 5  ;;  %v3678_v39 = vrot.slane %v670_v58, 9  ;;  %v4872_v56 = vld [vmem:[%s4429_s22 + $0x28] sm:$0xf] }
  0x6b   : > { %v548_v6 = vrot.slane %v547_v62, 4  ;;  %v364_v8 = vrot.slane %v362_v12, 4  ;;  %v370_v11 = vrot.slane %v368_v0, 5  ;;  %v799_v14 = vrot.slane %v4739_v42, 5  ;;  %v3706_v13 = vld [vmem:[%s4429_s22 + $0x90] sm:$0xf] }
  0x6c   : > { %2769 = vrot.lane.b32.xlu0 %v3973_v31, %s4379_s30  ;;  %v558_v15 = vrot.slane %v557_v38, 4  ;;  %v355_v16 = vor.u32 %v354_v45, %v351_v63  ;;  %v802_v18 = vrot.slane %v4750_v46, 5  ;;  %v3670_v20 = vrot.slane %v662_v2, 9  ;;  %v4882_v61 = vld [vmem:[%s4429_s22 + $0x94] sm:$0xf] }
  0x6d   : > { %v553_v23 = vsel %vm4518_vm5, %v548_v6, %v552_v55  ;;  %v365_v25 = vor.u32 %v364_v8, %v360_v4  ;;  %v800_v26 = vsel %vm4460_vm2, %v3678_v39, %v799_v14  ;;  %v801_v29 = vrot.slane %v799_v14, 4  ;;  %v4888_v2 = vld [vmem:[%s4429_s22 + $0x30] sm:$0xf]  ;;  %v4891_v38 = vld [vmem:[%s4429_s22 + $0x34] sm:$0xf] }
  0x6e   : > { %v563_v42 = vsel %vm4518_vm5, %v558_v15, %v562_v40  ;;  %v356_v17 = vrot.slane %v355_v16, 4  ;;  %v743_v19 = vrot.slane %v4758_v51, 5  ;;  %v746_v46 = vrot.slane %v4764_v54, 5  ;;  %v4846_v54 = vld [vmem:[%s4429_s22 + $0x84] sm:$0xf] }
  0x6f   : > { %v3871_v33 = vcombine.low %v553_v23, %v563_v42  ;;  %v366_v27 = vrot.slane %v365_v25, 4  ;;  %v803_v36 = vsel %vm4460_vm2, %v801_v29, %v802_v18  ;;  %v3679_v41 = vrot.slane %v671_v22, 9  ;;  %v4904_v22 = vld [vmem:[%s4429_s22 + $0x8c] sm:$0x1] }
  0x70   : > { %v361_v1 = vsel %vm4518_vm5, %v356_v17, %v360_v4  ;;  %v3886_v35 = vcombine.low %v800_v26, %v803_v36  ;;  %v744_v51 = vsel %vm4460_vm2, %v3670_v20, %v743_v19  ;;  %v745_v53 = vrot.slane %v743_v19, 4  ;;  %v4909_v42 = vld [vmem:[%s4429_s22 + $0x2c] sm:$0x1] }
  0x71   : > { %2197 = vrot.lane.b32.xlu1 %v3871_v33, %s4374_s25  ;;  %v371_v28 = vsel %vm4518_vm5, %v366_v27, %v370_v11  ;;  %v806_v57 = vrot.slane %v4787_v34, 5  ;;  %v809_v24 = vrot.slane %v4792_v43, 5  ;;  %v3671_v44 = vrot.slane %v663_v32, 9 }
  0x72   : > { %v3863_v47 = vcombine.low %v361_v1, %v371_v28  ;;  %v747_v49 = vsel %vm4460_vm2, %v745_v53, %v746_v46  ;;  %v750_v7 = vrot.slane %v4804_v50, 5  ;;  %v753_v37 = vrot.slane %v4811_v10, 5 }
  0x73   : > { %v3878_v52 = vcombine.low %v744_v51, %v747_v49  ;;  %v807_v34 = vsel %vm4460_vm2, %v3679_v41, %v806_v57  ;;  %v808_v43 = vrot.slane %v806_v57, 4  ;;  %v1132_v31 = vshrl.u32 %v4846_v54, 16 }
  0x74   : > { %2181 = vrot.lane.b32.xlu0 %v3863_v47, %s4374_s25  ;;  %v751_v3 = vsel %vm4460_vm2, %v3671_v44, %v750_v7  ;;  %v752_v50 = vrot.slane %v750_v7, 4  ;;  %v1135_v10 = vshll.u32 %v4846_v54, 16  ;;  %v1145_v55 = vshrl.u32 %v4854_v9, 16 }
  0x75   : > { %2275 = vrot.lane.b32.xlu1 %v3886_v35, %s4373_s24  ;;  %v810_v58 = vsel %vm4460_vm2, %v808_v43, %v809_v24  ;;  %v1134_v59 = vrot.slane %v1132_v31, 4  ;;  %v3902_v60 = vcombine.low %v4846_v54, %v4854_v9  ;;  %v940_v40 = vshrl.u32 %v4861_v48, 16  ;;  %v4918_v24 = vld [vmem:[%s4429_s22 + $0x98] sm:$0x1] }
  0x76   : > { %v3887_v62 = vcombine.low %v807_v34, %v810_v58  ;;  %v754_v63 = vsel %vm4460_vm2, %v752_v50, %v753_v37  ;;  %v1137_v12 = vrot.slane %v1135_v10, 5  ;;  %v943_v0 = vshll.u32 %v4861_v48, 16  ;;  %v4929_v50 = vld [vmem:[%s4429_s22 + $0x38] sm:$0x1] }
  0x77   : > { %v3879_v45 = vcombine.low %v751_v3, %v754_v63  ;;  %v942_v4 = vrot.slane %v940_v40, 4  ;;  %v953_v39 = vshrl.u32 %v4872_v56, 16  ;;  %v3894_v5 = vcombine.low %v4861_v48, %v4872_v56 }
  0x78   : > { %2259 = vrot.lane.b32.xlu0 %v3878_v52, %s4373_s24  ;;  %v945_v6 = vrot.slane %v943_v0, 5  ;;  %v1156_v8 = vshrl.u32 %v3706_v13, 16  ;;  %v1159_v11 = vshll.u32 %v3706_v13, 16  ;;  %v1169_v14 = vshrl.u32 %v4882_v61, 16 }
  0x79   : > { %2277 = vrot.lane.b32.xlu1 %v3887_v62, %s4373_s24  ;;  %v3903_v15 = vcombine.low %v3706_v13, %v4882_v61  ;;  %v964_v16 = vshrl.u32 %v4888_v2, 16  ;;  %v967_v18 = vshll.u32 %v4888_v2, 16  ;;  %v977_v20 = vshrl.u32 %v4891_v38, 16  ;;  %v3742_v13 = vld [vmem:[%s4429_s22 + $0x84] sm:$0xe] }
  0x7a   : > { %v1158_v23 = vrot.slane %v1156_v8, 4  ;;  %v1161_v25 = vrot.slane %v1159_v11, 5  ;;  %v3895_v26 = vcombine.low %v4888_v2, %v4891_v38  ;;  %v1138_v29 = vor.u32 %v1137_v12, %v1134_v59 }
  0x7b   : > { %v966_v17 = vrot.slane %v964_v16, 4  ;;  %v969_v19 = vrot.slane %v967_v18, 5  ;;  %v1141_v46 = vshll.u32 %v4854_v9, 16  ;;  %v1147_v32 = vrot.slane %v1145_v55, 4 }
  0x7c   : > { %2261 = vrot.lane.b32.xlu0 %v3879_v45, %s4373_s24  ;;  %v1139_v33 = vrot.slane %v1138_v29, 4  ;;  %v1151_v27 = vshll.u32 %v4904_v22, 16  ;;  %v946_v36 = vor.u32 %v945_v6, %v942_v4  ;;  %v949_v41 = vshll.u32 %v4872_v56, 16 }
  0x7d   : > { %2371 = vrot.lane.b32.xlu1 %v3902_v60, %s4372_s23  ;;  %v1143_v1 = vrot.slane %v1141_v46, 5  ;;  %v955_v35 = vrot.slane %v953_v39, 4  ;;  %v959_v51 = vshll.u32 %v4909_v42, 16  ;;  %v1162_v53 = vor.u32 %v1161_v25, %v1158_v23 }
  0x7e   : > { %v1153_v54 = vrot.slane %v1151_v27, 5  ;;  %v947_v28 = vrot.slane %v946_v36, 4  ;;  %v951_v57 = vrot.slane %v949_v41, 5  ;;  %v1165_v44 = vshll.u32 %v4882_v61, 16  ;;  %v4962_v41 = vld [vmem:[%s4429_s22 + $0x90] sm:$0xf] }
  0x7f   : > { %v1144_v47 = vsel %vm4518_vm5, %v1139_v33, %v1143_v1  ;;  %v1148_v49 = vor.u32 %v1147_v32, %v1143_v1  ;;  %v961_v7 = vrot.slane %v959_v51, 5  ;;  %v1163_v37 = vrot.slane %v1162_v53, 4  ;;  %v4969_v53 = vld [vmem:[%s4429_s22 + $0x94] sm:$0xf] }
  0x80   : > { %2355 = vrot.lane.b32.xlu0 %v3894_v5, %s4372_s23  ;;  %v952_v48 = vsel %vm4518_vm5, %v947_v28, %v951_v57  ;;  %v956_v52 = vor.u32 %v955_v35, %v951_v57  ;;  %v1167_v34 = vrot.slane %v1165_v44, 5  ;;  %v1171_v43 = vrot.slane %v1169_v14, 4  ;;  %v3734_v5 = vld [vmem:[%s4429_s22 + $0x24] sm:$0xe]  ;;  %v4976_v44 = vld [vmem:[%s4429_s22 + $0x30] sm:$0xf] }
  0x81   : > { %2373 = vrot.lane.b32.xlu1 %v3903_v15, %s4372_s23  ;;  %v1149_v31 = vrot.slane %v1148_v49, 4  ;;  %v1175_v3 = vshll.u32 %v4918_v24, 16  ;;  %v970_v10 = vor.u32 %v969_v19, %v966_v17  ;;  %v973_v55 = vshll.u32 %v4891_v38, 16  ;;  %v3743_v15 = vld [vmem:[%s4429_s22 + $0x90] sm:$0xe] }
  0x82   : > { %v957_v58 = vrot.slane %v956_v52, 4  ;;  %v1168_v59 = vsel %vm4518_vm5, %v1163_v37, %v1167_v34  ;;  %v1172_v60 = vor.u32 %v1171_v43, %v1167_v34  ;;  %v979_v40 = vrot.slane %v977_v20, 4  ;;  %v3735_v19 = vld [vmem:[%s4429_s22 + $0x30] sm:$0xe]  ;;  %v4983_v37 = vld [vmem:[%s4429_s22 + $0x34] sm:$0xf] }
  0x83   : > { %v1154_v62 = vsel %vm4518_vm5, %v1149_v31, %v1153_v54  ;;  %v1177_v63 = vrot.slane %v1175_v3, 5  ;;  %v971_v12 = vrot.slane %v970_v10, 4  ;;  %v975_v0 = vrot.slane %v973_v55, 5 }
  0x84   : > { %2357 = vrot.lane.b32.xlu0 %v3895_v26, %s4372_s23  ;;  %v3918_v2 = vcombine.low %v1144_v47, %v1154_v62  ;;  %v962_v45 = vsel %vm4518_vm5, %v957_v58, %v961_v7  ;;  %v1173_v4 = vrot.slane %v1172_v60, 4  ;;  %v983_v39 = vshll.u32 %v4929_v50, 16  ;;  %v5000_v58 = vld [vmem:[%s4429_s22 + $0xa0] sm:$0xf]  ;;  %v5006_v62 = vld [vmem:[%s4429_s22 + $0x3c] sm:$0xf] }
  0x85   : > { %v3910_v6 = vcombine.low %v952_v48, %v962_v45  ;;  %v976_v8 = vsel %vm4518_vm5, %v971_v12, %v975_v0  ;;  %v980_v11 = vor.u32 %v979_v40, %v975_v0  ;;  %v3758_v14 = vrot.slane %v3742_v13, 9  ;;  %v5016_v45 = vld [vmem:[%s4429_s22 + $0x40] sm:$0xf] }
  0x86   : > { %2451 = vrot.lane.b32.xlu1 %v3918_v2, %s4375_s26  ;;  %v1178_v16 = vsel %vm4518_vm5, %v1173_v4, %v1177_v63  ;;  %v985_v18 = vrot.slane %v983_v39, 5  ;;  %v1411_v20 = vrot.slane %v4854_v9, 5  ;;  %v1414_v23 = vrot.slane %v4904_v22, 5 }
  0x87   : > { %v3919_v25 = vcombine.low %v1168_v59, %v1178_v16  ;;  %v981_v26 = vrot.slane %v980_v11, 4  ;;  %v3750_v29 = vrot.slane %v3734_v5, 9  ;;  %v1355_v17 = vrot.slane %v4872_v56, 5  ;;  %v4985_v48 = vpop.permute.xlu1 %2367 }
  0x88   : > { %2435 = vrot.lane.b32.xlu0 %v3910_v6, %s4375_s26  ;;  %v1412_v46 = vsel %vm4460_vm2, %v3758_v14, %v1411_v20  ;;  %v1413_v32 = vrot.slane %v1411_v20, 4  ;;  %v1358_v33 = vrot.slane %v4909_v42, 5  ;;  %v3759_v27 = vrot.slane %v3743_v15, 9 }
  0x89   : > { %v986_v9 = vsel %vm4518_vm5, %v981_v26, %v985_v18  ;;  %v1356_v22 = vsel %vm4460_vm2, %v3750_v29, %v1355_v17  ;;  %v1357_v36 = vrot.slane %v1355_v17, 4  ;;  %v1418_v56 = vrot.slane %v4882_v61, 5  ;;  %v5022_v11 = vpop.permute.xlu0 %2351  ;;  %v5035_v17 = vld [vmem:[%s4429_s22 + $0x38] sm:$0x1] }
  0x8a   : > { %2453 = vrot.lane.b32.xlu1 %v3919_v25, %s4375_s26  ;;  %v3911_v1 = vcombine.low %v976_v8, %v986_v9  ;;  %v1415_v42 = vsel %vm4460_vm2, %v1413_v32, %v1414_v23  ;;  %v1421_v35 = vrot.slane %v4918_v24, 5  ;;  %v3751_v51 = vrot.slane %v3735_v19, 9  ;;  %v5020_v8 = vld [vmem:[%s4429_s22 + $0x98] sm:$0x1] }
  0x8b   : > { %v3934_v54 = vcombine.low %v1412_v46, %v1415_v42  ;;  %v1359_v28 = vsel %vm4460_vm2, %v1357_v36, %v1358_v33  ;;  %v1419_v61 = vsel %vm4460_vm2, %v3759_v27, %v1418_v56  ;;  %v1420_v57 = vrot.slane %v1418_v56, 4 }
  0x8c   : > { %2437 = vrot.lane.b32.xlu0 %v3911_v1, %s4375_s26  ;;  %v3926_v47 = vcombine.low %v1356_v22, %v1359_v28  ;;  %v1362_v24 = vrot.slane %v4891_v38, 5  ;;  %v1365_v49 = vrot.slane %v4929_v50, 5  ;;  %v1744_v7 = vshrl.u32 %v4962_v41, 16  ;;  %v4994_v38 = vld [vmem:[%s4429_s22 + $0x9c] sm:$0xf] }
  0x8d   : > { %v1422_v52 = vsel %vm4460_vm2, %v1420_v57, %v1421_v35  ;;  %v1747_v34 = vshll.u32 %v4962_v41, 16  ;;  %v1757_v43 = vshrl.u32 %v4969_v53, 16  ;;  %v3950_v31 = vcombine.low %v4962_v41, %v4969_v53 }
  0x8e   : > { %2531 = vrot.lane.b32.xlu1 %v3934_v54, %s4376_s27  ;;  %v3935_v3 = vcombine.low %v1419_v61, %v1422_v52  ;;  %v1363_v50 = vsel %vm4460_vm2, %v3751_v51, %v1362_v24  ;;  %v1364_v10 = vrot.slane %v1362_v24, 4  ;;  %v1746_v55 = vrot.slane %v1744_v7, 4  ;;  %v5044_v54 = vld [vmem:[%s4429_s22 + $0xa4] sm:$0x1] }
  0x8f   : > { %v1749_v59 = vrot.slane %v1747_v34, 5  ;;  %v1552_v60 = vshrl.u32 %v4976_v44, 16  ;;  %v1555_v40 = vshll.u32 %v4976_v44, 16  ;;  %v1565_v13 = vshrl.u32 %v4983_v37, 16  ;;  %v5028_v20 = vpop.permute.xlu1 %2271 }
  0x90   : > { %2515 = vrot.lane.b32.xlu0 %v3926_v47, %s4376_s27  ;;  %v1366_v63 = vsel %vm4460_vm2, %v1364_v10, %v1365_v49  ;;  %v3942_v12 = vcombine.low %v4976_v44, %v4983_v37  ;;  %v1768_v0 = vshrl.u32 %v4994_v38, 16  ;;  %v1771_v2 = vshll.u32 %v4994_v38, 16 }
  0x91   : > { %v3927_v4 = vcombine.low %v1363_v50, %v1366_v63  ;;  %v1554_v39 = vrot.slane %v1552_v60, 4  ;;  %v1557_v5 = vrot.slane %v1555_v40, 5  ;;  %v1781_v6 = vshrl.u32 %v5000_v58, 16  ;;  %v5047_v57 = vpop.permute.xlu0 %2255  ;;  %v5059_v50 = vld [vmem:[%s4429_s22 + $0x44] sm:$0x1] }
  0x92   : > { %2533 = vrot.lane.b32.xlu1 %v3935_v3, %s4376_s27  ;;  %v1770_v14 = vrot.slane %v1768_v0, 4  ;;  %v1773_v15 = vrot.slane %v1771_v2, 5  ;;  %v3951_v16 = vcombine.low %v4994_v38, %v5000_v58  ;;  %v1576_v18 = vshrl.u32 %v5006_v62, 16 }
  0x93   : > { %v1579_v23 = vshll.u32 %v5006_v62, 16  ;;  %v1589_v25 = vshrl.u32 %v5016_v45, 16  ;;  %v3943_v26 = vcombine.low %v5006_v62, %v5016_v45  ;;  %v1750_v29 = vor.u32 %v1749_v59, %v1746_v55  ;;  %v5052_v7 = vpop.permute.xlu1 %2273  ;;  %v3822_v62 = vld [vmem:[%s4429_s22 + $0x90] sm:$0xe] }
  0x94   : > { %2517 = vrot.lane.b32.xlu0 %v3927_v4, %s4376_s27  ;;  %v1578_v19 = vrot.slane %v1576_v18, 4  ;;  %v1753_v46 = vshll.u32 %v4969_v53, 16  ;;  %v1759_v32 = vrot.slane %v1757_v43, 4  ;;  %v1763_v33 = vshll.u32 %v5020_v8, 16 }
  0x95   : > { %v1581_v27 = vrot.slane %v1579_v23, 5  ;;  %v1751_v9 = vrot.slane %v1750_v29, 4  ;;  %v1558_v22 = vor.u32 %v1557_v5, %v1554_v39  ;;  %v1561_v36 = vshll.u32 %v4983_v37, 16 }
  0x96   : > { %2627 = vrot.lane.b32.xlu1 %v3950_v31, %s4377_s28  ;;  %v1755_v56 = vrot.slane %v1753_v46, 5  ;;  %v1765_v41 = vrot.slane %v1763_v33, 5  ;;  %v1567_v1 = vrot.slane %v1565_v13, 4  ;;  %v1571_v42 = vshll.u32 %v5035_v17, 16 }
  0x97   : > { %v1559_v35 = vrot.slane %v1558_v22, 4  ;;  %v1563_v51 = vrot.slane %v1561_v36, 5  ;;  %v1774_v28 = vor.u32 %v1773_v15, %v1770_v14  ;;  %v1777_v61 = vshll.u32 %v5000_v58, 16  ;;  %v3814_v14 = vld [vmem:[%s4429_s22 + $0x30] sm:$0xe]  ;;  %v5072_v15 = vpop.permute.xlu0 %2257 }
  0x98   : > { %2611 = vrot.lane.b32.xlu0 %v3942_v12, %s4377_s28  ;;  %v1756_v44 = vsel %vm4518_vm5, %v1751_v9, %v1755_v56  ;;  %v1760_v47 = vor.u32 %v1759_v32, %v1755_v56  ;;  %v1573_v24 = vrot.slane %v1571_v42, 5  ;;  %v1783_v49 = vrot.slane %v1781_v6, 4  ;;  %v5087_v56 = vld [vmem:[%s4429_s22 + $0x94] sm:$0xf] }
  0x99   : > { %v1564_v52 = vsel %vm4518_vm5, %v1559_v35, %v1563_v51  ;;  %v1568_v34 = vor.u32 %v1567_v1, %v1563_v51  ;;  %v1775_v43 = vrot.slane %v1774_v28, 4  ;;  %v1779_v31 = vrot.slane %v1777_v61, 5  ;;  %v5097_v28 = vld [vmem:[%s4429_s22 + $0x98] sm:$0x1]  ;;  %v233_v61 = vld [vmem:[%s4429_s22 + $0x30] sm:$0xf] }
  0x9a   : > { %2629 = vrot.lane.b32.xlu1 %v3951_v16, %s4377_s28  ;;  %v1761_v38 = vrot.slane %v1760_v47, 4  ;;  %v1787_v3 = vshll.u32 %v5044_v54, 16  ;;  %v1582_v10 = vor.u32 %v1581_v27, %v1578_v19  ;;  %v1585_v55 = vshll.u32 %v5016_v45, 16 }
  0x9b   : > { %v1569_v59 = vrot.slane %v1568_v34, 4  ;;  %v1780_v60 = vsel %vm4518_vm5, %v1775_v43, %v1779_v31  ;;  %v1784_v40 = vor.u32 %v1783_v49, %v1779_v31  ;;  %v1591_v13 = vrot.slane %v1589_v25, 4  ;;  %v5105_v49 = vld [vmem:[%s4429_s22 + $0x34] sm:$0xf] }
  0x9c   : > { %2613 = vrot.lane.b32.xlu0 %v3943_v26, %s4377_s28  ;;  %v1766_v63 = vsel %vm4518_vm5, %v1761_v38, %v1765_v41  ;;  %v1789_v12 = vrot.slane %v1787_v3, 5  ;;  %v1583_v0 = vrot.slane %v1582_v10, 4  ;;  %v1587_v2 = vrot.slane %v1585_v55, 5  ;;  %v249_v26 = vld [vmem:[%s4429_s22 + $0x90] sm:$0xf]  ;;  %v5077_v29 = vpop.permute.xlu1 %2177 }
  0x9d   : > { %v3966_v4 = vcombine.low %v1756_v44, %v1766_v63  ;;  %v1574_v39 = vsel %vm4518_vm5, %v1569_v59, %v1573_v24  ;;  %v1785_v5 = vrot.slane %v1784_v40, 4  ;;  %v1595_v6 = vshll.u32 %v5059_v50, 16  ;;  %v5111_v3 = vld [vmem:[%s4429_s22 + $0x38] sm:$0x1] }
  0x9e   : > { %v3958_v16 = vcombine.low %v1564_v52, %v1574_v39  ;;  %v1588_v18 = vsel %vm4518_vm5, %v1583_v0, %v1587_v2  ;;  %v1592_v23 = vor.u32 %v1591_v13, %v1587_v2  ;;  %v3838_v25 = vrot.slane %v3822_v62, 9 }
  0x9f   : > { %2707 = vrot.lane.b32.xlu1 %v3966_v4, %s4378_s29  ;;  %v1790_v19 = vsel %vm4518_vm5, %v1785_v5, %v1789_v12  ;;  %v1597_v46 = vrot.slane %v1595_v6, 5  ;;  %v2023_v32 = vrot.slane %v4969_v53, 5  ;;  %v2026_v33 = vrot.slane %v5020_v8, 5 }
  0xa0   : > { %2691 = vrot.lane.b32.xlu0 %v3958_v16, %s4378_s29  ;;  %v3967_v27 = vcombine.low %v1780_v60, %v1790_v19  ;;  %v1593_v9 = vrot.slane %v1592_v23, 4  ;;  %v3830_v22 = vrot.slane %v3814_v14, 9  ;;  %v1967_v36 = vrot.slane %v4983_v37, 5  ;;  %v2176_v52 = vpop.permute.xlu0 %2175 }
  0xa1   : > { %v2024_v41 = vsel %vm4460_vm2, %v3838_v25, %v2023_v32  ;;  %v2025_v1 = vrot.slane %v2023_v32, 4  ;;  %v1970_v42 = vrot.slane %v5035_v17, 5  ;;  %v565_v53 = vshrl.u32 %v249_v26, 16 }
  0xa2   : > { %v1598_v8 = vsel %vm4518_vm5, %v1593_v9, %v1597_v46  ;;  %v1968_v35 = vsel %vm4460_vm2, %v3830_v22, %v1967_v36  ;;  %v1969_v51 = vrot.slane %v1967_v36, 4  ;;  %v568_v37 = vshll.u32 %v249_v26, 16 }
  0xa3   : > { %2709 = vrot.lane.b32.xlu1 %v3967_v27, %s4378_s29  ;;  %v3959_v44 = vcombine.low %v1588_v18, %v1598_v8  ;;  %v2027_v47 = vsel %vm4460_vm2, %v2025_v1, %v2026_v33  ;;  %v567_v17 = vrot.slane %v565_v53, 4  ;;  %v574_v24 = vshll.u32 %v5087_v56, 16  ;;  %v3823_v18 = vld [vmem:[%s4429_s22 + $0x9c] sm:$0xe]  ;;  %v4320_v33 = vld [vmem:[%s4429_s22 + $0x4] sm:$0xf] }
  0xa4   : > { %v3982_v34 = vcombine.low %v2024_v41, %v2027_v47  ;;  %v1971_v43 = vsel %vm4460_vm2, %v1969_v51, %v1970_v42  ;;  %v570_v31 = vrot.slane %v568_v37, 5  ;;  %v578_v38 = vshrl.u32 %v5087_v56, 16  ;;  %v5113_v10 = vpop.permute.xlu1 %2193  ;;  %v4321_v27 = vld [vmem:[%s4429_s22] sm:$0xf]  ;;  %v4322_v41 = vld [vmem:[%s4429_s22 + $0x10] sm:$0xf] }
  0xa5   : > { %2693 = vrot.lane.b32.xlu0 %v3959_v44, %s4378_s29  ;;  %v3974_v55 = vcombine.low %v1968_v35, %v1971_v43  ;;  %v576_v59 = vrot.slane %v574_v24, 5  ;;  %v584_v60 = vshll.u32 %v5097_v28, 16  ;;  %v373_v40 = vshrl.u32 %v233_v61, 16  ;;  %v4323_v1 = vld [vmem:[%s4429_s22 + $0xc] sm:$0xf] }
  0xa6   : > { %v571_v13 = vor.u32 %v570_v31, %v567_v17  ;;  %v580_v62 = vrot.slane %v578_v38, 4  ;;  %v376_v63 = vshll.u32 %v233_v61, 16  ;;  %v382_v12 = vshll.u32 %v5105_v49, 16  ;;  %v3815_v8 = vld [vmem:[%s4429_s22 + $0x3c] sm:$0xe] }
  0xa7   : > { %2787 = vrot.lane.b32.xlu1 %v3982_v34, %s4379_s30  ;;  %v586_v0 = vrot.slane %v584_v60, 5  ;;  %v375_v2 = vrot.slane %v373_v40, 4  ;;  %v386_v4 = vshrl.u32 %v5105_v49, 16  ;;  %v392_v39 = vshll.u32 %v5111_v3, 16  ;;  %v251_v24 = vld [vmem:[%s4429_s22 + $0x9c] sm:$0xf] }
  0xa8   : > { %v572_v5 = vrot.slane %v571_v13, 4  ;;  %v581_v6 = vor.u32 %v580_v62, %v576_v59  ;;  %v378_v14 = vrot.slane %v376_v63, 5  ;;  %v384_v16 = vrot.slane %v382_v12, 5  ;;  %v5122_v23 = vpop.permute.xlu1 %2369  ;;  %v4324_v60 = vld [vmem:[%s4429_s22 + $0x70] sm:$0xf] }
  0xa9   : > { %2771 = vrot.lane.b32.xlu0 %v3974_v55, %s4379_s30  ;;  %v388_v25 = vrot.slane %v386_v4, 4  ;;  %v5125_v26 = vpop.permute.xlu0 %2191  ;;  %v3844_v9 = vcombine.low %v4321_v27, %v4320_v33  ;;  %v394_v36 = vrot.slane %v392_v39, 5  ;;  %v3845_v42 = vcombine.low %v4323_v1, %v4322_v41  ;;  %v4325_v40 = vld [vmem:[%s4429_s22 + $0x6c] sm:$0xf]  ;;  %v5156_v62 = vld [vmem:[%s4429_s22 + $0xa0] sm:$0xf] }
  0xaa   : > { %v577_v19 = vsel %vm4518_vm5, %v572_v5, %v576_v59  ;;  %v582_v46 = vrot.slane %v581_v6, 4  ;;  %v379_v32 = vor.u32 %v378_v14, %v375_v2  ;;  %v3839_v53 = vrot.slane %v3823_v18, 9  ;;  %v5165_v2 = vld [vmem:[%s4429_s22 + $0xa4] sm:$0x1]  ;;  %v4327_v6 = vld [vmem:[%s4429_s22 + $0x60] sm:$0xf] }
  0xab   : > { %v389_v22 = vor.u32 %v388_v25, %v384_v16  ;;  %v2030_v37 = vrot.slane %v5000_v58, 5  ;;  %v2802_v47 = vsel %vm2799_vm6, %v3844_v9, %v2176_v52  ;;  %v2033_v17 = vrot.slane %v5044_v54, 5  ;;  %v4326_v5 = vld [vmem:[%s4429_s22 + $0x64] sm:$0xf] }
  0xac   : > { %v587_v35 = vsel %vm4518_vm5, %v582_v46, %v586_v0  ;;  %v380_v51 = vrot.slane %v379_v32, 4  ;;  %v5142_v43 = vpop.permute.xlu1 %2447  ;;  %v3831_v55 = vrot.slane %v3815_v8, 9  ;;  %v1974_v52 = vrot.slane %v5016_v45, 5  ;;  %v5181_v32 = vld [vmem:[%s4429_s22 + $0x40] sm:$0xf] }
  0xad   : > { %v3872_v61 = vcombine.low %v577_v19, %v587_v35  ;;  %v390_v44 = vrot.slane %v389_v22, 4  ;;  %v5140_v34 = vpop.permute.xlu0 %2353  ;;  %v2031_v58 = vsel %vm4460_vm2, %v3839_v53, %v2030_v37  ;;  %v2032_v38 = vrot.slane %v2030_v37, 4 }
  0xae   : > { %v385_v31 = vsel %vm4518_vm5, %v380_v51, %v384_v16  ;;  %v1977_v59 = vrot.slane %v5059_v50, 5  ;;  %v3853_v13 = vcombine.low %v4325_v40, %v4324_v60  ;;  %v5160_v12 = vsel %vm2799_vm6, %v3845_v42, %v5077_v29  ;;  %v235_v16 = vld [vmem:[%s4429_s22 + $0x3c] sm:$0xf] }
  0xaf   : > { %2199 = vrot.lane.b32.xlu1 %v3872_v61, %s4374_s25  ;;  %v395_v54 = vsel %vm4518_vm5, %v390_v44, %v394_v36  ;;  %v2034_v0 = vsel %vm4460_vm2, %v2032_v38, %v2033_v17  ;;  %v589_v45 = vshrl.u32 %v251_v24, 16  ;;  %v1975_v50 = vsel %vm4460_vm2, %v3831_v55, %v1974_v52 }
  0xb0   : > { %v3864_v63 = vcombine.low %v385_v31, %v395_v54  ;;  %v3983_v4 = vcombine.low %v2031_v58, %v2034_v0  ;;  %v1976_v39 = vrot.slane %v1974_v52, 4  ;;  %v3852_v14 = vcombine.low %v4327_v6, %v4326_v5  ;;  %v664_v0 = vld [vmem:[%s4429_s22 + $0x30] sm:$0xe] }
  0xb1   : > { %v5172_v18 = vpop.permute.xlu0 %2431  ;;  %v5177_v29 = vsel %vm2848_vm7, %v2802_v47, %v5047_v57  ;;  %v591_v25 = vrot.slane %v589_v45, 4  ;;  %v592_v19 = vshll.u32 %v251_v24, 16  ;;  %v598_v46 = vshll.u32 %v5156_v62, 16  ;;  %v5191_v57 = vld [vmem:[%s4429_s22 + $0x44] sm:$0x1] }
  0xb2   : > { %2183 = vrot.lane.b32.xlu0 %v3864_v63, %s4374_s25  ;;  %v1978_v33 = vsel %vm4460_vm2, %v1976_v39, %v1977_v59  ;;  %v2829_v27 = vsel %vm2799_vm6, %v3853_v13, %v5113_v10  ;;  %v602_v9 = vshrl.u32 %v5156_v62, 16  ;;  %v608_v22 = vshll.u32 %v5165_v2, 16 }
  0xb3   : > { %2789 = vrot.lane.b32.xlu1 %v3983_v4, %s4379_s30  ;;  %v5193_v36 = vpop.permute.xlu1 %2449  ;;  %v3975_v41 = vcombine.low %v1975_v50, %v1978_v33  ;;  %v594_v1 = vrot.slane %v592_v19, 5  ;;  %v600_v42 = vrot.slane %v598_v46, 5  ;;  %v397_v53 = vshrl.u32 %v235_v16, 16 }
  0xb4   : > { %v2826_v8 = vsel %vm2799_vm6, %v3852_v14, %v5125_v26  ;;  %v604_v35 = vrot.slane %v602_v9, 4  ;;  %v400_v51 = vshll.u32 %v235_v16, 16  ;;  %v406_v10 = vshll.u32 %v5181_v32, 16  ;;  %v672_v26 = vld [vmem:[%s4429_s22 + $0x90] sm:$0xe] }
  0xb5   : > { %v5198_v37 = vpop.permute.xlu0 %2433  ;;  %v595_v61 = vor.u32 %v594_v1, %v591_v25  ;;  %v399_v44 = vrot.slane %v397_v53, 4  ;;  %v410_v47 = vshrl.u32 %v5181_v32, 16  ;;  %v416_v17 = vshll.u32 %v5191_v57, 16 }
  0xb6   : > { %2773 = vrot.lane.b32.xlu0 %v3975_v41, %s4379_s30  ;;  %v605_v24 = vor.u32 %v604_v35, %v600_v42  ;;  %v610_v31 = vrot.slane %v608_v22, 5  ;;  %v402_v58 = vrot.slane %v400_v51, 5  ;;  %v408_v38 = vrot.slane %v406_v10, 5  ;;  %v665_v35 = vld [vmem:[%s4429_s22 + $0x3c] sm:$0xe] }
  0xb7   : > { %v5204_v55 = vpop.permute.xlu1 %2527  ;;  %v2866_v54 = vsel %vm2848_vm7, %v2826_v8, %v5028_v20  ;;  %v596_v52 = vrot.slane %v595_v61, 4  ;;  %v412_v59 = vrot.slane %v410_v47, 4  ;;  %v2868_v60 = vsel %vm2848_vm7, %v2829_v27, %v5052_v7 }
  0xb8   : > { %v606_v40 = vrot.slane %v605_v24, 4  ;;  %v403_v13 = vor.u32 %v402_v58, %v399_v44  ;;  %v418_v63 = vrot.slane %v416_v17, 5  ;;  %v2901_v39 = vsel %vm2881_vm8, %v2868_v60, %v5122_v23 }
  0xb9   : > { %v5211_v45 = vpop.permute.xlu0 %2511  ;;  %v601_v4 = vsel %vm4518_vm5, %v596_v52, %v600_v42  ;;  %v413_v50 = vor.u32 %v412_v59, %v408_v38  ;;  %v3680_v20 = vrot.slane %v672_v26, 9  ;;  %v813_v7 = vrot.slane %v5087_v56, 5  ;;  %v673_v42 = vld [vmem:[%s4429_s22 + $0x9c] sm:$0xe] }
  0xba   : > { %v611_v5 = vsel %vm4518_vm5, %v606_v40, %v610_v31  ;;  %v404_v6 = vrot.slane %v403_v13, 4  ;;  %v816_v14 = vrot.slane %v5097_v28, 5  ;;  %v3672_v46 = vrot.slane %v664_v0, 9  ;;  %v5261_v31 = vld [vmem:[%s4429_s22 + $0xa0] sm:$0xf] }
  0xbb   : > { %v5221_v16 = vpop.permute.xlu1 %2529  ;;  %v3873_v25 = vcombine.low %v601_v4, %v611_v5  ;;  %v414_v19 = vrot.slane %v413_v50, 4  ;;  %v757_v33 = vrot.slane %v5105_v49, 5  ;;  %v814_v27 = vsel %vm4460_vm2, %v3680_v20, %v813_v7  ;;  %v3692_v26 = vld [vmem:[%s4429_s22 + $0x3c] sm:$0xf]  ;;  %v3710_v4 = vld [vmem:[%s4429_s22 + $0xa8] sm:$0xf] }
  0xbc   : > { %v409_v23 = vsel %vm4518_vm5, %v404_v6, %v408_v38  ;;  %v815_v9 = vrot.slane %v813_v7, 4  ;;  %v760_v56 = vrot.slane %v5111_v3, 5  ;;  %v2852_v49 = vsel %vm2848_vm7, %v5160_v12, %v5072_v15 }
  0xbd   : > { %v5229_v22 = vpop.permute.xlu0 %2513  ;;  %2201 = vrot.lane.b32.xlu1 %v3873_v25, %s4374_s25  ;;  %v419_v28 = vsel %vm4518_vm5, %v414_v19, %v418_v63  ;;  %v758_v41 = vsel %vm4460_vm2, %v3672_v46, %v757_v33  ;;  %v759_v1 = vrot.slane %v757_v33, 4  ;;  %v2885_v3 = vsel %vm2881_vm8, %v2852_v49, %v5140_v34  ;;  %v5255_v34 = vld [vmem:[%s4429_s22 + $0x9c] sm:$0xf]  ;;  %v5290_v63 = vld [vmem:[%s4429_s22 + $0x40] sm:$0xf] }
  0xbe   : > { %v3865_v53 = vcombine.low %v409_v23, %v419_v28  ;;  %v817_v8 = vsel %vm4460_vm2, %v815_v9, %v816_v14  ;;  %v2899_v12 = vsel %vm2881_vm8, %v2866_v54, %v4985_v48  ;;  %v2883_v61 = vsel %vm2881_vm8, %v5177_v29, %v5022_v11  ;;  %v5300_v25 = vld [vmem:[%s4429_s22 + $0xac] sm:$0xf]  ;;  %v3694_v19 = vld [vmem:[%s4429_s22 + $0x48] sm:$0xf] }
  0xbf   : > { %v5245_v51 = vpop.permute.xlu1 %2623  ;;  %v3888_v10 = vcombine.low %v814_v27, %v817_v8  ;;  %v761_v15 = vsel %vm4460_vm2, %v759_v1, %v760_v56  ;;  %v3681_v47 = vrot.slane %v673_v42, 9  ;;  %v820_v17 = vrot.slane %v5156_v62, 5  ;;  %v5308_v9 = vld [vmem:[%s4429_s22 + $0x4c] sm:$0xf] }
  0xc0   : > { %2185 = vrot.lane.b32.xlu0 %v3865_v53, %s4374_s25  ;;  %v3880_v44 = vcombine.low %v758_v41, %v761_v15  ;;  %v823_v24 = vrot.slane %v5165_v2, 5  ;;  %v2932_v48 = vsel %vm2914_vm9, %v2899_v12, %v5142_v43  ;;  %v3673_v11 = vrot.slane %v665_v35, 9  ;;  %v5323_v35 = vld [vmem:[%s4429_s22 + $0xa4] sm:$0x1] }
  0xc1   : > { %v5263_v58 = vpop.permute.xlu0 %2607  ;;  %2279 = vrot.lane.b32.xlu1 %v3888_v10, %s4373_s24  ;;  %v764_v29 = vrot.slane %v5181_v32, 5  ;;  %v767_v38 = vrot.slane %v5191_v57, 5  ;;  %v2916_v62 = vsel %vm2914_vm9, %v2883_v61, %v5172_v18  ;;  %v821_v2 = vsel %vm4460_vm2, %v3681_v47, %v820_v17  ;;  %v5328_v61 = vld [vmem:[%s4429_s22 + $0x44] sm:$0x1] }
  0xc2   : > { %v822_v54 = vrot.slane %v820_v17, 4  ;;  %v1180_v52 = vshrl.u32 %v5255_v34, 16  ;;  %v2934_v57 = vsel %vm2914_vm9, %v2901_v39, %v5193_v36  ;;  %v1183_v60 = vshll.u32 %v5255_v34, 16 }
  0xc3   : > { %v5276_v59 = vpop.permute.xlu1 %2625  ;;  %v765_v43 = vsel %vm4460_vm2, %v3673_v11, %v764_v29  ;;  %v766_v32 = vrot.slane %v764_v29, 4  ;;  %v2918_v40 = vsel %vm2914_vm9, %v2885_v3, %v5198_v37  ;;  %v1193_v13 = vshrl.u32 %v5261_v31, 16 }
  0xc4   : > { %2263 = vrot.lane.b32.xlu0 %v3880_v44, %s4373_s24  ;;  %v824_v18 = vsel %vm4460_vm2, %v822_v54, %v823_v24  ;;  %v988_v0 = vshrl.u32 %v3692_v26, 16  ;;  %v1182_v20 = vrot.slane %v1180_v52, 4  ;;  %v991_v5 = vshll.u32 %v3692_v26, 16 }
  0xc5   : > { %v5293_v50 = vpop.permute.xlu0 %2609  ;;  %v3889_v36 = vcombine.low %v821_v2, %v824_v18  ;;  %v768_v39 = vsel %vm4460_vm2, %v766_v32, %v767_v38  ;;  %v1185_v7 = vrot.slane %v1183_v60, 5  ;;  %v3904_v37 = vcombine.low %v5255_v34, %v5261_v31  ;;  %v5349_v32 = vld [vmem:[%s4429_s22 + $0xb0] sm:$0x1] }
  0xc6   : > { %v3881_v6 = vcombine.low %v765_v43, %v768_v39  ;;  %v990_v14 = vrot.slane %v988_v0, 4  ;;  %v1001_v33 = vshrl.u32 %v5290_v63, 16  ;;  %v1204_v23 = vshrl.u32 %v3710_v4, 16 }
  0xc7   : > { %v5303_v46 = vpop.permute.xlu1 %2703  ;;  %2281 = vrot.lane.b32.xlu1 %v3889_v36, %s4373_s24  ;;  %v1207_v27 = vshll.u32 %v3710_v4, 16  ;;  %v993_v56 = vrot.slane %v991_v5, 5  ;;  %v3896_v28 = vcombine.low %v3692_v26, %v5290_v63  ;;  %v2965_v49 = vsel %vm2947_vm10, %v2932_v48, %v5204_v55 }
  0xc8   : > { %2265 = vrot.lane.b32.xlu0 %v3881_v6, %s4373_s24  ;;  %v5316_v41 = vsel %vm2947_vm10, %v2916_v62, %v5211_v45  ;;  %v1206_v42 = vrot.slane %v1204_v23, 4  ;;  %v1217_v3 = vshrl.u32 %v5300_v25, 16  ;;  %v3905_v8 = vcombine.low %v3710_v4, %v5300_v25 }
  0xc9   : > { %v5318_v1 = vpop.permute.xlu0 %2687  ;;  %v1209_v53 = vrot.slane %v1207_v27, 5  ;;  %v1012_v10 = vshrl.u32 %v3694_v19, 16  ;;  %v1015_v15 = vshll.u32 %v3694_v19, 16  ;;  %v1025_v12 = vshrl.u32 %v5308_v9, 16 }
  0xca   : > { %v3897_v55 = vcombine.low %v3694_v19, %v5308_v9  ;;  %v5335_v34 = vsel %vm2947_vm10, %v2934_v57, %v5221_v16  ;;  %v5339_v44 = vsel %vm2947_vm10, %v2918_v40, %v5229_v22  ;;  %v1186_v47 = vor.u32 %v1185_v7, %v1182_v20 }
  0xcb   : > { %v5330_v45 = vpop.permute.xlu1 %2705  ;;  %2375 = vrot.lane.b32.xlu1 %v3904_v37, %s4372_s23  ;;  %v1189_v17 = vshll.u32 %v5261_v31, 16  ;;  %v1195_v24 = vrot.slane %v1193_v13, 4  ;;  %v1199_v48 = vshll.u32 %v5323_v35, 16  ;;  %v994_v11 = vor.u32 %v993_v56, %v990_v14  ;;  %v5362_v14 = vld [vmem:[%s4429_s22 + $0x50] sm:$0x1] }
  0xcc   : > { %2359 = vrot.lane.b32.xlu0 %v3896_v28, %s4372_s23  ;;  %v997_v29 = vshll.u32 %v5290_v63, 16  ;;  %v1187_v38 = vrot.slane %v1186_v47, 4  ;;  %v1003_v16 = vrot.slane %v1001_v33, 4  ;;  %v1007_v62 = vshll.u32 %v5328_v61, 16 }
  0xcd   : > { %v1191_v26 = vrot.slane %v1189_v17, 5  ;;  %v5346_v2 = vpop.permute.xlu0 %2689  ;;  %v1014_v22 = vrot.slane %v1012_v10, 4  ;;  %v1017_v54 = vrot.slane %v1015_v15, 5  ;;  %v995_v52 = vrot.slane %v994_v11, 4  ;;  %v3744_v15 = vld [vmem:[%s4429_s22 + $0x9c] sm:$0xe] }
  0xce   : > { %v999_v43 = vrot.slane %v997_v29, 5  ;;  %v1201_v18 = vrot.slane %v1199_v48, 5  ;;  %v1009_v0 = vrot.slane %v1007_v62, 5  ;;  %v1210_v4 = vor.u32 %v1209_v53, %v1206_v42  ;;  %v3736_v48 = vld [vmem:[%s4429_s22 + $0x3c] sm:$0xe] }
  0xcf   : > { %2377 = vrot.lane.b32.xlu1 %v3905_v8, %s4372_s23  ;;  %v1192_v57 = vsel %vm4518_vm5, %v1187_v38, %v1191_v26  ;;  %v1196_v60 = vor.u32 %v1195_v24, %v1191_v26  ;;  %v5357_v36 = vpop.permute.xlu1 %2783  ;;  %v1213_v20 = vshll.u32 %v5300_v25, 16  ;;  %v1219_v5 = vrot.slane %v1217_v3, 4 }
  0xd0   : > { %2361 = vrot.lane.b32.xlu0 %v3897_v55, %s4372_s23  ;;  %v1000_v40 = vsel %vm4518_vm5, %v995_v52, %v999_v43  ;;  %v1004_v13 = vor.u32 %v1003_v16, %v999_v43  ;;  %v1223_v6 = vshll.u32 %v5349_v32, 16  ;;  %v1211_v37 = vrot.slane %v1210_v4, 4  ;;  %v3745_v52 = vld [vmem:[%s4429_s22 + $0xa8] sm:$0xe] }
  0xd1   : > { %v1197_v39 = vrot.slane %v1196_v60, 4  ;;  %v1018_v19 = vor.u32 %v1017_v54, %v1014_v22  ;;  %v1021_v33 = vshll.u32 %v5308_v9, 16  ;;  %v2998_v27 = vsel %vm2980_vm11, %v2965_v49, %v5245_v51  ;;  %v5369_v42 = vpop.permute.xlu0 %2767 }
  0xd2   : > { %v1005_v7 = vrot.slane %v1004_v13, 4  ;;  %v1215_v56 = vrot.slane %v1213_v20, 5  ;;  %v1027_v28 = vrot.slane %v1025_v12, 4  ;;  %v1225_v17 = vrot.slane %v1223_v6, 5 }
  0xd3   : > { %v1202_v23 = vsel %vm4518_vm5, %v1197_v39, %v1201_v18  ;;  %v1019_v8 = vrot.slane %v1018_v19, 4  ;;  %v1023_v10 = vrot.slane %v1021_v33, 5  ;;  %v1031_v24 = vshll.u32 %v5362_v14, 16 }
  0xd4   : > { %v3920_v53 = vcombine.low %v1192_v57, %v1202_v23  ;;  %v1010_v3 = vsel %vm4518_vm5, %v1005_v7, %v1009_v0  ;;  %v1220_v47 = vor.u32 %v1219_v5, %v1215_v56  ;;  %v2982_v51 = vsel %vm2980_vm11, %v5316_v41, %v5263_v58  ;;  %v3737_v0 = vld [vmem:[%s4429_s22 + $0x48] sm:$0xe] }
  0xd5   : > { %v3912_v55 = vcombine.low %v1000_v40, %v1010_v3  ;;  %v1216_v49 = vsel %vm4518_vm5, %v1211_v37, %v1215_v56  ;;  %v1024_v12 = vsel %vm4518_vm5, %v1019_v8, %v1023_v10  ;;  %v1028_v11 = vor.u32 %v1027_v28, %v1023_v10  ;;  %v5415_v37 = vld [vmem:[%s4429_s22 + $0xa8] sm:$0xf] }
  0xd6   : > { %2455 = vrot.lane.b32.xlu1 %v3920_v53, %s4375_s26  ;;  %v1221_v38 = vrot.slane %v1220_v47, 4  ;;  %v1033_v26 = vrot.slane %v1031_v24, 5  ;;  %v3760_v16 = vrot.slane %v3744_v15, 9  ;;  %v1425_v62 = vrot.slane %v5261_v31, 5  ;;  %v5429_v53 = vld [vmem:[%s4429_s22 + $0xac] sm:$0xf] }
  0xd7   : > { %v5384_v29 = vpop.permute.xlu1 %2195  ;;  %2439 = vrot.lane.b32.xlu0 %v3912_v55, %s4375_s26  ;;  %v1029_v22 = vrot.slane %v1028_v11, 4  ;;  %v1428_v58 = vrot.slane %v5323_v35, 5  ;;  %v3752_v41 = vrot.slane %v3736_v48, 9  ;;  %v1369_v54 = vrot.slane %v5290_v63, 5  ;;  %v3772_v3 = vld [vmem:[%s4429_s22 + $0x48] sm:$0xf] }
  0xd8   : > { %v1226_v43 = vsel %vm4518_vm5, %v1221_v38, %v1225_v17  ;;  %v1426_v57 = vsel %vm4460_vm2, %v3760_v16, %v1425_v62  ;;  %v1427_v60 = vrot.slane %v1425_v62, 4  ;;  %v1372_v18 = vrot.slane %v5328_v61, 5  ;;  %v5450_v15 = vld [vmem:[%s4429_s22 + $0x4c] sm:$0xf]  ;;  %v5453_v55 = vld [vmem:[%s4429_s22 + $0xb4] sm:$0xf] }
  0xd9   : > { %v3921_v31 = vcombine.low %v1216_v49, %v1226_v43  ;;  %v1034_v35 = vsel %vm4518_vm5, %v1029_v22, %v1033_v26  ;;  %v1370_v63 = vsel %vm4460_vm2, %v3752_v41, %v1369_v54  ;;  %v1371_v13 = vrot.slane %v1369_v54, 4  ;;  %v5467_v11 = vld [vmem:[%s4429_s22 + $0x54] sm:$0xf] }
  0xda   : > { %v5396_v40 = vpop.permute.xlu0 %2179  ;;  %v3913_v4 = vcombine.low %v1024_v12, %v1034_v35  ;;  %v1429_v39 = vsel %vm4460_vm2, %v1427_v60, %v1428_v58  ;;  %v3761_v20 = vrot.slane %v3745_v52, 9  ;;  %v3000_v61 = vsel %vm2980_vm11, %v5335_v34, %v5276_v59  ;;  %v5464_v12 = vld [vmem:[%s4429_s22 + $0xb8] sm:$0xf]  ;;  %v4301_v35 = vld [vmem:[%s6340_s1 + $0x10] ss:$0 sps:$4 sm:$0x33]  }
  0xdb   : > { %2457 = vrot.lane.b32.xlu1 %v3921_v31, %s4375_s26  ;;  %v2984_v5 = vsel %vm2980_vm11, %v5339_v44, %v5293_v50  ;;  %v3936_v6 = vcombine.low %v1426_v57, %v1429_v39  ;;  %v1373_v7 = vsel %vm4460_vm2, %v1371_v13, %v1372_v18  ;;  %v5417_v19 = vpop.permute.xlu1 %2785  ;;  %v1432_v23 = vrot.slane %v5300_v25, 5  ;;  %v5474_v58 = vld [vmem:[%s4429_s22 + $0x58] sm:$0xf]  ;;  %4234 = vmatprep.subr.msk.bf16.mxu0 %vm3132_vm15, %v4301_v35 }
  0xdc   : > { %2441 = vrot.lane.b32.xlu0 %v3913_v4, %s4375_s26  ;;  %v3928_v33 = vcombine.low %v1370_v63, %v1373_v7  ;;  %v1435_v59 = vrot.slane %v5349_v32, 5  ;;  %v3753_v34 = vrot.slane %v3737_v0, 9  ;;  %v3031_v56 = vsel %vm3013_vm12, %v2998_v27, %v5303_v46  ;;  %v5494_v4 = vld [vmem:[%s4429_s22 + $0xb0] sm:$0x1]  ;;  %4235 = vmatprep.subr.msk.bf16.mxu1 %vm3132_vm15, %v4301_v35 }
  0xdd   : > { %v3015_v50 = vsel %vm3013_vm12, %v2982_v51, %v5318_v1  ;;  %v1376_v44 = vrot.slane %v5308_v9, 5  ;;  %v1379_v28 = vrot.slane %v5362_v14, 5  ;;  %v1433_v25 = vsel %vm4460_vm2, %v3761_v20, %v1432_v23 }
  0xde   : > { %v1434_v32 = vrot.slane %v1432_v23, 4  ;;  %v1792_v8 = vshrl.u32 %v5415_v37, 16  ;;  %v1795_v46 = vshll.u32 %v5415_v37, 16  ;;  %v5436_v27 = vpop.permute.xlu0 %2769  ;;  %v5443_v14 = vsel %vm3013_vm12, %v3000_v61, %v5330_v45 }
  0xdf   : > { %2535 = vrot.lane.b32.xlu1 %v3936_v6, %s4376_s27  ;;  %v1377_v9 = vsel %vm4460_vm2, %v3753_v34, %v1376_v44  ;;  %v1378_v1 = vrot.slane %v1376_v44, 4  ;;  %v5447_v10 = vsel %vm3013_vm12, %v2984_v5, %v5346_v2  ;;  %v1805_v17 = vshrl.u32 %v5429_v53, 16  ;;  %v5523_v44 = vld [vmem:[%s4429_s22 + $0x7c] sm:$0xf] }
  0xe0   : > { %2519 = vrot.lane.b32.xlu0 %v3928_v33, %s4376_s27  ;;  %v1436_v47 = vsel %vm4460_vm2, %v1434_v32, %v1435_v59  ;;  %v3952_v45 = vcombine.low %v5415_v37, %v5429_v53  ;;  %v1600_v24 = vshrl.u32 %v3772_v3, 16  ;;  %v1794_v51 = vrot.slane %v1792_v8, 4  ;;  %v5515_v59 = vld [vmem:[%s4429_s22 + $0x50] sm:$0x1] }
  0xe1   : > { %v3937_v48 = vcombine.low %v1433_v25, %v1436_v47  ;;  %v1380_v2 = vsel %vm4460_vm2, %v1378_v1, %v1379_v28  ;;  %v1603_v49 = vshll.u32 %v3772_v3, 16  ;;  %v1797_v16 = vrot.slane %v1795_v46, 5  ;;  %v5531_v25 = vld [vmem:[%s4429_s22 + $0x1c] sm:$0xf] }
  0xe2   : > { %v3929_v26 = vcombine.low %v1377_v9, %v1380_v2  ;;  %v1613_v62 = vshrl.u32 %v5450_v15, 16  ;;  %v1816_v22 = vshrl.u32 %v5453_v55, 16  ;;  %v1602_v41 = vrot.slane %v1600_v24, 4 }
  0xe3   : > { %v5469_v38 = vpop.permute.xlu1 %2197  ;;  %2537 = vrot.lane.b32.xlu1 %v3937_v48, %s4376_s27  ;;  %v1605_v54 = vrot.slane %v1603_v49, 5  ;;  %v3944_v52 = vcombine.low %v3772_v3, %v5450_v15  ;;  %v1819_v43 = vshll.u32 %v5453_v55, 16  ;;  %v1829_v57 = vshrl.u32 %v5464_v12, 16  ;;  %v5528_v3 = vld [vmem:[%s4429_s22 + $0x18] sm:$0xf] }
  0xe4   : > { %2521 = vrot.lane.b32.xlu0 %v3929_v26, %s4376_s27  ;;  %v3953_v60 = vcombine.low %v5453_v55, %v5464_v12  ;;  %v1624_v18 = vshrl.u32 %v5467_v11, 16  ;;  %v1627_v31 = vshll.u32 %v5467_v11, 16  ;;  %v5490_v13 = vrot.slane %v1816_v22, 4 }
  0xe5   : > { %v1637_v0 = vshrl.u32 %v5474_v58, 16  ;;  %v1821_v20 = vrot.slane %v1819_v43, 5  ;;  %v3945_v61 = vcombine.low %v5467_v11, %v5474_v58  ;;  %v3048_v5 = vsel %vm3046_vm13, %v3015_v50, %v5369_v42  ;;  %v5520_v50 = vld [vmem:[%s4429_s22 + $0x78] sm:$0xf] }
  0xe6   : > { %v5488_v63 = vpop.permute.xlu0 %2181  ;;  %v3064_v6 = vsel %vm3046_vm13, %v3031_v56, %v5357_v36  ;;  %v5505_v7 = vrot.slane %v1624_v18, 4  ;;  %v5507_v37 = vrot.slane %v1627_v31, 5  ;;  %4196 = vmatprep.mubr.msk.bf16.mxu0 %vm3099_vm14, %v3048_v5  ;;  %v1798_v33 = vor.u32 %v1797_v16, %v1794_v51  ;;  %v5547_v51 = vld [vmem:[%s4429_s22 + $0xbc] sm:$0x1] }
  0xe7   : > { %v5496_v39 = vpop.permute.xlu1 %2275  ;;  %2631 = vrot.lane.b32.xlu1 %v3952_v45, %s4377_s28  ;;  %4212 = vmatprep.mubr.msk.bf16.mxu1 %vm3099_vm14, %v3064_v6  ;;  %v1801_v42 = vshll.u32 %v5429_v53, 16  ;;  %v1807_v36 = vrot.slane %v1805_v17, 4  ;;  %v1811_v23 = vshll.u32 %v5494_v4, 16  ;;  %v1606_v34 = vor.u32 %v1605_v54, %v1602_v41  ;;  %v5567_v31 = vld [vmem:[%s4429_s22 + $0x5c] sm:$0x1] }
  0xe8   : > { %2615 = vrot.lane.b32.xlu0 %v3944_v52, %s4377_s28  ;;  %v3854_v28 = vcombine.low %v5520_v50, %v5523_v44  ;;  %v3846_v32 = vcombine.low %v5528_v3, %v5531_v25  ;;  %v1799_v8 = vrot.slane %v1798_v33, 4  ;;  %v1609_v46 = vshll.u32 %v5450_v15, 16  ;;  %v3824_v6 = vld [vmem:[%s4429_s22 + $0xa8] sm:$0xe] }
  0xe9   : > { %v1803_v1 = vrot.slane %v1801_v42, 5  ;;  %v1813_v55 = vrot.slane %v1811_v23, 5  ;;  %v1607_v47 = vrot.slane %v1606_v34, 4  ;;  %v1615_v17 = vrot.slane %v1613_v62, 4  ;;  %v4333_v25 = vld [vmem:[%s4429_s22 + $0x88] sm:$0xf] }
  0xea   : > { %v5517_v56 = vpop.permute.xlu0 %2259  ;;  %v1611_v45 = vrot.slane %v1609_v46, 5  ;;  %v1619_v24 = vshll.u32 %v5515_v59, 16  ;;  %v3134_v48 = vsel %vm3132_vm15, %v4301_v35, 0  ;;  %v3066_v2 = vsel %vm3046_vm13, %v5443_v14, %v5417_v19 }
  0xeb   : > { %v5538_v9 = vpop.permute.xlu1 %2277  ;;  %2633 = vrot.lane.b32.xlu1 %v3953_v60, %s4377_s28  ;;  %v1804_v49 = vsel %vm4518_vm5, %v1799_v8, %v1803_v1  ;;  %v1808_v11 = vor.u32 %v1807_v36, %v1803_v1  ;;  %4195 = vmatpush3.bf16.msra.mxu0 %v3134_v48  ;;  %v3050_v26 = vsel %vm3046_vm13, %v5447_v10, %v5436_v27  ;;  %v1825_v16 = vshll.u32 %v5464_v12, 16 }
  0xec   : > { %2617 = vrot.lane.b32.xlu0 %v3945_v61, %s4377_s28  ;;  %v1612_v19 = vsel %vm4518_vm5, %v1607_v47, %v1611_v45  ;;  %v1616_v14 = vor.u32 %v1615_v17, %v1611_v45  ;;  %v1621_v22 = vrot.slane %v1619_v24, 5  ;;  %4233 = vmatpush3.bf16.msra.mxu1 %v3134_v48  ;;  %v1822_v41 = vor.u32 %v1821_v20, %v5490_v13  ;;  %v3816_v47 = vld [vmem:[%s4429_s22 + $0x48] sm:$0xe] }
  0xed   : > { %v1809_v52 = vrot.slane %v1808_v11, 4  ;;  %v1827_v43 = vrot.slane %v1825_v16, 5  ;;  %v1831_v27 = vrot.slane %v1829_v57, 4  ;;  %v1835_v10 = vshll.u32 %v5547_v51, 16 }
  0xee   : > { %v5556_v62 = vpop.permute.xlu0 %2261  ;;  %v1617_v60 = vrot.slane %v1616_v14, 4  ;;  %v1823_v18 = vrot.slane %v1822_v41, 4  ;;  %v1630_v35 = vor.u32 %v5507_v37, %v5505_v7  ;;  %v1633_v61 = vshll.u32 %v5474_v58, 16  ;;  %4197 = vmatmul.mubr.msk.bf16.vlgmr.msra.gmra.mrb[0].mxu0 %vm3099_vm14, %v3050_v26  ;;  %v4335_v14 = vld [vmem:[%s4429_s22 + $0x28] sm:$0xf] }
  0xef   : > { %v5561_v54 = vpop.permute.xlu1 %2371  ;;  %v1814_v13 = vsel %vm4518_vm5, %v1809_v52, %v1813_v55  ;;  %v1832_v20 = vor.u32 %v1831_v27, %v1827_v43  ;;  %v1837_v5 = vrot.slane %v1835_v10, 5  ;;  %v1639_v57 = vrot.slane %v1637_v0, 4  ;;  %4213 = vmatmul.mubr.msk.bf16.vlgmr.msra.gmra.mrb[0].mxu1 %vm3099_vm14, %v3066_v2  ;;  %v5633_v10 = vld [vmem:[%s4429_s22 + $0xb0] sm:$0x1] }
  0xf0   : > { %v3968_v42 = vcombine.low %v1804_v49, %v1814_v13  ;;  %v1622_v7 = vsel %vm4518_vm5, %v1617_v60, %v1621_v22  ;;  %v1828_v37 = vsel %vm4518_vm5, %v1823_v18, %v1827_v43  ;;  %v1631_v36 = vrot.slane %v1630_v35, 4  ;;  %v5626_v43 = vld [vmem:[%s4429_s22 + $0xac] sm:$0xf]  ;;  %v237_v35 = vld [vmem:[%s4429_s22 + $0x48] sm:$0xf] }
  0xf1   : > { %v3960_v34 = vcombine.low %v1612_v19, %v1622_v7  ;;  %v1833_v8 = vrot.slane %v1832_v20, 4  ;;  %v1635_v46 = vrot.slane %v1633_v61, 5  ;;  %v1643_v0 = vshll.u32 %v5567_v31, 16  ;;  %v4334_v19 = vld [vmem:[%s4429_s22 + $0x24] sm:$0xf] }
  0xf2   : > { %v5579_v33 = vpop.permute.xlu0 %2355  ;;  %2711 = vrot.lane.b32.xlu1 %v3968_v42, %s4378_s29  ;;  %v3840_v1 = vrot.slane %v3824_v6, 9  ;;  %v2037_v55 = vrot.slane %v5429_v53, 5  ;;  %v5596_v17 = vsel %vm2799_vm6, %v3854_v28, %v5384_v29  ;;  %v5608_v29 = vsel %vm2799_vm6, %v3846_v32, %v5396_v40  ;;  %v253_v28 = vld [vmem:[%s4429_s22 + $0xa8] sm:$0xf]  ;;  %v4332_v40 = vld [vmem:[%s4429_s22 + $0x84] sm:$0xf] }
  0xf3   : > { %v5585_v23 = vpop.permute.xlu1 %2373  ;;  %2695 = vrot.lane.b32.xlu0 %v3960_v34, %s4378_s29  ;;  %v1838_v45 = vsel %vm4518_vm5, %v1833_v8, %v1837_v5  ;;  %v1640_v24 = vor.u32 %v1639_v57, %v1635_v46  ;;  %v1645_v48 = vrot.slane %v1643_v0, 5  ;;  %v1636_v50 = vsel %vm4518_vm5, %v1631_v36, %v1635_v46  ;;  %v5643_v7 = vld [vmem:[%s4429_s22 + $0x4c] sm:$0xf]  ;;  %v5657_v46 = vld [vmem:[%s4429_s22 + $0x50] sm:$0x1] }
  0xf4   : > { %v3969_v53 = vcombine.low %v1828_v37, %v1838_v45  ;;  %v2038_v44 = vsel %vm4460_vm2, %v3840_v1, %v2037_v55  ;;  %v2039_v11 = vrot.slane %v2037_v55, 4  ;;  %v2040_v26 = vrot.slane %v5494_v4, 5 }
  0xf5   : > { %v1641_v49 = vrot.slane %v1640_v24, 4  ;;  %v3832_v16 = vrot.slane %v3816_v47, 9  ;;  %v3855_v32 = vcombine.low %v4332_v40, %v4333_v25  ;;  %v3847_v22 = vcombine.low %v4334_v19, %v4335_v14  ;;  %v3817_v14 = vld [vmem:[%s4429_s22 + $0x54] sm:$0xe] }
  0xf6   : > { %v5601_v2 = vpop.permute.xlu0 %2357  ;;  %2713 = vrot.lane.b32.xlu1 %v3969_v53, %s4378_s29  ;;  %v1981_v41 = vrot.slane %v5450_v15, 5  ;;  %v1984_v52 = vrot.slane %v5515_v59, 5  ;;  %v2041_v27 = vsel %vm4460_vm2, %v2039_v11, %v2040_v26  ;;  %v613_v60 = vshrl.u32 %v253_v28, 16  ;;  %v3825_v26 = vld [vmem:[%s4429_s22 + $0xb4] sm:$0xe] }
  0xf7   : > { %v1646_v4 = vsel %vm4518_vm5, %v1641_v49, %v1645_v48  ;;  %v616_v18 = vshll.u32 %v253_v28, 16  ;;  %v3984_v13 = vcombine.low %v2038_v44, %v2041_v27  ;;  %v622_v6 = vshll.u32 %v5626_v43, 16 }
  0xf8   : > { %v5616_v3 = vpop.permute.xlu1 %2451  ;;  %v3961_v15 = vcombine.low %v1636_v50, %v1646_v4  ;;  %v1982_v59 = vsel %vm4460_vm2, %v3832_v16, %v1981_v41  ;;  %v1983_v20 = vrot.slane %v1981_v41, 4  ;;  %v615_v5 = vrot.slane %v613_v60, 4 }
  0xf9   : > { %v618_v57 = vrot.slane %v616_v18, 5  ;;  %v626_v42 = vshrl.u32 %v5626_v43, 16  ;;  %v5650_v36 = vsel %vm2799_vm6, %v3855_v32, %v5469_v38  ;;  %v632_v8 = vshll.u32 %v5633_v10, 16 }
  0xfa   : > { %v5636_v61 = vpop.permute.xlu0 %2435  ;;  %2697 = vrot.lane.b32.xlu0 %v3961_v15, %s4378_s29  ;;  %2791 = vrot.lane.b32.xlu1 %v3984_v13, %s4379_s30  ;;  %v1985_v34 = vsel %vm4460_vm2, %v1983_v20, %v1984_v52  ;;  %v421_v0 = vshrl.u32 %v237_v35, 16  ;;  %v624_v47 = vrot.slane %v622_v6, 5  ;;  %v424_v53 = vshll.u32 %v237_v35, 16  ;;  %v5692_v15 = vld [vmem:[%s4429_s22 + $0xb4] sm:$0xf] }
  0xfb   : > { %v3976_v1 = vcombine.low %v1982_v59, %v1985_v34  ;;  %v619_v55 = vor.u32 %v618_v57, %v615_v5  ;;  %v628_v45 = vrot.slane %v626_v42, 4  ;;  %v634_v38 = vrot.slane %v632_v8, 5  ;;  %v5702_v34 = vld [vmem:[%s4429_s22 + $0xb8] sm:$0xf] }
  0xfc   : > { %v5645_v37 = vpop.permute.xlu1 %2453  ;;  %v423_v48 = vrot.slane %v421_v0, 4  ;;  %v430_v50 = vshll.u32 %v5643_v7, 16  ;;  %v434_v49 = vshrl.u32 %v5643_v7, 16  ;;  %v440_v11 = vshll.u32 %v5657_v46, 16 }
  0xfd   : > { %v620_v44 = vrot.slane %v619_v55, 4  ;;  %v629_v28 = vor.u32 %v628_v45, %v624_v47  ;;  %v5669_v40 = vsel %vm2799_vm6, %v3847_v22, %v5488_v63  ;;  %v5675_v25 = vsel %vm2848_vm7, %v5596_v17, %v5496_v39 }
  0xfe   : > { %v5659_v24 = vpop.permute.xlu0 %2437  ;;  %2775 = vrot.lane.b32.xlu0 %v3976_v1, %s4379_s30  ;;  %v426_v32 = vrot.slane %v424_v53, 5  ;;  %v432_v19 = vrot.slane %v430_v50, 5  ;;  %v5681_v41 = vsel %vm2848_vm7, %v5608_v29, %v5517_v56  ;;  %v436_v52 = vrot.slane %v434_v49, 4 }
  0xff   : > { %v625_v63 = vsel %vm4518_vm5, %v620_v44, %v624_v47  ;;  %v630_v22 = vrot.slane %v629_v28, 4  ;;  %v442_v60 = vrot.slane %v440_v11, 5  ;;  %v3841_v39 = vrot.slane %v3825_v26, 9  ;;  %v5713_v47 = vld [vmem:[%s4429_s22 + $0xbc] sm:$0x1] }
 0x100   : > { %v5665_v16 = vpop.permute.xlu1 %2531  ;;  %v427_v27 = vor.u32 %v426_v32, %v423_v48  ;;  %v2044_v17 = vrot.slane %v5464_v12, 5  ;;  %v437_v35 = vor.u32 %v436_v52, %v432_v19  ;;  %v2047_v56 = vrot.slane %v5547_v51, 5  ;;  %v5728_v26 = vld [vmem:[%s4429_s22 + $0x58] sm:$0xf] }
 0x101   : > { %v635_v18 = vsel %vm4518_vm5, %v630_v22, %v634_v38  ;;  %v3833_v29 = vrot.slane %v3817_v14, 9  ;;  %v830_v12 = vrot.slane %v5633_v10, 5  ;;  %v1988_v42 = vrot.slane %v5474_v58, 5 }
 0x102   : > { %v5685_v4 = vpop.permute.xlu0 %2515  ;;  %v3874_v59 = vcombine.low %v625_v63, %v635_v18  ;;  %v428_v20 = vrot.slane %v427_v27, 4  ;;  %v2045_v5 = vsel %vm4460_vm2, %v3841_v39, %v2044_v17  ;;  %v2046_v57 = vrot.slane %v2044_v17, 4  ;;  %v5735_v63 = vld [vmem:[%s4429_s22 + $0x5c] sm:$0x1] }
 0x103   : > { %v438_v6 = vrot.slane %v437_v35, 4  ;;  %v1991_v51 = vrot.slane %v5567_v31, 5  ;;  %v774_v1 = vrot.slane %v5657_v46, 5  ;;  %v637_v58 = vshrl.u32 %v5692_v15, 16  ;;  %v5717_v31 = vld [vmem:[%s4429_s22 + $0x54] sm:$0xf] }
 0x104   : > { %v5694_v13 = vpop.permute.xlu1 %2533  ;;  %2203 = vrot.lane.b32.xlu1 %v3874_v59, %s4374_s25  ;;  %v433_v0 = vsel %vm4518_vm5, %v428_v20, %v432_v19  ;;  %v2048_v55 = vsel %vm4460_vm2, %v2046_v57, %v2047_v56  ;;  %v1989_v48 = vsel %vm4460_vm2, %v3833_v29, %v1988_v42  ;;  %v1990_v53 = vrot.slane %v1988_v42, 4  ;;  %v674_v59 = vld [vmem:[%s4429_s22 + $0xa8] sm:$0xe] }
 0x105   : > { %v443_v45 = vsel %vm4518_vm5, %v438_v6, %v442_v60  ;;  %v3985_v38 = vcombine.low %v2045_v5, %v2048_v55  ;;  %v639_v28 = vrot.slane %v637_v58, 4  ;;  %v640_v49 = vshll.u32 %v5692_v15, 16 }
 0x106   : > { %v5704_v8 = vpop.permute.xlu0 %2517  ;;  %v3866_v44 = vcombine.low %v433_v0, %v443_v45  ;;  %v646_v11 = vshll.u32 %v5702_v34, 16  ;;  %v1992_v32 = vsel %vm4460_vm2, %v1990_v53, %v1991_v51  ;;  %v650_v19 = vshrl.u32 %v5702_v34, 16  ;;  %v666_v51 = vld [vmem:[%s4429_s22 + $0x48] sm:$0xe] }
 0x107   : > { %v656_v14 = vshll.u32 %v5713_v47, 16  ;;  %v445_v22 = vshrl.u32 %v5717_v31, 16  ;;  %v3977_v27 = vcombine.low %v1989_v48, %v1992_v32  ;;  %v642_v60 = vrot.slane %v640_v49, 5 }
 0x108   : > { %v5723_v50 = vpop.permute.xlu1 %2627  ;;  %2187 = vrot.lane.b32.xlu0 %v3866_v44, %s4374_s25  ;;  %2793 = vrot.lane.b32.xlu1 %v3985_v38, %s4379_s30  ;;  %v648_v39 = vrot.slane %v646_v11, 5  ;;  %v448_v17 = vshll.u32 %v5717_v31, 16  ;;  %v2872_v18 = vsel %vm2848_vm7, %v5650_v36, %v5538_v9  ;;  %v652_v35 = vrot.slane %v650_v19, 4 }
 0x109   : > { %v447_v56 = vrot.slane %v445_v22, 4  ;;  %v454_v29 = vshll.u32 %v5728_v26, 16  ;;  %v643_v5 = vor.u32 %v642_v60, %v639_v28  ;;  %v458_v6 = vshrl.u32 %v5728_v26, 16 }
 0x10a   : > { %v5738_v52 = vpop.permute.xlu0 %2611  ;;  %v450_v57 = vrot.slane %v448_v17, 5  ;;  %v464_v42 = vshll.u32 %v5735_v63, 16  ;;  %v2856_v0 = vsel %vm2848_vm7, %v5669_v40, %v5556_v62  ;;  %v653_v55 = vor.u32 %v652_v35, %v648_v39 }
 0x10b   : > { %v658_v9 = vrot.slane %v656_v14, 5  ;;  %v456_v36 = vrot.slane %v454_v29, 5  ;;  %v644_v58 = vrot.slane %v643_v5, 4  ;;  %v460_v38 = vrot.slane %v458_v6, 4  ;;  %v675_v14 = vld [vmem:[%s4429_s22 + $0xb4] sm:$0xe] }
 0x10c   : > { %v5748_v20 = vpop.permute.xlu1 %2629  ;;  %2777 = vrot.lane.b32.xlu0 %v3977_v27, %s4379_s30  ;;  %v451_v45 = vor.u32 %v450_v57, %v447_v56  ;;  %v466_v48 = vrot.slane %v464_v42, 5  ;;  %v654_v44 = vrot.slane %v653_v55, 4  ;;  %v3682_v28 = vrot.slane %v674_v59, 9 }
 0x10d   : > { %v827_v49 = vrot.slane %v5626_v43, 5  ;;  %v3674_v11 = vrot.slane %v666_v51, 9  ;;  %v649_v62 = vsel %vm4518_vm5, %v644_v58, %v648_v39  ;;  %v461_v32 = vor.u32 %v460_v38, %v456_v36  ;;  %v5804_v38 = vld [vmem:[%s4429_s22 + $0x54] sm:$0xf] }
 0x10e   : > { %v5757_v53 = vpop.permute.xlu0 %2613  ;;  %v452_v40 = vrot.slane %v451_v45, 4  ;;  %v771_v19 = vrot.slane %v5643_v7, 5  ;;  %v2903_v22 = vsel %vm2881_vm8, %v5675_v25, %v5561_v54  ;;  %v659_v27 = vsel %vm4518_vm5, %v654_v44, %v658_v9  ;;  %v667_v54 = vld [vmem:[%s4429_s22 + $0x54] sm:$0xe] }
 0x10f   : > { %v828_v43 = vsel %vm4460_vm2, %v3682_v28, %v827_v49  ;;  %v829_v60 = vrot.slane %v827_v49, 4  ;;  %v2887_v39 = vsel %vm2881_vm8, %v5681_v41, %v5579_v33  ;;  %v3875_v35 = vcombine.low %v649_v62, %v659_v27  ;;  %v3712_v9 = vld [vmem:[%s4429_s22 + $0xb4] sm:$0xf]  ;;  %v5826_v62 = vld [vmem:[%s4429_s22 + $0x58] sm:$0xf] }
 0x110   : > { %v457_v7 = vsel %vm4518_vm5, %v452_v40, %v456_v36  ;;  %v462_v56 = vrot.slane %v461_v32, 4  ;;  %v772_v29 = vsel %vm4460_vm2, %v3674_v11, %v771_v19  ;;  %v773_v59 = vrot.slane %v771_v19, 4  ;;  %v3714_v32 = vld [vmem:[%s4429_s22 + $0xc0] sm:$0xf] }
 0x111   : > { %v5771_v17 = vpop.permute.xlu1 %2707  ;;  %v831_v25 = vsel %vm4460_vm2, %v829_v60, %v830_v12  ;;  %v3683_v5 = vrot.slane %v675_v14, 9  ;;  %2205 = vrot.lane.b32.xlu1 %v3875_v35, %s4374_s25  ;;  %v834_v57 = vrot.slane %v5702_v34, 5  ;;  %v837_v6 = vrot.slane %v5713_v47, 5 }
 0x112   : > { %v467_v33 = vsel %vm4518_vm5, %v462_v56, %v466_v48  ;;  %v3890_v41 = vcombine.low %v828_v43, %v831_v25  ;;  %v5790_v10 = vpop.permute.xlu0 %2691  ;;  %v775_v42 = vsel %vm4460_vm2, %v773_v59, %v774_v1  ;;  %v3675_v51 = vrot.slane %v667_v54, 9 }
 0x113   : > { %v3867_v12 = vcombine.low %v457_v7, %v467_v33  ;;  %v778_v55 = vrot.slane %v5728_v26, 5  ;;  %v2905_v36 = vsel %vm2881_vm8, %v2872_v18, %v5585_v23  ;;  %v835_v58 = vsel %vm4460_vm2, %v3683_v5, %v834_v57  ;;  %v5812_v18 = vld [vmem:[%s4429_s22 + $0xb8] sm:$0xf]  ;;  %v3698_v7 = vld [vmem:[%s4429_s22 + $0x60] sm:$0xf] }
 0x114   : > { %v836_v47 = vrot.slane %v834_v57, 4  ;;  %v781_v45 = vrot.slane %v5735_v63, 5  ;;  %v2889_v46 = vsel %vm2881_vm8, %v2856_v0, %v5601_v2  ;;  %v3882_v1 = vcombine.low %v772_v29, %v775_v42  ;;  %v5849_v29 = vld [vmem:[%s4429_s22 + $0x64] sm:$0xf]  ;;  %v5862_v57 = vld [vmem:[%s4429_s22 + $0xbc] sm:$0x1] }
 0x115   : > { %2189 = vrot.lane.b32.xlu0 %v3867_v12, %s4374_s25  ;;  %v2936_v48 = vsel %vm2914_vm9, %v2903_v22, %v5616_v3  ;;  %v780_v23 = vrot.slane %v778_v55, 4  ;;  %v5814_v44 = vpop.permute.xlu1 %2709  ;;  %2283 = vrot.lane.b32.xlu1 %v3890_v41, %s4373_s24  ;;  %v779_v28 = vsel %vm4460_vm2, %v3675_v51, %v778_v55  ;;  %v1228_v49 = vshrl.u32 %v3712_v9, 16 }
 0x116   : > { %v838_v63 = vsel %vm4460_vm2, %v836_v47, %v837_v6  ;;  %v1231_v2 = vshll.u32 %v3712_v9, 16  ;;  %v2920_v0 = vsel %vm2914_vm9, %v2887_v39, %v5636_v61  ;;  %v1036_v40 = vshrl.u32 %v5804_v38, 16 }
 0x117   : > { %v3891_v3 = vcombine.low %v835_v58, %v838_v63  ;;  %v782_v11 = vsel %vm4460_vm2, %v780_v23, %v781_v45  ;;  %v2938_v19 = vsel %vm2914_vm9, %v2905_v36, %v5645_v37  ;;  %v5834_v14 = vsel %vm2914_vm9, %v2889_v46, %v5659_v24  ;;  %v5838_v27 = vpop.permute.xlu0 %2693  ;;  %v5843_v37 = vld [vmem:[%s4429_s22 + $0xc4] sm:$0xf] }
 0x118   : > { %v1241_v61 = vshrl.u32 %v5812_v18, 16  ;;  %v1039_v22 = vshll.u32 %v5804_v38, 16  ;;  %v3883_v43 = vcombine.low %v779_v28, %v782_v11  ;;  %v1230_v60 = vrot.slane %v1228_v49, 4  ;;  %v5882_v11 = vld [vmem:[%s4429_s22 + $0xc8] sm:$0x1] }
 0x119   : > { %2267 = vrot.lane.b32.xlu0 %v3882_v1, %s4373_s24  ;;  %v1233_v39 = vrot.slane %v1231_v2, 5  ;;  %v3906_v35 = vcombine.low %v3712_v9, %v5812_v18  ;;  %2285 = vrot.lane.b32.xlu1 %v3891_v3, %s4373_s24  ;;  %v1038_v24 = vrot.slane %v1036_v40, 4  ;;  %v1049_v56 = vshrl.u32 %v5826_v62, 16  ;;  %v5864_v6 = vpop.permute.xlu1 %2787  ;;  %v5869_v9 = vld [vmem:[%s4429_s22 + $0x5c] sm:$0x1] }
 0x11a   : > { %v1252_v54 = vshrl.u32 %v3714_v32, 16  ;;  %v1255_v25 = vshll.u32 %v3714_v32, 16  ;;  %v1041_v59 = vrot.slane %v1039_v22, 5  ;;  %v3898_v5 = vcombine.low %v5804_v38, %v5826_v62 }
 0x11b   : > { %v5855_v33 = vsel %vm2947_vm10, %v2936_v48, %v5665_v16  ;;  %v5859_v41 = vsel %vm2947_vm10, %v2920_v0, %v5685_v4  ;;  %v1265_v12 = vshrl.u32 %v5843_v37, 16  ;;  %v3907_v42 = vcombine.low %v3714_v32, %v5843_v37  ;;  %v5877_v1 = vpop.permute.xlu0 %2771 }
 0x11c   : > { %v1060_v51 = vshrl.u32 %v3698_v7, 16  ;;  %v1063_v55 = vshll.u32 %v3698_v7, 16  ;;  %v1254_v16 = vrot.slane %v1252_v54, 4  ;;  %v1257_v36 = vrot.slane %v1255_v25, 5 }
 0x11d   : > { %2269 = vrot.lane.b32.xlu0 %v3883_v43, %s4373_s24  ;;  %v1073_v58 = vshrl.u32 %v5849_v29, 16  ;;  %v3899_v4 = vcombine.low %v3698_v7, %v5849_v29  ;;  %2379 = vrot.lane.b32.xlu1 %v3906_v35, %s4372_s23  ;;  %v1234_v47 = vor.u32 %v1233_v39, %v1230_v60  ;;  %v1237_v45 = vshll.u32 %v5812_v18, 16 }
 0x11e   : > { %v1243_v38 = vrot.slane %v1241_v61, 4  ;;  %v1247_v46 = vshll.u32 %v5862_v57, 16  ;;  %v1042_v48 = vor.u32 %v1041_v59, %v1038_v24  ;;  %v1045_v23 = vshll.u32 %v5826_v62, 16 }
 0x11f   : > { %v1051_v63 = vrot.slane %v1049_v56, 4  ;;  %v1055_v28 = vshll.u32 %v5869_v9, 16  ;;  %v1062_v49 = vrot.slane %v1060_v51, 4  ;;  %v1065_v2 = vrot.slane %v1063_v55, 5 }
 0x120   : > { %v1235_v0 = vrot.slane %v1234_v47, 4  ;;  %v1239_v3 = vrot.slane %v1237_v45, 5  ;;  %v5887_v40 = vsel %vm2947_vm10, %v2938_v19, %v5694_v13  ;;  %v1249_v32 = vrot.slane %v1247_v46, 5 }
 0x121   : > { %2363 = vrot.lane.b32.xlu0 %v3898_v5, %s4372_s23  ;;  %v1043_v61 = vrot.slane %v1042_v48, 4  ;;  %v1047_v22 = vrot.slane %v1045_v23, 5  ;;  %v5889_v43 = vpop.permute.xlu1 %2199  ;;  %2381 = vrot.lane.b32.xlu1 %v3907_v42, %s4372_s23  ;;  %v1057_v39 = vrot.slane %v1055_v28, 5  ;;  %v1258_v35 = vor.u32 %v1257_v36, %v1254_v16  ;;  %v5897_v5 = vld [vmem:[%s4429_s22 + $0x68] sm:$0x1] }
 0x122   : > { %v1244_v60 = vor.u32 %v1243_v38, %v1239_v3  ;;  %v1261_v7 = vshll.u32 %v5843_v37, 16  ;;  %v1240_v24 = vsel %vm4518_vm5, %v1235_v0, %v1239_v3  ;;  %v1267_v54 = vrot.slane %v1265_v12, 4  ;;  %v3746_v48 = vld [vmem:[%s4429_s22 + $0xb4] sm:$0xe] }
 0x123   : > { %v1052_v56 = vor.u32 %v1051_v63, %v1047_v22  ;;  %v1271_v13 = vshll.u32 %v5882_v11, 16  ;;  %v1259_v25 = vrot.slane %v1258_v35, 4  ;;  %v1066_v51 = vor.u32 %v1065_v2, %v1062_v49  ;;  %v3738_v49 = vld [vmem:[%s4429_s22 + $0x54] sm:$0xe] }
 0x124   : > { %v1245_v19 = vrot.slane %v1244_v60, 4  ;;  %v1263_v59 = vrot.slane %v1261_v7, 5  ;;  %v5899_v42 = vpop.permute.xlu0 %2183  ;;  %v1048_v55 = vsel %vm4518_vm5, %v1043_v61, %v1047_v22  ;;  %v1069_v12 = vshll.u32 %v5849_v29, 16 }
 0x125   : > { %2365 = vrot.lane.b32.xlu0 %v3899_v4, %s4372_s23  ;;  %v1053_v16 = vrot.slane %v1052_v56, 4  ;;  %v1075_v36 = vrot.slane %v1073_v58, 4  ;;  %v1273_v38 = vrot.slane %v1271_v13, 5  ;;  %v1067_v46 = vrot.slane %v1066_v51, 4  ;;  %v5912_v2 = vpop.permute.xlu1 %2789 }
 0x126   : > { %v1250_v47 = vsel %vm4518_vm5, %v1245_v19, %v1249_v32  ;;  %v1268_v45 = vor.u32 %v1267_v54, %v1263_v59  ;;  %v1071_v28 = vrot.slane %v1069_v12, 5  ;;  %v1079_v4 = vshll.u32 %v5897_v5, 16 }
 0x127   : > { %v3922_v23 = vcombine.low %v1240_v24, %v1250_v47  ;;  %v1058_v63 = vsel %vm4518_vm5, %v1053_v16, %v1057_v39  ;;  %v2955_v58 = vsel %vm2947_vm10, %v5834_v14, %v5704_v8  ;;  %v1264_v3 = vsel %vm4518_vm5, %v1259_v25, %v1263_v59  ;;  %v3747_v24 = vld [vmem:[%s4429_s22 + $0xc0] sm:$0xe] }
 0x128   : > { %v3914_v0 = vcombine.low %v1048_v55, %v1058_v63  ;;  %v1269_v32 = vrot.slane %v1268_v45, 4  ;;  %v1072_v61 = vsel %vm4518_vm5, %v1067_v46, %v1071_v28  ;;  %v1076_v22 = vor.u32 %v1075_v36, %v1071_v28  ;;  %v5928_v56 = vpop.permute.xlu0 %2773  ;;  %v3739_v55 = vld [vmem:[%s4429_s22 + $0x60] sm:$0xe] }
 0x129   : > { %2459 = vrot.lane.b32.xlu1 %v3922_v23, %s4375_s26  ;;  %v1081_v60 = vrot.slane %v1079_v4, 5  ;;  %v3762_v39 = vrot.slane %v3746_v48, 9  ;;  %v1439_v8 = vrot.slane %v5812_v18, 5  ;;  %v1442_v14 = vrot.slane %v5862_v57, 5  ;;  %v3792_v48 = vld [vmem:[%s4429_s22 + $0xc0] sm:$0xf] }
 0x12a   : > { %2443 = vrot.lane.b32.xlu0 %v3914_v0, %s4375_s26  ;;  %v1274_v35 = vsel %vm4518_vm5, %v1269_v32, %v1273_v38  ;;  %v3754_v7 = vrot.slane %v3738_v49, 9  ;;  %v1077_v13 = vrot.slane %v1076_v22, 4  ;;  %v1383_v19 = vrot.slane %v5826_v62, 5  ;;  %v5961_v4 = vld [vmem:[%s4429_s22 + $0x60] sm:$0xf] }
 0x12b   : > { %v3923_v54 = vcombine.low %v1264_v3, %v1274_v35  ;;  %v1386_v25 = vrot.slane %v5869_v9, 5  ;;  %v3002_v59 = vsel %vm2980_vm11, %v5855_v33, %v5723_v50  ;;  %v2986_v18 = vsel %vm2980_vm11, %v5859_v41, %v5738_v52  ;;  %v5980_v22 = vld [vmem:[%s4429_s22 + $0xc4] sm:$0xf]  ;;  %v3794_v35 = vld [vmem:[%s4429_s22 + $0xcc] sm:$0xf] }
 0x12c   : > { %v1440_v57 = vsel %vm4460_vm2, %v3762_v39, %v1439_v8  ;;  %v1441_v51 = vrot.slane %v1439_v8, 4  ;;  %v1082_v62 = vsel %vm4518_vm5, %v1077_v13, %v1081_v60  ;;  %v1384_v9 = vsel %vm4460_vm2, %v3754_v7, %v1383_v19  ;;  %v5995_v7 = vld [vmem:[%s4429_s22 + $0x6c] sm:$0xf] }
 0x12d   : > { %2461 = vrot.lane.b32.xlu1 %v3923_v54, %s4375_s26  ;;  %v1385_v16 = vrot.slane %v1383_v19, 4  ;;  %v3763_v50 = vrot.slane %v3747_v24, 9  ;;  %v3915_v52 = vcombine.low %v1072_v61, %v1082_v62  ;;  %v1446_v12 = vrot.slane %v5843_v37, 5 }
 0x12e   : > { %v1443_v41 = vsel %vm4460_vm2, %v1441_v51, %v1442_v14  ;;  %v1449_v36 = vrot.slane %v5882_v11, 5  ;;  %v3755_v38 = vrot.slane %v3739_v55, 9  ;;  %v1390_v46 = vrot.slane %v5849_v29, 5  ;;  %v6014_v55 = vld [vmem:[%s4429_s22 + $0x70] sm:$0xf] }
 0x12f   : > { %v5946_v33 = vpop.permute.xlu1 %2201  ;;  %v3938_v47 = vcombine.low %v1440_v57, %v1443_v41  ;;  %v1387_v45 = vsel %vm4460_vm2, %v1385_v16, %v1386_v25  ;;  %2445 = vrot.lane.b32.xlu0 %v3915_v52, %s4375_s26  ;;  %v1447_v63 = vsel %vm4460_vm2, %v3763_v50, %v1446_v12  ;;  %v1448_v28 = vrot.slane %v1446_v12, 4  ;;  %v6003_v25 = vld [vmem:[%s4429_s22 + $0x64] sm:$0xf] }
 0x130   : > { %v3930_v23 = vcombine.low %v1384_v9, %v1387_v45  ;;  %v1393_v37 = vrot.slane %v5897_v5, 5  ;;  %v3004_v29 = vsel %vm2980_vm11, %v5887_v40, %v5748_v20  ;;  %v2988_v49 = vsel %vm2980_vm11, %v2955_v58, %v5757_v53 }
 0x131   : > { %2539 = vrot.lane.b32.xlu1 %v3938_v47, %s4376_s27  ;;  %v1391_v0 = vsel %vm4460_vm2, %v3755_v38, %v1390_v46  ;;  %v1392_v3 = vrot.slane %v1390_v46, 4  ;;  %v3035_v5 = vsel %vm3013_vm12, %v3002_v59, %v5771_v17  ;;  %v1450_v61 = vsel %vm4460_vm2, %v1448_v28, %v1449_v36 }
 0x132   : > { %v5963_v11 = vpop.permute.xlu0 %2185  ;;  %v1840_v20 = vshrl.u32 %v3792_v48, 16  ;;  %v1843_v40 = vshll.u32 %v3792_v48, 16  ;;  %v3019_v53 = vsel %vm3013_vm12, %v2986_v18, %v5790_v10  ;;  %v3939_v58 = vcombine.low %v1447_v63, %v1450_v61 }
 0x133   : > { %v5973_v32 = vpop.permute.xlu1 %2279  ;;  %v1394_v60 = vsel %vm4460_vm2, %v1392_v3, %v1393_v37  ;;  %v1648_v39 = vshrl.u32 %v5961_v4, 16  ;;  %2523 = vrot.lane.b32.xlu0 %v3930_v23, %s4376_s27  ;;  %v3037_v8 = vsel %vm3013_vm12, %v3004_v29, %v5814_v44  ;;  %v3021_v14 = vsel %vm3013_vm12, %v2988_v49, %v5838_v27  ;;  %v6008_v27 = vld [vmem:[%s4429_s22 + $0xd0] sm:$0xf] }
 0x134   : > { %v3931_v17 = vcombine.low %v1391_v0, %v1394_v60  ;;  %v1651_v10 = vshll.u32 %v5961_v4, 16  ;;  %v1842_v54 = vrot.slane %v1840_v20, 4  ;;  %v1853_v13 = vshrl.u32 %v5980_v22, 16 }
 0x135   : > { %2541 = vrot.lane.b32.xlu1 %v3939_v58, %s4376_s27  ;;  %v3954_v19 = vcombine.low %v3792_v48, %v5980_v22  ;;  %v3068_v44 = vsel %vm3046_vm13, %v3035_v5, %v5864_v6  ;;  %v1845_v59 = vrot.slane %v1843_v40, 5  ;;  %v3052_v18 = vsel %vm3046_vm13, %v3019_v53, %v5877_v1  ;;  %v6020_v6 = vld [vmem:[%s4429_s22 + $0xc8] sm:$0x1] }
 0x136   : > { %v5997_v24 = vpop.permute.xlu0 %2263  ;;  %v1864_v57 = vshrl.u32 %v3794_v35, 16  ;;  %v1867_v51 = vshll.u32 %v3794_v35, 16  ;;  %4216 = vmatprep.mubr.msk.bf16.mxu1 %vm3099_vm14, %v3068_v44  ;;  %v1650_v62 = vrot.slane %v1648_v39, 4  ;;  %v1653_v9 = vrot.slane %v1651_v10, 5  ;;  %4200 = vmatprep.mubr.msk.bf16.mxu0 %vm3099_vm14, %v3052_v18  ;;  %v6052_v10 = vld [vmem:[%s4429_s22 + $0xd4] sm:$0x1] }
 0x137   : > { %v1672_v16 = vshrl.u32 %v5995_v7, 16  ;;  %v1675_v50 = vshll.u32 %v5995_v7, 16  ;;  %2525 = vrot.lane.b32.xlu0 %v3931_v17, %s4376_s27  ;;  %v1661_v1 = vshrl.u32 %v6003_v25, 16  ;;  %v3946_v41 = vcombine.low %v5961_v4, %v6003_v25  ;;  %v6039_v4 = vld [vmem:[%s4429_s22 + $0x68] sm:$0x1] }
 0x138   : > { %v1877_v12 = vshrl.u32 %v6008_v27, 16  ;;  %v3955_v36 = vcombine.low %v3794_v35, %v6008_v27  ;;  %v1866_v45 = vrot.slane %v1864_v57, 4  ;;  %v1869_v38 = vrot.slane %v1867_v51, 5 }
 0x139   : > { %v6022_v52 = vpop.permute.xlu1 %2281  ;;  %2635 = vrot.lane.b32.xlu1 %v3954_v19, %s4377_s28  ;;  %v1685_v46 = vshrl.u32 %v6014_v55, 16  ;;  %v3947_v48 = vcombine.low %v5995_v7, %v6014_v55  ;;  %v1846_v23 = vor.u32 %v1845_v59, %v1842_v54  ;;  %v1849_v63 = vshll.u32 %v5980_v22, 16 }
 0x13a   : > { %v6030_v47 = vpop.permute.xlu0 %2265  ;;  %v1855_v28 = vrot.slane %v1853_v13, 4  ;;  %v1859_v37 = vshll.u32 %v6020_v6, 16  ;;  %v1674_v29 = vrot.slane %v1672_v16, 4  ;;  %v1677_v49 = vrot.slane %v1675_v50, 5 }
 0x13b   : > { %v1654_v0 = vor.u32 %v1653_v9, %v1650_v62  ;;  %v1657_v3 = vshll.u32 %v6003_v25, 16  ;;  %2619 = vrot.lane.b32.xlu0 %v3946_v41, %s4377_s28  ;;  %v1847_v61 = vrot.slane %v1846_v23, 4  ;;  %v1851_v20 = vrot.slane %v1849_v63, 5 }
 0x13c   : > { %v1861_v40 = vrot.slane %v1859_v37, 5  ;;  %v1663_v53 = vrot.slane %v1661_v1, 4  ;;  %v1667_v35 = vshll.u32 %v6039_v4, 16  ;;  %v3070_v17 = vsel %vm3046_vm13, %v3037_v8, %v5912_v2  ;;  %v6063_v2 = vld [vmem:[%s4429_s22 + $0x74] sm:$0x1] }
 0x13d   : > { %v6042_v5 = vpop.permute.xlu1 %2375  ;;  %2637 = vrot.lane.b32.xlu1 %v3955_v36, %s4377_s28  ;;  %v1655_v60 = vrot.slane %v1654_v0, 4  ;;  %v1659_v39 = vrot.slane %v1657_v3, 5  ;;  %v1852_v7 = vsel %vm4518_vm5, %v1847_v61, %v1851_v20  ;;  %v1856_v54 = vor.u32 %v1855_v28, %v1851_v20  ;;  %4217 = vmatmul.mubr.msk.bf16.gmra.mrb[4].mxu1 %vm3099_vm14, %v3070_v17 }
 0x13e   : > { %v6045_v58 = vpop.permute.xlu0 %2359  ;;  %v3054_v13 = vsel %vm3046_vm13, %v3021_v14, %v5928_v56  ;;  %v1870_v19 = vor.u32 %v1869_v38, %v1866_v45  ;;  %v1669_v18 = vrot.slane %v1667_v35, 5  ;;  %v1873_v57 = vshll.u32 %v6008_v27, 16 }
 0x13f   : > { %v1660_v44 = vsel %vm4518_vm5, %v1655_v60, %v1659_v39  ;;  %v1664_v59 = vor.u32 %v1663_v53, %v1659_v39  ;;  %4201 = vmatmul.mubr.msk.bf16.gmra.mrb[4].mxu0 %vm3099_vm14, %v3054_v13  ;;  %2621 = vrot.lane.b32.xlu0 %v3947_v48, %s4377_s28  ;;  %v1857_v8 = vrot.slane %v1856_v54, 4  ;;  %v1879_v56 = vrot.slane %v1877_v12, 4  ;;  %v3826_v48 = vld [vmem:[%s4429_s22 + $0xc0] sm:$0xe]  ;;  %v3827_v54 = vld [vmem:[%s4429_s22 + $0xcc] sm:$0xe] }
 0x140   : > { %v1871_v51 = vrot.slane %v1870_v19, 4  ;;  %v1883_v14 = vshll.u32 %v6052_v10, 16  ;;  %v1875_v16 = vrot.slane %v1873_v57, 5  ;;  %v1678_v50 = vor.u32 %v1677_v49, %v1674_v29  ;;  %v3818_v49 = vld [vmem:[%s4429_s22 + $0x60] sm:$0xe] }
 0x141   : > { %v6068_v62 = vpop.permute.xlu1 %2377  ;;  %v1665_v9 = vrot.slane %v1664_v59, 4  ;;  %v1681_v1 = vshll.u32 %v6014_v55, 16  ;;  %v1862_v36 = vsel %vm4518_vm5, %v1857_v8, %v1861_v40  ;;  %v1687_v45 = vrot.slane %v1685_v46, 4  ;;  %v3819_v57 = vld [vmem:[%s4429_s22 + $0x6c] sm:$0xe] }
 0x142   : > { %v6071_v41 = vpop.permute.xlu0 %2361  ;;  %v1691_v38 = vshll.u32 %v6063_v2, 16  ;;  %v3970_v12 = vcombine.low %v1852_v7, %v1862_v36  ;;  %v1880_v63 = vor.u32 %v1879_v56, %v1875_v16  ;;  %v1885_v28 = vrot.slane %v1883_v14, 5 }
 0x143   : > { %v1670_v23 = vsel %vm4518_vm5, %v1665_v9, %v1669_v18  ;;  %v1679_v0 = vrot.slane %v1678_v50, 4  ;;  %v1683_v29 = vrot.slane %v1681_v1, 5  ;;  %v1876_v3 = vsel %vm4518_vm5, %v1871_v51, %v1875_v16 }
 0x144   : > { %v3962_v37 = vcombine.low %v1660_v44, %v1670_v23  ;;  %2715 = vrot.lane.b32.xlu1 %v3970_v12, %s4378_s29  ;;  %v1881_v46 = vrot.slane %v1880_v63, 4  ;;  %v3842_v61 = vrot.slane %v3826_v48, 9  ;;  %v1693_v40 = vrot.slane %v1691_v38, 5 }
 0x145   : > { %v1688_v20 = vor.u32 %v1687_v45, %v1683_v29  ;;  %v2051_v53 = vrot.slane %v5980_v22, 5  ;;  %v2054_v60 = vrot.slane %v6020_v6, 5  ;;  %v1684_v17 = vsel %vm4518_vm5, %v1679_v0, %v1683_v29 }
 0x146   : > { %2699 = vrot.lane.b32.xlu0 %v3962_v37, %s4378_s29  ;;  %v1886_v35 = vsel %vm4518_vm5, %v1881_v46, %v1885_v28  ;;  %v3834_v7 = vrot.slane %v3818_v49, 9  ;;  %v1995_v6 = vrot.slane %v6003_v25, 5  ;;  %v1998_v18 = vrot.slane %v6039_v4, 5 }
 0x147   : > { %v3971_v19 = vcombine.low %v1876_v3, %v1886_v35  ;;  %v1689_v44 = vrot.slane %v1688_v20, 4  ;;  %v2052_v59 = vsel %vm4460_vm2, %v3842_v61, %v2051_v53  ;;  %v2053_v22 = vrot.slane %v2051_v53, 4  ;;  %v4336_v53 = vld [vmem:[%s4429_s22 + $0x90] sm:$0xf] }
 0x148   : > { %v6086_v39 = vpop.permute.xlu1 %2455  ;;  %v3843_v56 = vrot.slane %v3827_v54, 9  ;;  %v2058_v14 = vrot.slane %v6008_v27, 5  ;;  %v1996_v50 = vsel %vm4460_vm2, %v3834_v7, %v1995_v6  ;;  %v1997_v25 = vrot.slane %v1995_v6, 4  ;;  %v4338_v7 = vld [vmem:[%s4429_s22 + $0x30] sm:$0xf] }
 0x149   : > { %v6093_v13 = vpop.permute.xlu0 %2439  ;;  %2717 = vrot.lane.b32.xlu1 %v3971_v19, %s4378_s29  ;;  %v1694_v8 = vsel %vm4518_vm5, %v1689_v44, %v1693_v40  ;;  %v2055_v51 = vsel %vm4460_vm2, %v2053_v22, %v2054_v60  ;;  %v2061_v36 = vrot.slane %v6052_v10, 5  ;;  %v3835_v30 = vrot.slane %v3819_v57, 9  ;;  %v4337_v60 = vld [vmem:[%s4429_s22 + $0x94] sm:$0xf] }
 0x14a   : > { %v3963_v9 = vcombine.low %v1684_v17, %v1694_v8  ;;  %v3986_v16 = vcombine.low %v2052_v59, %v2055_v51  ;;  %v2059_v4 = vsel %vm4460_vm2, %v3843_v56, %v2058_v14  ;;  %v2060_v1 = vrot.slane %v2058_v14, 4  ;;  %v4339_v54 = vld [vmem:[%s4429_s22 + $0x34] sm:$0xf] }
 0x14b   : > { %v1999_v27 = vsel %vm4460_vm2, %v1997_v25, %v1998_v18  ;;  %v2002_v38 = vrot.slane %v6014_v55, 5  ;;  %v2005_v48 = vrot.slane %v6063_v2, 5  ;;  %v3856_v35 = vcombine.low %v4336_v53, %v4337_v60 }
 0x14c   : > { %2701 = vrot.lane.b32.xlu0 %v3963_v9, %s4378_s29  ;;  %v3978_v23 = vcombine.low %v1996_v50, %v1999_v27  ;;  %v2062_v10 = vsel %vm4460_vm2, %v2060_v1, %v2061_v36  ;;  %v3848_v19 = vcombine.low %v4338_v7, %v4339_v54  ;;  %v4341_v50 = vld [vmem:[%s4429_s22 + $0xa0] sm:$0xf]  ;;  %v4342_v36 = vld [vmem:[%s4429_s22 + $0x3c] sm:$0xf] }
 0x14d   : > { %v6111_v45 = vpop.permute.xlu1 %2457  ;;  %2795 = vrot.lane.b32.xlu1 %v3986_v16, %s4379_s30  ;;  %v3987_v63 = vcombine.low %v2059_v4, %v2062_v10  ;;  %v2003_v28 = vsel %vm4460_vm2, %v3835_v30, %v2002_v38  ;;  %v2004_v37 = vrot.slane %v2002_v38, 4  ;;  %v2838_v21 = vsel %vm2799_vm6, %v3856_v35, %v5889_v43  ;;  %v4340_v16 = vld [vmem:[%s4429_s22 + $0x9c] sm:$0xf]  ;;  %v4343_v30 = vld [vmem:[%s4429_s22 + $0x40] sm:$0xf] }
 0x14e   : > { %v6118_v12 = vpop.permute.xlu0 %2441  ;;  %v2874_v59 = vsel %vm2848_vm7, %v2838_v21, %v5973_v32  ;;  %v2814_v57 = vsel %vm2799_vm6, %v3848_v19, %v5899_v42  ;;  %v3849_v27 = vcombine.low %v4342_v36, %v4343_v30 }
 0x14f   : > { %v2006_v55 = vsel %vm4460_vm2, %v2004_v37, %v2005_v48  ;;  %v2907_v22 = vsel %vm2881_vm8, %v2874_v59, %v6042_v5  ;;  %v2858_v8 = vsel %vm2848_vm7, %v2814_v57, %v5997_v24 }
 0x150   : > { %2779 = vrot.lane.b32.xlu0 %v3978_v23, %s4379_s30  ;;  %v3979_v29 = vcombine.low %v2003_v28, %v2006_v55  ;;  %v2940_v18 = vsel %vm2914_vm9, %v2907_v22, %v6086_v39  ;;  %v2891_v32 = vsel %vm2881_vm8, %v2858_v8, %v6045_v58  ;;  %v3857_v58 = vcombine.low %v4340_v16, %v4341_v50 }
 0x151   : > { %v2536_v0 = vpop.permute.xlu1 %2535  ;;  %2797 = vrot.lane.b32.xlu1 %v3987_v63, %s4379_s30  ;;  %v2924_v39 = vsel %vm2914_vm9, %v2891_v32, %v6093_v13  ;;  %v2817_v63 = vsel %vm2799_vm6, %v3849_v27, %v5963_v11  ;;  %v4345_v32 = vld [vmem:[%s4429_s22 + $0xac] sm:$0xf]  ;;  %v3859_v16 = vcombine.low %v5692_v15, %v5702_v34  ;;  %v3851_v50 = vcombine.low %v5717_v31, %v5728_v26 }
 0x152   : > { %v2520_v2 = vpop.permute.xlu0 %2519  ;;  %v2973_v43 = vsel %vm2947_vm10, %v2940_v18, %v2536_v0  ;;  %v2841_v13 = vsel %vm2799_vm6, %v3857_v58, %v5946_v33  ;;  %v2860_v33 = vsel %vm2848_vm7, %v2817_v63, %v6030_v47 }
 0x153   : > { %v2957_v9 = vsel %vm2947_vm10, %v2924_v39, %v2520_v2  ;;  %v2876_v38 = vsel %vm2848_vm7, %v2841_v13, %v6022_v52  ;;  %v2893_v52 = vsel %vm2881_vm8, %v2860_v33, %v6071_v41  ;;  %v4347_v39 = vld [vmem:[%s4429_s22 + $0x4c] sm:$0xf] }
 0x154   : > { %2781 = vrot.lane.b32.xlu0 %v3979_v29, %s4379_s30  ;;  %v2909_v48 = vsel %vm2881_vm8, %v2876_v38, %v6068_v62 }
 0x155   : > { %v2538_v49 = vpop.permute.xlu1 %2537  ;;  %v2942_v10 = vsel %vm2914_vm9, %v2909_v48, %v6111_v45  ;;  %v2926_v45 = vsel %vm2914_vm9, %v2893_v52, %v6118_v12  ;;  %v6213_v48 = vld [vmem:[%s6341_s2] ss:$0 sm:$0xff] }
 0x156   : > { %v2522_v3 = vpop.permute.xlu0 %2521  ;;  %v2975_v28 = vsel %vm2947_vm10, %v2942_v10, %v2538_v49 }
 0x157   : > { %v2959_v11 = vsel %vm2947_vm10, %v2926_v45, %v2522_v3 }
 0x159   : > { %v2632_v46 = vpop.permute.xlu1 %2631 }
 0x15a   : > { %v2616_v61 = vpop.permute.xlu0 %2615  ;;  %v3006_v51 = vsel %vm2980_vm11, %v2973_v43, %v2632_v46 }
 0x15b   : > { %v2990_v24 = vsel %vm2980_vm11, %v2957_v9, %v2616_v61 }
 0x15d   : > { %v2634_v20 = vpop.permute.xlu1 %2633 }
 0x15e   : > { %v2618_v40 = vpop.permute.xlu0 %2617  ;;  %v3008_v37 = vsel %vm2980_vm11, %v2975_v28, %v2634_v20 }
 0x15f   : > { %v2992_v47 = vsel %vm2980_vm11, %v2959_v11, %v2618_v40 }
 0x164   : > { %v2712_v17 = vpop.permute.xlu1 %2711 }
 0x165   : > { %v2696_v44 = vpop.permute.xlu0 %2695  ;;  %v3039_v5 = vsel %vm3013_vm12, %v3006_v51, %v2712_v17  ;;  %v4344_v51 = vld [vmem:[%s4429_s22 + $0xa8] sm:$0xf] }
 0x166   : > { %v3023_v25 = vsel %vm3013_vm12, %v2990_v24, %v2696_v44 }
 0x168   : > { %v2714_v6 = vpop.permute.xlu1 %2713 }
 0x169   : > { %v3041_v0 = vsel %vm3013_vm12, %v3008_v37, %v2714_v6 }
 0x16c   : > { %v2698_v56 = vpop.permute.xlu0 %2697  ;;  %v2792_v14 = vpop.permute.xlu1 %2791 }
 0x16d   : > { %v3072_v42 = vsel %vm3046_vm13, %v3039_v5, %v2792_v14  ;;  %v3025_v29 = vsel %vm3013_vm12, %v2992_v47, %v2698_v56  ;;  %v3858_v5 = vcombine.low %v4344_v51, %v4345_v32  ;;  %v4346_v14 = vld [vmem:[%s4429_s22 + $0x48] sm:$0xf] }
 0x16e   : > { %4220 = vmatprep.mubr.msk.bf16.mxu1 %vm3099_vm14, %v3072_v42  ;;  %v3850_v42 = vcombine.low %v4346_v14, %v4347_v39 }
 0x170   : > { %v2776_v4 = vpop.permute.xlu0 %2775 }
 0x171   : > { %v3056_v1 = vsel %vm3046_vm13, %v3023_v25, %v2776_v4 }
 0x172   : > { %4204 = vmatprep.mubr.msk.bf16.mxu0 %vm3099_vm14, %v3056_v1 }
 0x176   : > { %v2204_v23 = vpop.permute.xlu1 %2203 }
 0x177   : > { %v2844_v24 = vsel %vm2799_vm6, %v3858_v5, %v2204_v23 }
 0x17a   : > { %v2188_v62 = vpop.permute.xlu0 %2187  ;;  %v2794_v55 = vpop.permute.xlu1 %2793 }
 0x17b   : > { %v3074_v2 = vsel %vm3046_vm13, %v3041_v0, %v2794_v55  ;;  %v2820_v1 = vsel %vm2799_vm6, %v3850_v42, %v2188_v62 }
 0x17c   : > { %4221 = vmatmul.mubr.msk.bf16.gmra.mrb[8].mxu1 %vm3099_vm14, %v3074_v2 }
 0x17e   : > { %v2778_v49 = vpop.permute.xlu0 %2777 }
 0x17f   : > { %v3058_v41 = vsel %vm3046_vm13, %v3025_v29, %v2778_v49  ;;  %v6231_v29 = vld [vmem:[%s6342_s3] ss:$0 sm:$0xff] }
 0x180   : > { %4205 = vmatmul.mubr.msk.bf16.gmra.mrb[8].mxu0 %vm3099_vm14, %v3058_v41 }
 0x183   : > { %v2206_v46 = vpop.permute.xlu1 %2205 }
 0x184   : > { %v2847_v36 = vsel %vm2799_vm6, %v3859_v16, %v2206_v46 }
 0x187   : > { %v2190_v61 = vpop.permute.xlu0 %2189  ;;  %v2284_v20 = vpop.permute.xlu1 %2283 }
 0x188   : > { %v2878_v58 = vsel %vm2848_vm7, %v2844_v24, %v2284_v20  ;;  %v2823_v15 = vsel %vm2799_vm6, %v3851_v50, %v2190_v61 }
 0x18b   : > { %v2268_v53 = vpop.permute.xlu0 %2267  ;;  %v2286_v12 = vpop.permute.xlu1 %2285 }
 0x18c   : > { %v2862_v30 = vsel %vm2848_vm7, %v2820_v1, %v2268_v53  ;;  %v2880_v34 = vsel %vm2848_vm7, %v2847_v36, %v2286_v12 }
 0x18f   : > { %v2270_v60 = vpop.permute.xlu0 %2269  ;;  %v2380_v35 = vpop.permute.xlu1 %2379 }
 0x190   : > { %v2911_v25 = vsel %vm2881_vm8, %v2878_v58, %v2380_v35  ;;  %v2864_v23 = vsel %vm2848_vm7, %v2823_v15, %v2270_v60 }
 0x193   : > { %v2364_v3 = vpop.permute.xlu0 %2363  ;;  %v2382_v17 = vpop.permute.xlu1 %2381 }
 0x194   : > { %v2895_v31 = vsel %vm2881_vm8, %v2862_v30, %v2364_v3  ;;  %v2913_v10 = vsel %vm2881_vm8, %v2880_v34, %v2382_v17 }
 0x197   : > { %v2366_v21 = vpop.permute.xlu0 %2365 }
 0x198   : > { %v2897_v37 = vsel %vm2881_vm8, %v2864_v23, %v2366_v21 }
 0x19b   : > { %v2460_v40 = vpop.permute.xlu1 %2459 }
 0x19c   : > { %v2444_v7 = vpop.permute.xlu0 %2443  ;;  %v2944_v13 = vsel %vm2914_vm9, %v2911_v25, %v2460_v40 }
 0x19d   : > { %v2928_v63 = vsel %vm2914_vm9, %v2895_v31, %v2444_v7 }
 0x19f   : > { %v2462_v54 = vpop.permute.xlu1 %2461 }
 0x1a0   : > { %v2946_v52 = vsel %vm2914_vm9, %v2913_v10, %v2462_v54 }
 0x1a1   : > { %v2446_v19 = vpop.permute.xlu0 %2445 }
 0x1a2   : > { %v2930_v45 = vsel %vm2914_vm9, %v2897_v37, %v2446_v19 }
 0x1a3   : > { %v2540_v44 = vpop.permute.xlu1 %2539 }
 0x1a4   : > { %v2977_v27 = vsel %vm2947_vm10, %v2944_v13, %v2540_v44 }
 0x1a5   : > { %v2524_v59 = vpop.permute.xlu0 %2523 }
 0x1a6   : > { %v2961_v0 = vsel %vm2947_vm10, %v2928_v63, %v2524_v59 }
 0x1a7   : > { %v2542_v22 = vpop.permute.xlu1 %2541 }
 0x1a8   : > { %v2979_v2 = vsel %vm2947_vm10, %v2946_v52, %v2542_v22 }
 0x1a9   : > { %v2526_v6 = vpop.permute.xlu0 %2525 }
 0x1aa   : > { %v2963_v35 = vsel %vm2947_vm10, %v2930_v45, %v2526_v6 }
 0x1ab   : > { %v2636_v18 = vpop.permute.xlu1 %2635 }
 0x1ac   : > { %v3010_v26 = vsel %vm2980_vm11, %v2977_v27, %v2636_v18 }
 0x1ad   : > { %v2620_v57 = vpop.permute.xlu0 %2619 }
 0x1ae   : > { %v2994_v11 = vsel %vm2980_vm11, %v2961_v0, %v2620_v57 }
 0x1af   : > { %v2638_v43 = vpop.permute.xlu1 %2637 }
 0x1b0   : > { %v3012_v46 = vsel %vm2980_vm11, %v2979_v2, %v2638_v43 }
 0x1b1   : > { %v2622_v8 = vpop.permute.xlu0 %2621 }
 0x1b2   : > { %v2996_v54 = vsel %vm2980_vm11, %v2963_v35, %v2622_v8 }
 0x1b6   : > { %v2716_v56 = vpop.permute.xlu1 %2715 }
 0x1b7   : > { %v3043_v28 = vsel %vm3013_vm12, %v3010_v26, %v2716_v56 }
 0x1b8   : > { %v2700_v9 = vpop.permute.xlu0 %2699 }
 0x1b9   : > { %v3027_v61 = vsel %vm3013_vm12, %v2994_v11, %v2700_v9 }
 0x1bb   : > { %v2718_v4 = vpop.permute.xlu1 %2717 }
 0x1bc   : > { %v3045_v3 = vsel %vm3013_vm12, %v3012_v46, %v2718_v4 }
 0x1be   : > { %v2702_v38 = vpop.permute.xlu0 %2701 }
 0x1bf   : > { %v2796_v33 = vpop.permute.xlu1 %2795  ;;  %v3029_v32 = vsel %vm3013_vm12, %v2996_v54, %v2702_v38 }
 0x1c0   : > { %v3076_v62 = vsel %vm3046_vm13, %v3043_v28, %v2796_v33 }
 0x1c1   : > { %v4198_v55 = vpop.f32.mrb[0].mxu0  ;;  %4224 = vmatprep.mubr.msk.bf16.mxu1 %vm3099_vm14, %v3076_v62 }
 0x1c2   : > { %v3306_v47 = vmul.f32 %v4198_v55, %v6213_v48  ;;  %v4214_v49 = vpop.f32.mrb[0].mxu1  ;;  %v3170_v41 = vpop.f32.mrb[1].mxu0 }
 0x1c3   : > { %v2780_v20 = vpop.permute.xlu0 %2779  ;;  %v3322_v53 = vmul.f32 %v4214_v49, %v6213_v48  ;;  %v3304_v12 = vmul.f32 %v6213_v48, %v3170_v41  ;;  %v3234_v60 = vpop.f32.mrb[1].mxu1 }
 0x1c4   : > { %v3060_v17 = vsel %vm3046_vm13, %v3027_v61, %v2780_v20  ;;  %v2798_v21 = vpop.permute.xlu1 %2797  ;;  %v3320_v40 = vmul.f32 %v6213_v48, %v3234_v60  ;;  %v4199_v7 = vpop.f32.mrb[2].mxu0  ;;  %v3345_v44 = vadd.f32 %v6231_v29, %v3306_v47 }
 0x1c5   : > { %4208 = vmatprep.mubr.msk.bf16.mxu0 %vm3099_vm14, %v3060_v17  ;;  %v3078_v19 = vsel %vm3046_vm13, %v3045_v3, %v2798_v21  ;;  %v3307_v59 = vmul.f32 %v4199_v7, %v6213_v48  ;;  %v4215_v22 = vpop.f32.mrb[2].mxu1  ;;  %v3173_v6 = vpop.f32.mrb[3].mxu0  ;;  %v3361_v18 = vadd.f32 %v6231_v29, %v3322_v53  ;;  %v3343_v57 = vadd.f32 %v6231_v29, %v3304_v12 }
 0x1c6   : > { %4225 = vmatmul.mubr.msk.bf16.gmra.mrb[12].mxu1 %vm3099_vm14, %v3078_v19  ;;  %v3323_v43 = vmul.f32 %v4215_v22, %v6213_v48  ;;  %v3305_v8 = vmul.f32 %v6213_v48, %v3173_v6  ;;  %v3237_v51 = vpop.f32.mrb[3].mxu1  ;;  %v3359_v56 = vadd.f32 %v6231_v29, %v3320_v40  ;;  %v3377_v16 = vmax.f32 %v3345_v44, 0.0 }
 0x1c7   : > { %v2782_v5 = vpop.permute.xlu0 %2781  ;;  %v3346_v14 = vadd.f32 %v6231_v29, %v3307_v59  ;;  %v3321_v39 = vmul.f32 %v6213_v48, %v3237_v51  ;;  %v3393_v25 = vmax.f32 %v3361_v18, 0.0  ;;  %v3375_v4 = vmax.f32 %v3343_v57, 0.0 }
 0x1c8   : > { %v3062_v42 = vsel %vm3046_vm13, %v3029_v32, %v2782_v5  ;;  %v3362_v9 = vadd.f32 %v6231_v29, %v3323_v43  ;;  %v3344_v24 = vadd.f32 %v6231_v29, %v3305_v8  ;;  %v3391_v36 = vmax.f32 %v3359_v56, 0.0 }
 0x1c9   : > { %4209 = vmatmul.mubr.msk.bf16.gmra.mrb[12].mxu0 %vm3099_vm14, %v3062_v42  ;;  %v3378_v50 = vmax.f32 %v3346_v14, 0.0  ;;  %v3360_v58 = vadd.f32 %v6231_v29, %v3321_v39 }
 0x1ca   : > { %v3394_v1 = vmax.f32 %v3362_v9, 0.0  ;;  %v3376_v13 = vmax.f32 %v3344_v24, 0.0 }
 0x1cb   : > { %v4084_v30 = vpack.c.bf16 %v3378_v50, %v3377_v16  ;;  %v3392_v27 = vmax.f32 %v3360_v58, 0.0 }
 0x1cc   : > { %v4124_v15 = vpack.c.bf16 %v3394_v1, %v3393_v25  ;;  %v4079_v34 = vpack.c.bf16 %v3376_v13, %v3375_v4 }
 0x1cd   : > { %4156 = vst [vmem:[%s6264_s21 + $0x8] sm:$0xff] %v4084_v30   ;;  %v4119_v31 = vpack.c.bf16 %v3392_v27, %v3391_v36 }
 0x1ce   : > { %4164 = vst [vmem:[%s6264_s21 + $0x48] sm:$0xff] %v4124_v15   ;;  %4080 = vst [vmem:[%s6264_s21] sm:$0xff] %v4079_v34  }
 0x1cf   : > { %4163 = vst [vmem:[%s6264_s21 + $0x40] sm:$0xff] %v4119_v31  }
 0x210   : > { %v4218_v26 = vpop.f32.mrb[4].mxu1 }
 0x211   : > { %v3326_v23 = vmul.f32 %v4218_v26, %v6213_v48  ;;  %v3250_v10 = vpop.f32.mrb[5].mxu1 }
 0x212   : > { %v4202_v38 = vpop.f32.mrb[4].mxu0  ;;  %v3324_v33 = vmul.f32 %v6213_v48, %v3250_v10  ;;  %v4219_v37 = vpop.f32.mrb[6].mxu1 }
 0x213   : > { %v3310_v63 = vmul.f32 %v4202_v38, %v6213_v48  ;;  %v3186_v28 = vpop.f32.mrb[5].mxu0  ;;  %v3365_v52 = vadd.f32 %v6231_v29, %v3326_v23  ;;  %v3327_v55 = vmul.f32 %v4219_v37, %v6213_v48  ;;  %v3253_v45 = vpop.f32.mrb[7].mxu1 }
 0x214   : > { %v3308_v0 = vmul.f32 %v6213_v48, %v3186_v28  ;;  %v4203_v62 = vpop.f32.mrb[6].mxu0  ;;  %v3363_v11 = vadd.f32 %v6231_v29, %v3324_v33  ;;  %v3325_v41 = vmul.f32 %v6213_v48, %v3253_v45 }
 0x215   : > { %v3349_v2 = vadd.f32 %v6231_v29, %v3310_v63  ;;  %v3311_v47 = vmul.f32 %v4203_v62, %v6213_v48  ;;  %v3189_v49 = vpop.f32.mrb[7].mxu0  ;;  %v3366_v61 = vadd.f32 %v6231_v29, %v3327_v55  ;;  %v3397_v60 = vmax.f32 %v3365_v52, 0.0 }
 0x216   : > { %v3347_v46 = vadd.f32 %v6231_v29, %v3308_v0  ;;  %v3309_v20 = vmul.f32 %v6213_v48, %v3189_v49  ;;  %v3364_v12 = vadd.f32 %v6231_v29, %v3325_v41  ;;  %v3395_v21 = vmax.f32 %v3363_v11, 0.0 }
 0x217   : > { %v3350_v53 = vadd.f32 %v6231_v29, %v3311_v47  ;;  %v3398_v35 = vmax.f32 %v3366_v61, 0.0  ;;  %v3381_v17 = vmax.f32 %v3349_v2, 0.0 }
 0x218   : > { %v3348_v3 = vadd.f32 %v6231_v29, %v3309_v20  ;;  %v3396_v7 = vmax.f32 %v3364_v12, 0.0  ;;  %v3379_v54 = vmax.f32 %v3347_v46, 0.0 }
 0x219   : > { %v3382_v40 = vmax.f32 %v3350_v53, 0.0  ;;  %v4134_v19 = vpack.c.bf16 %v3398_v35, %v3397_v60 }
 0x21a   : > { %v3380_v44 = vmax.f32 %v3348_v3, 0.0  ;;  %v4129_v22 = vpack.c.bf16 %v3396_v7, %v3395_v21 }
 0x21b   : > { %v4094_v59 = vpack.c.bf16 %v3382_v40, %v3381_v17  ;;  %4166 = vst [vmem:[%s6264_s21 + $0x58] sm:$0xff] %v4134_v19  }
 0x21c   : > { %v4089_v6 = vpack.c.bf16 %v3380_v44, %v3379_v54  ;;  %4165 = vst [vmem:[%s6264_s21 + $0x50] sm:$0xff] %v4129_v22  }
 0x21d   : > { %4158 = vst [vmem:[%s6264_s21 + $0x18] sm:$0xff] %v4094_v59  }
 0x21e   : > { %4157 = vst [vmem:[%s6264_s21 + $0x10] sm:$0xff] %v4089_v6  }
 0x24f   : > { %v4222_v18 = vpop.f32.mrb[8].mxu1 }
 0x250   : > { %v3330_v57 = vmul.f32 %v4222_v18, %v6213_v48  ;;  %v3266_v43 = vpop.f32.mrb[9].mxu1 }
 0x251   : > { %v3328_v8 = vmul.f32 %v6213_v48, %v3266_v43  ;;  %v4223_v51 = vpop.f32.mrb[10].mxu1 }
 0x252   : > { %v3369_v32 = vadd.f32 %v6231_v29, %v3330_v57  ;;  %v3331_v5 = vmul.f32 %v4223_v51, %v6213_v48  ;;  %v3269_v56 = vpop.f32.mrb[11].mxu1 }
 0x253   : > { %v4206_v14 = vpop.f32.mrb[8].mxu0  ;;  %v3367_v39 = vadd.f32 %v6231_v29, %v3328_v8  ;;  %v3329_v42 = vmul.f32 %v6213_v48, %v3269_v56 }
 0x254   : > { %v3314_v9 = vmul.f32 %v4206_v14, %v6213_v48  ;;  %v3202_v24 = vpop.f32.mrb[9].mxu0  ;;  %v3370_v16 = vadd.f32 %v6231_v29, %v3331_v5  ;;  %v3401_v1 = vmax.f32 %v3369_v32, 0.0 }
 0x255   : > { %v3312_v50 = vmul.f32 %v6213_v48, %v3202_v24  ;;  %v4207_v58 = vpop.f32.mrb[10].mxu0  ;;  %v3368_v25 = vadd.f32 %v6231_v29, %v3329_v42  ;;  %v3399_v15 = vmax.f32 %v3367_v39, 0.0 }
 0x256   : > { %v3353_v4 = vadd.f32 %v6231_v29, %v3314_v9  ;;  %v3315_v13 = vmul.f32 %v4207_v58, %v6213_v48  ;;  %v3402_v36 = vmax.f32 %v3370_v16, 0.0  ;;  %v3205_v30 = vpop.f32.mrb[11].mxu0 }
 0x257   : > { %v3351_v27 = vadd.f32 %v6231_v29, %v3312_v50  ;;  %v3313_v34 = vmul.f32 %v6213_v48, %v3205_v30  ;;  %v3400_v31 = vmax.f32 %v3368_v25, 0.0 }
 0x258   : > { %v3354_v26 = vadd.f32 %v6231_v29, %v3315_v13  ;;  %v4144_v38 = vpack.c.bf16 %v3402_v36, %v3401_v1  ;;  %v3385_v63 = vmax.f32 %v3353_v4, 0.0 }
 0x259   : > { %v3352_v23 = vadd.f32 %v6231_v29, %v3313_v34  ;;  %v4139_v10 = vpack.c.bf16 %v3400_v31, %v3399_v15  ;;  %v3383_v33 = vmax.f32 %v3351_v27, 0.0 }
 0x25a   : > { %v3386_v28 = vmax.f32 %v3354_v26, 0.0  ;;  %4168 = vst [vmem:[%s6264_s21 + $0x68] sm:$0xff] %v4144_v38  }
 0x25b   : > { %v3384_v37 = vmax.f32 %v3352_v23, 0.0  ;;  %4167 = vst [vmem:[%s6264_s21 + $0x60] sm:$0xff] %v4139_v10  }
 0x25c   : > { %v4104_v52 = vpack.c.bf16 %v3386_v28, %v3385_v63 }
 0x25d   : > { %v4099_v0 = vpack.c.bf16 %v3384_v37, %v3383_v33 }
 0x25e   : > { %4160 = vst [vmem:[%s6264_s21 + $0x28] sm:$0xff] %v4104_v52  }
 0x25f   : > { %4159 = vst [vmem:[%s6264_s21 + $0x20] sm:$0xff] %v4099_v0  }
 0x299   : > { %v4226_v62 = vpop.f32.mrb[12].mxu1 }
 0x29a   : > { %v3334_v55 = vmul.f32 %v4226_v62, %v6213_v48  ;;  %v3282_v45 = vpop.f32.mrb[13].mxu1 }
 0x29b   : > { %v3332_v2 = vmul.f32 %v6213_v48, %v3282_v45  ;;  %v4227_v11 = vpop.f32.mrb[14].mxu1 }
 0x29c   : > { %v4210_v47 = vpop.f32.mrb[12].mxu0  ;;  %v3373_v49 = vadd.f32 %v6231_v29, %v3334_v55  ;;  %v3335_v41 = vmul.f32 %v4227_v11, %v6213_v48  ;;  %v3285_v46 = vpop.f32.mrb[15].mxu1 }
 0x29d   : > { %v3318_v61 = vmul.f32 %v4210_v47, %v6213_v48  ;;  %v3218_v20 = vpop.f32.mrb[13].mxu0  ;;  %v3371_v53 = vadd.f32 %v6231_v29, %v3332_v2  ;;  %v3333_v12 = vmul.f32 %v6213_v48, %v3285_v46 }
 0x29e   : > { %v3316_v60 = vmul.f32 %v6213_v48, %v3218_v20  ;;  %v4211_v35 = vpop.f32.mrb[14].mxu0  ;;  %v3374_v3 = vadd.f32 %v6231_v29, %v3335_v41  ;;  %v3405_v54 = vmax.f32 %v3373_v49, 0.0 }
 0x29f   : > { %v3357_v17 = vadd.f32 %v6231_v29, %v3318_v61  ;;  %v3319_v21 = vmul.f32 %v4211_v35, %v6213_v48  ;;  %v3221_v40 = vpop.f32.mrb[15].mxu0  ;;  %v3372_v7 = vadd.f32 %v6231_v29, %v3333_v12  ;;  %v3403_v22 = vmax.f32 %v3371_v53, 0.0 }
 0x2a0   : > { %v3355_v19 = vadd.f32 %v6231_v29, %v3316_v60  ;;  %v3406_v44 = vmax.f32 %v3374_v3, 0.0  ;;  %v3317_v59 = vmul.f32 %v6213_v48, %v3221_v40 }
 0x2a1   : > { %v3358_v6 = vadd.f32 %v6231_v29, %v3319_v21  ;;  %v3404_v18 = vmax.f32 %v3372_v7, 0.0  ;;  %v3389_v8 = vmax.f32 %v3357_v17, 0.0 }
 0x2a2   : > { %v4154_v57 = vpack.c.bf16 %v3406_v44, %v3405_v54  ;;  %v3356_v43 = vadd.f32 %v6231_v29, %v3317_v59  ;;  %v3387_v5 = vmax.f32 %v3355_v19, 0.0 }
 0x2a3   : > { %v3390_v51 = vmax.f32 %v3358_v6, 0.0  ;;  %v4149_v32 = vpack.c.bf16 %v3404_v18, %v3403_v22 }
 0x2a4   : > { %4170 = vst [vmem:[%s6264_s21 + $0x78] sm:$0xff] %v4154_v57   ;;  %v3388_v56 = vmax.f32 %v3356_v43, 0.0 }
 0x2a5   : > { %v4114_v14 = vpack.c.bf16 %v3390_v51, %v3389_v8  ;;  %4169 = vst [vmem:[%s6264_s21 + $0x70] sm:$0xff] %v4149_v32  }
 0x2a6   : > { %v4109_v39 = vpack.c.bf16 %v3388_v56, %v3387_v5 }
 0x2a7   : > { %4162 = vst [vmem:[%s6264_s21 + $0x38] sm:$0xff] %v4114_v14  }
 0x2a8   : > { %4161 = vst [vmem:[%s6264_s21 + $0x30] sm:$0xff] %v4109_v39  }
 0x2a9 PF: > { %s14_s17 = sadd.s32 1, %s4370_s17   ;;  %s6348_s15 = smov %s4366_s16 }
 0x2aa   : > { %p11_p5 = scmp.ge.s32.totalorder %s14_s17, 4   ;;  %s6349_s16 = smov %s6351_s18 }
 0x2ac   :  { %13 = sbr.rel (!%p11_p5) target bundleno = 2 (0x2), region = 69 }

</bundles_post_ra>
